<compile_context>
chip_gen: v7x
topology: tpu7x:2x2x1
jax: 0.10.0
libtpu: 0.0.40
codegen_flags: <defaults>
</compile_context>

<pallas_src>
import functools

import jax
import jax.numpy as jnp
from jax.experimental import pallas as pl
from jax.experimental.pallas import tpu as pltpu

# ANN hyperparameters (input_var / output_var_clipped are free in the original
# module; pick small deterministic values consistent with the forward pass).
INPUT_VAR = 32            # input features
HIDDEN = 1206             # fixed by the module
OUTPUT_VAR_CLIPPED = 16   # output features
BATCH = 256               # enough rows to fill the MXU / both v7x cores

_LANE = 128               # lane width
_MXU_COLS = 256           # v6e/v7x MXU column-group width (multiple of 128)
_HID_CHUNK = 256          # hidden-dim chunk processed per inner step


def _round_up(x, m):
    return (x + m - 1) // m * m


def ann_kernel(x_ref, w1_ref, b1_ref, w2_ref, b2_ref, o_ref):
    # out = tanh(x @ W1 + b1) @ W2 + b2, computed over static 256-column
    # chunks of the (padded) hidden dimension so MXU / EUP work from
    # different chunks can overlap and the full f32 hidden tile is never
    # stored to VMEM.
    x = x_ref[...]                                   # bf16 [tb, F_in]
    h_pad = w1_ref.shape[1]
    n_chunks = h_pad // _HID_CHUNK                   # static (5 for 1280)

    acc = jnp.zeros((x.shape[0], o_ref.shape[1]), jnp.float32)
    for c in range(n_chunks):                        # fully unrolled (static)
        lo = c * _HID_CHUNK
        hi = lo + _HID_CHUNK
        # matmul1 chunk: bf16 x bf16 on the MXU, f32 accumulation.
        h = jnp.dot(x, w1_ref[:, lo:hi], preferred_element_type=jnp.float32)
        # bias + tanh in f32 (EUP path; valid & accurate on v5e too), then
        # cast to bf16 fused into this chunk's consumer.
        h = jnp.tanh(h + b1_ref[:, lo:hi]).astype(jnp.bfloat16)
        # matmul2 chunk accumulates into the f32 [tb, 128] accumulator.
        acc = acc + jnp.dot(h, w2_ref[lo:hi, :],
                            preferred_element_type=jnp.float32)

    o_ref[...] = (acc + b2_ref[...]).astype(o_ref.dtype)


def prepare_params(w1, b1, w2, b2):
    """One-time weight packing: zero-pad H to a multiple of 256 and F_out to
    128, cast weights to bf16.  Zero padding is numerically exact (tanh(0)=0
    and zero W2 rows add nothing).  Reuse the result across calls so the
    padding/cast cost is amortized."""
    f_in, h = w1.shape
    f_out = w2.shape[1]
    h_pad = _round_up(h, _MXU_COLS)
    f_out_pad = _round_up(max(f_out, _LANE), _LANE)

    w1p = jnp.zeros((f_in, h_pad), jnp.bfloat16).at[:, :h].set(
        w1.astype(jnp.bfloat16))
    b1p = jnp.zeros((1, h_pad), jnp.float32).at[:, :h].set(
        b1.reshape(1, -1).astype(jnp.float32))
    w2p = jnp.zeros((h_pad, f_out_pad), jnp.bfloat16).at[:h, :f_out].set(
        w2.astype(jnp.bfloat16))
    b2p = jnp.zeros((1, f_out_pad), jnp.float32).at[:, :f_out].set(
        b2.reshape(1, -1).astype(jnp.float32))
    return w1p, b1p, w2p, b2p


def pick_tile_b(batch):
    """Single grid step on single-TensorCore chips (v5e/v6e); 128-row tiles
    on v7x so the 'parallel' batch axis is split across its two cores."""
    try:
        kind = jax.devices()[0].device_kind.lower()
    except Exception:  # pragma: no cover - defensive
        kind = ""
    if "v7" in kind and batch >= 2 * _LANE:
        return _LANE
    # One step: keep the whole (small) batch in a single tile, <= 512 rows.
    return min(batch, 512)


@functools.partial(jax.jit, static_argnames=("out_features", "tile_b"))
def ann_forward(x, w1p, b1p, w2p, b2p, *,
                out_features=OUTPUT_VAR_CLIPPED, tile_b=BATCH):
    B, f_in = x.shape
    h_pad = w1p.shape[1]
    f_out_pad = w2p.shape[1]

    if x.dtype != jnp.bfloat16:
        x = x.astype(jnp.bfloat16)

    # Batch tiling: one grid step per `tile_b` rows.  Weight index_maps are
    # constant, so the (bf16) weights are DMA'd into VMEM once and stay
    # resident across grid steps; the batch axis is "parallel" so v7x splits
    # it across its two TensorCores.  Padding is skipped when not needed.
    tb = tile_b if B >= tile_b else _round_up(B, 8)
    b_pad = _round_up(B, tb)
    if b_pad != B:
        x = jnp.pad(x, ((0, b_pad - B), (0, 0)))

    out = pl.pallas_call(
        ann_kernel,
        out_shape=jax.ShapeDtypeStruct((b_pad, f_out_pad), jnp.float32),
        grid=(b_pad // tb,),
        in_specs=[
            pl.BlockSpec((tb, f_in), lambda i: (i, 0)),          # x tile
            pl.BlockSpec((f_in, h_pad), lambda i: (0, 0)),       # W1 (resident)
            pl.BlockSpec((1, h_pad), lambda i: (0, 0)),          # b1 (resident)
            pl.BlockSpec((h_pad, f_out_pad), lambda i: (0, 0)),  # W2 (resident)
            pl.BlockSpec((1, f_out_pad), lambda i: (0, 0)),      # b2 (resident)
        ],
        out_specs=pl.BlockSpec((tb, f_out_pad), lambda i: (i, 0)),
        compiler_params=pltpu.CompilerParams(
            dimension_semantics=("parallel",)),
    )(x, w1p, b1p, w2p, b2p)

    # Lane-dense [.., 128] store in the kernel; slice back to the real width
    # inside the same jit so it fuses rather than dispatching a copy.
    return out[:B, :out_features]


def init_params(key):
    # Matches nn.init.uniform_(-0.001, 0.001) on both weights and biases.
    lower, upper = -0.001, 0.001
    k1, k2, k3, k4 = jax.random.split(key, 4)
    w1 = jax.random.uniform(k1, (INPUT_VAR, HIDDEN), jnp.float32, lower, upper)
    b1 = jax.random.uniform(k2, (HIDDEN,), jnp.float32, lower, upper)
    w2 = jax.random.uniform(k3, (HIDDEN, OUTPUT_VAR_CLIPPED), jnp.float32,
                            lower, upper)
    b2 = jax.random.uniform(k4, (OUTPUT_VAR_CLIPPED,), jnp.float32, lower, upper)
    return w1, b1, w2, b2


if __name__ == "__main__":
    key = jax.random.PRNGKey(0)
    k_param, k_x = jax.random.split(key)
    w1, b1, w2, b2 = init_params(k_param)
    x = jax.random.normal(k_x, (BATCH, INPUT_VAR), jnp.float32)

    # One-time weight packing (pad + bf16 cast); x cast to bf16 once on the
    # caller side so the kernel wrapper does no extra dtype work.
    w1p, b1p, w2p, b2p = prepare_params(w1, b1, w2, b2)
    x_bf16 = x.astype(jnp.bfloat16)

    tile_b = pick_tile_b(BATCH)   # 256 on v5e/v6e (1 grid step), 128 on v7x
    out = ann_forward(x_bf16, w1p, b1p, w2p, b2p, tile_b=tile_b)
    out = jax.block_until_ready(out)

    # Pure-JAX f32 reference of the same forward pass.
    # NOTE: bf16 weight/activation casts are an approximation; they pass these
    # tolerances because the module's init keeps |W| <= 1e-3.  For real-scale
    # weights, keep an f32 fallback path or loosen the tolerance.
    ref = jnp.tanh(x @ w1 + b1.reshape(1, -1)) @ w2 + b2.reshape(1, -1)
    assert out.shape == (BATCH, OUTPUT_VAR_CLIPPED)
    assert jnp.allclose(out, ref, atol=2e-5, rtol=1e-3), \
        float(jnp.max(jnp.abs(out - ref)))

    print("KERNEL_OK")
</pallas_src>

<mosaic_0001>
module attributes {stable_mosaic.version = 11 : i64} {
  func.func @ann_kernel(%arg0: i32, %arg1: memref<256x32xbf16, #tpu.memory_space<vmem>>, %arg2: memref<32x1280xbf16, #tpu.memory_space<vmem>>, %arg3: memref<1x1280xf32, #tpu.memory_space<vmem>>, %arg4: memref<1280x128xbf16, #tpu.memory_space<vmem>>, %arg5: memref<1x128xf32, #tpu.memory_space<vmem>>, %arg6: memref<256x128xf32, #tpu.memory_space<vmem>>) attributes {dimension_semantics = [#tpu.dimension_semantics<parallel>], iteration_bounds = array<i64: 1>, scalar_prefetch = 0 : i64, scratch_operands = 0 : i64, tpu.core_type = #tpu.core_type<tc>, window_params = [{transform_indices = @transform_0, window_bounds = array<i64: 256, 32>}, {pipeline_mode = #tpu.pipeline_mode<synchronous>, transform_indices = @transform_1, window_bounds = array<i64: 32, 1280>}, {pipeline_mode = #tpu.pipeline_mode<synchronous>, transform_indices = @transform_2, window_bounds = array<i64: 1, 1280>}, {pipeline_mode = #tpu.pipeline_mode<synchronous>, transform_indices = @transform_3, window_bounds = array<i64: 1280, 128>}, {pipeline_mode = #tpu.pipeline_mode<synchronous>, transform_indices = @transform_4, window_bounds = array<i64: 1, 128>}, {transform_indices = @transform_5, window_bounds = array<i64: 256, 128>}]} {
    %c0 = arith.constant 0 : index
    %c0_0 = arith.constant 0 : index
    %0 = vector.load %arg1[%c0, %c0_0] : memref<256x32xbf16, #tpu.memory_space<vmem>>, vector<256x32xbf16>
    %cst = arith.constant 0.000000e+00 : f32
    %1 = vector.broadcast %cst : f32 to vector<256x128xf32>
    %c0_1 = arith.constant 0 : index
    %c0_2 = arith.constant 0 : index
    %2 = vector.load %arg2[%c0_1, %c0_2] : memref<32x1280xbf16, #tpu.memory_space<vmem>>, vector<32x256xbf16>
    %cst_3 = arith.constant dense<0.000000e+00> : vector<256x256xf32>
    %3 = tpu.matmul %0, %2, %cst_3 {dimension_numbers = #tpu.dot_dimension_numbers<[1], [0], [0], [1], [0, 0, 1, 1], [], []>} : vector<256x32xbf16>, vector<32x256xbf16>, vector<256x256xf32> -> vector<256x256xf32>
    %c0_4 = arith.constant 0 : index
    %c0_5 = arith.constant 0 : index
    %4 = vector.load %arg3[%c0_4, %c0_5] : memref<1x1280xf32, #tpu.memory_space<vmem>>, vector<1x256xf32>
    %5 = vector.broadcast %4 : vector<1x256xf32> to vector<256x256xf32>
    %6 = arith.addf %3, %5 : vector<256x256xf32>
    %7 = math.tanh %6 : vector<256x256xf32>
    %8 = arith.truncf %7 : vector<256x256xf32> to vector<256x256xbf16>
    %c0_6 = arith.constant 0 : index
    %c0_7 = arith.constant 0 : index
    %9 = vector.load %arg4[%c0_6, %c0_7] : memref<1280x128xbf16, #tpu.memory_space<vmem>>, vector<256x128xbf16>
    %cst_8 = arith.constant dense<0.000000e+00> : vector<256x128xf32>
    %10 = tpu.matmul %8, %9, %cst_8 {dimension_numbers = #tpu.dot_dimension_numbers<[1], [0], [0], [1], [0, 0, 1, 1], [], []>} : vector<256x256xbf16>, vector<256x128xbf16>, vector<256x128xf32> -> vector<256x128xf32>
    %11 = arith.addf %1, %10 : vector<256x128xf32>
    %c0_9 = arith.constant 0 : index
    %c256 = arith.constant 256 : index
    %12 = vector.load %arg2[%c0_9, %c256] : memref<32x1280xbf16, #tpu.memory_space<vmem>>, vector<32x256xbf16>
    %cst_10 = arith.constant dense<0.000000e+00> : vector<256x256xf32>
    %13 = tpu.matmul %0, %12, %cst_10 {dimension_numbers = #tpu.dot_dimension_numbers<[1], [0], [0], [1], [0, 0, 1, 1], [], []>} : vector<256x32xbf16>, vector<32x256xbf16>, vector<256x256xf32> -> vector<256x256xf32>
    %c0_11 = arith.constant 0 : index
    %c256_12 = arith.constant 256 : index
    %14 = vector.load %arg3[%c0_11, %c256_12] : memref<1x1280xf32, #tpu.memory_space<vmem>>, vector<1x256xf32>
    %15 = vector.broadcast %14 : vector<1x256xf32> to vector<256x256xf32>
    %16 = arith.addf %13, %15 : vector<256x256xf32>
    %17 = math.tanh %16 : vector<256x256xf32>
    %18 = arith.truncf %17 : vector<256x256xf32> to vector<256x256xbf16>
    %c256_13 = arith.constant 256 : index
    %c0_14 = arith.constant 0 : index
    %19 = vector.load %arg4[%c256_13, %c0_14] : memref<1280x128xbf16, #tpu.memory_space<vmem>>, vector<256x128xbf16>
    %cst_15 = arith.constant dense<0.000000e+00> : vector<256x128xf32>
    %20 = tpu.matmul %18, %19, %cst_15 {dimension_numbers = #tpu.dot_dimension_numbers<[1], [0], [0], [1], [0, 0, 1, 1], [], []>} : vector<256x256xbf16>, vector<256x128xbf16>, vector<256x128xf32> -> vector<256x128xf32>
    %21 = arith.addf %11, %20 : vector<256x128xf32>
    %c0_16 = arith.constant 0 : index
    %c512 = arith.constant 512 : index
    %22 = vector.load %arg2[%c0_16, %c512] : memref<32x1280xbf16, #tpu.memory_space<vmem>>, vector<32x256xbf16>
    %cst_17 = arith.constant dense<0.000000e+00> : vector<256x256xf32>
    %23 = tpu.matmul %0, %22, %cst_17 {dimension_numbers = #tpu.dot_dimension_numbers<[1], [0], [0], [1], [0, 0, 1, 1], [], []>} : vector<256x32xbf16>, vector<32x256xbf16>, vector<256x256xf32> -> vector<256x256xf32>
    %c0_18 = arith.constant 0 : index
    %c512_19 = arith.constant 512 : index
    %24 = vector.load %arg3[%c0_18, %c512_19] : memref<1x1280xf32, #tpu.memory_space<vmem>>, vector<1x256xf32>
    %25 = vector.broadcast %24 : vector<1x256xf32> to vector<256x256xf32>
    %26 = arith.addf %23, %25 : vector<256x256xf32>
    %27 = math.tanh %26 : vector<256x256xf32>
    %28 = arith.truncf %27 : vector<256x256xf32> to vector<256x256xbf16>
    %c512_20 = arith.constant 512 : index
    %c0_21 = arith.constant 0 : index
    %29 = vector.load %arg4[%c512_20, %c0_21] : memref<1280x128xbf16, #tpu.memory_space<vmem>>, vector<256x128xbf16>
    %cst_22 = arith.constant dense<0.000000e+00> : vector<256x128xf32>
    %30 = tpu.matmul %28, %29, %cst_22 {dimension_numbers = #tpu.dot_dimension_numbers<[1], [0], [0], [1], [0, 0, 1, 1], [], []>} : vector<256x256xbf16>, vector<256x128xbf16>, vector<256x128xf32> -> vector<256x128xf32>
    %31 = arith.addf %21, %30 : vector<256x128xf32>
    %c0_23 = arith.constant 0 : index
    %c768 = arith.constant 768 : index
    %32 = vector.load %arg2[%c0_23, %c768] : memref<32x1280xbf16, #tpu.memory_space<vmem>>, vector<32x256xbf16>
    %cst_24 = arith.constant dense<0.000000e+00> : vector<256x256xf32>
    %33 = tpu.matmul %0, %32, %cst_24 {dimension_numbers = #tpu.dot_dimension_numbers<[1], [0], [0], [1], [0, 0, 1, 1], [], []>} : vector<256x32xbf16>, vector<32x256xbf16>, vector<256x256xf32> -> vector<256x256xf32>
    %c0_25 = arith.constant 0 : index
    %c768_26 = arith.constant 768 : index
    %34 = vector.load %arg3[%c0_25, %c768_26] : memref<1x1280xf32, #tpu.memory_space<vmem>>, vector<1x256xf32>
    %35 = vector.broadcast %34 : vector<1x256xf32> to vector<256x256xf32>
    %36 = arith.addf %33, %35 : vector<256x256xf32>
    %37 = math.tanh %36 : vector<256x256xf32>
    %38 = arith.truncf %37 : vector<256x256xf32> to vector<256x256xbf16>
    %c768_27 = arith.constant 768 : index
    %c0_28 = arith.constant 0 : index
    %39 = vector.load %arg4[%c768_27, %c0_28] : memref<1280x128xbf16, #tpu.memory_space<vmem>>, vector<256x128xbf16>
    %cst_29 = arith.constant dense<0.000000e+00> : vector<256x128xf32>
    %40 = tpu.matmul %38, %39, %cst_29 {dimension_numbers = #tpu.dot_dimension_numbers<[1], [0], [0], [1], [0, 0, 1, 1], [], []>} : vector<256x256xbf16>, vector<256x128xbf16>, vector<256x128xf32> -> vector<256x128xf32>
    %41 = arith.addf %31, %40 : vector<256x128xf32>
    %c0_30 = arith.constant 0 : index
    %c1024 = arith.constant 1024 : index
    %42 = vector.load %arg2[%c0_30, %c1024] : memref<32x1280xbf16, #tpu.memory_space<vmem>>, vector<32x256xbf16>
    %cst_31 = arith.constant dense<0.000000e+00> : vector<256x256xf32>
    %43 = tpu.matmul %0, %42, %cst_31 {dimension_numbers = #tpu.dot_dimension_numbers<[1], [0], [0], [1], [0, 0, 1, 1], [], []>} : vector<256x32xbf16>, vector<32x256xbf16>, vector<256x256xf32> -> vector<256x256xf32>
    %c0_32 = arith.constant 0 : index
    %c1024_33 = arith.constant 1024 : index
    %44 = vector.load %arg3[%c0_32, %c1024_33] : memref<1x1280xf32, #tpu.memory_space<vmem>>, vector<1x256xf32>
    %45 = vector.broadcast %44 : vector<1x256xf32> to vector<256x256xf32>
    %46 = arith.addf %43, %45 : vector<256x256xf32>
    %47 = math.tanh %46 : vector<256x256xf32>
    %48 = arith.truncf %47 : vector<256x256xf32> to vector<256x256xbf16>
    %c1024_34 = arith.constant 1024 : index
    %c0_35 = arith.constant 0 : index
    %49 = vector.load %arg4[%c1024_34, %c0_35] : memref<1280x128xbf16, #tpu.memory_space<vmem>>, vector<256x128xbf16>
    %cst_36 = arith.constant dense<0.000000e+00> : vector<256x128xf32>
    %50 = tpu.matmul %48, %49, %cst_36 {dimension_numbers = #tpu.dot_dimension_numbers<[1], [0], [0], [1], [0, 0, 1, 1], [], []>} : vector<256x256xbf16>, vector<256x128xbf16>, vector<256x128xf32> -> vector<256x128xf32>
    %51 = arith.addf %41, %50 : vector<256x128xf32>
    %c0_37 = arith.constant 0 : index
    %c0_38 = arith.constant 0 : index
    %52 = vector.load %arg5[%c0_37, %c0_38] : memref<1x128xf32, #tpu.memory_space<vmem>>, vector<1x128xf32>
    %53 = vector.broadcast %52 : vector<1x128xf32> to vector<256x128xf32>
    %54 = arith.addf %51, %53 : vector<256x128xf32>
    %c0_39 = arith.constant 0 : index
    %c0_40 = arith.constant 0 : index
    %55 = vector.load %arg6[%c0_39, %c0_40] : memref<256x128xf32, #tpu.memory_space<vmem>>, vector<256x128xf32>
    tpu.vector_store %arg6[%c0_39, %c0_40], %54 {strides = array<i32>} : memref<256x128xf32, #tpu.memory_space<vmem>>, vector<256x128xf32>,
    return
  }
  func.func @transform_0(%arg0: i32) -> (i32, i32) {
    %c0_i32 = arith.constant 0 : i32
    %c0_i32_0 = arith.constant 0 : i32
    return %arg0, %c0_i32 : i32, i32
  }
  func.func @transform_1(%arg0: i32) -> (i32, i32) {
    %c0_i32 = arith.constant 0 : i32
    %c0_i32_0 = arith.constant 0 : i32
    %c0_i32_1 = arith.constant 0 : i32
    return %c0_i32, %c0_i32_0 : i32, i32
  }
  func.func @transform_2(%arg0: i32) -> (i32, i32) {
    %c0_i32 = arith.constant 0 : i32
    %c0_i32_0 = arith.constant 0 : i32
    %c0_i32_1 = arith.constant 0 : i32
    return %c0_i32, %c0_i32_0 : i32, i32
  }
  func.func @transform_3(%arg0: i32) -> (i32, i32) {
    %c0_i32 = arith.constant 0 : i32
    %c0_i32_0 = arith.constant 0 : i32
    %c0_i32_1 = arith.constant 0 : i32
    return %c0_i32, %c0_i32_0 : i32, i32
  }
  func.func @transform_4(%arg0: i32) -> (i32, i32) {
    %c0_i32 = arith.constant 0 : i32
    %c0_i32_0 = arith.constant 0 : i32
    %c0_i32_1 = arith.constant 0 : i32
    return %c0_i32, %c0_i32_0 : i32, i32
  }
  func.func @transform_5(%arg0: i32) -> (i32, i32) {
    %c0_i32 = arith.constant 0 : i32
    %c0_i32_0 = arith.constant 0 : i32
    return %arg0, %c0_i32 : i32, i32
  }
}

</mosaic_0001>

<bundles_post_ra>
// kernel: ann_forward.1
= control target key start
LH: loop header
LB: loop body
LE: loop exit
PB: predicated region body
PF: predicated region fallthrough
CT: control target
= control target key end

     0   :  { %10 = vsyncpa [#allocation3], 0  ;;  %s6319_s0 = inlined_call_operand.vmem [shape: bf16[256,32], index: 0, kind: input, shape index: {}]   ;;  %s6320_s1 = inlined_call_operand.vmem [shape: bf16[32,1280], index: 1, kind: input, shape index: {}]   ;;  %s6321_s2 = inlined_call_operand.hbm [shape: f32[1,1280], index: 2, kind: input, shape index: {}]   ;;  %s6322_s3 = inlined_call_operand.hbm [shape: bf16[1280,128], index: 3, kind: input, shape index: {}]   ;;  %s6323_s4 = inlined_call_operand.vmem [shape: f32[1,128], index: 4, kind: input, shape index: {}]   ;;  %s6324_s5 = inlined_call_operand.vmem [shape: f32[256,128], index: 5, kind: output, shape index: {}]  }
   0x1   :  { %11 = vsyncpa [#allocation5], 0  ;;  %s5056_s18 = smov [#allocation2]   ;;  %s5057_s20 = smov [#allocation4]  }
   0x2   :  { %s22_s19 = sshll.u32 %s5056_s18, 4  ;;  %s31_s21 = sshll.u32 %s5057_s20, 4  ;;  %s23_s19 = int_to_ptr.vmem [resolvable:$true] %s22_s19  ;;  %s5091_s21 = int_to_ptr.vmem [resolvable:$true] %s31_s21 }
   0x3   :  { %s5008_s24 = scalar_lea.hbm %s6321_s2, 160 }
   0x4   :  { %p5009_p0 = scmp.ne.s32.totalorder %s6321_s2, %s5008_s24  ;;  %p5012_p1 = scmp.lt.u32.totalorder %s5008_s24, %s6321_s2 }
   0x6   :  { %p5014_p2 = pnand %p5012_p1, %p5009_p0 }
   0x8   :  { %5017 = shalt.err (!%p5014_p2)
}
   0x9   :  { %s5018_s29 = scalar_lea.vmem %s23_s19, 160  ;;  %p5023_p4 = scmp.lt.s32.totalorder %s23_s19, %s23_s19 }
   0xa   :  { %p5019_p3 = scmp.ne.s32.totalorder %s23_s19, %s5018_s29  ;;  %p5024_p5 = scmp.lt.s32.totalorder %s5018_s29, %s5018_s29 }
   0xc   :  { %p5025_p6 = por %p5024_p5, %p5023_p4 }
   0xe   :  { %p5026_p7 = pnand %p5025_p6, %p5019_p3 }
  0x10   :  { %5029 = shalt.err (!%p5026_p7)
}
  0x11   :  { %25 = dma.hbm_to_vmem [thread:$0]  %s6321_s2, 160, %s23_s19, [#allocation3]  }
  0x12   :  { %s5030_s9 = scalar_lea.hbm %s6322_s3, 10240 }
  0x13   :  { %p5031_p8 = scmp.ne.s32.totalorder %s6322_s3, %s5030_s9  ;;  %p5034_p9 = scmp.lt.u32.totalorder %s5030_s9, %s6322_s3 }
  0x15   :  { %p5036_p10 = pnand %p5034_p9, %p5031_p8 }
  0x17   :  { %5039 = shalt.err (!%p5036_p10)
}
  0x18   :  { %s5040_s14 = scalar_lea.vmem %s5091_s21, 10240  ;;  %p5045_p12 = scmp.lt.s32.totalorder %s5091_s21, %s5091_s21 }
  0x19   :  { %p5041_p11 = scmp.ne.s32.totalorder %s5091_s21, %s5040_s14  ;;  %p5046_p13 = scmp.lt.s32.totalorder %s5040_s14, %s5040_s14 }
  0x1b   :  { %p5047_p0 = por %p5046_p13, %p5045_p12 }
  0x1d   :  { %p5048_p1 = pnand %p5047_p0, %p5041_p11 }
  0x1f   :  { %5051 = shalt.err (!%p5048_p1)
}
  0x20   :  { %s5058_s2 = smov 64   ;;  %s5059_s15 = smov 4  }
  0x21   :  { %37 = dma.hbm_to_vmem [thread:$0]  %s6322_s3, 10240, %s5091_s21, [#allocation5], %s5058_s2, %s5058_s2, %s5059_s15  }
  0x22   :  { %5052 = dma.done.wait [#allocation3], 160  }
  0x23   :  { %5053 = vsyncadd [#allocation3], 4294967136 }
  0x24   :  { %5054 = dma.done.wait [#allocation5], 10240  }
  0x25   :  { %5055 = vsyncadd [#allocation5], 4294957056  ;;  %v5060_v0 = vmov 0   ;;  %v4213_v1 = vld [vmem:[%s6320_s1 + $0x4] ss:$40 sps:$4 sm:$0xff]   ;;  %vm195_vm0 = vcmask 261120   ;;  %v85_v58 = vlaneseq }
  0x26   :  { %276 = vmatprep.mubr.bf16.mxu0 %v5060_v0  ;;  %633 = vmatprep.mubr.bf16.mxu1 %v5060_v0  ;;  %v4215_v2 = vld [vmem:[%s6320_s1 + $0xc] ss:$40 sps:$4 sm:$0xff]   ;;  %v4217_v3 = vld [vmem:[%s6320_s1] ss:$40 sps:$4 sm:$0xff]   ;;  %v4221_v6 = vld [vmem:[%s6320_s1 + $0x5c] ss:$40 sps:$4 sm:$0xff]  }
  0x27   :  { %244 = vmatprep.subr.bf16.mxu0 %v4213_v1  ;;  %v4218_v4 = vld [vmem:[%s6320_s1 + $0x8] ss:$40 sps:$4 sm:$0xff]   ;;  %601 = vmatprep.subr.bf16.mxu1 %v4215_v2  ;;  %v4219_v5 = vld [vmem:[%s6320_s1 + $0x54] ss:$40 sps:$4 sm:$0xff]   ;;  %v4224_v8 = vld [vmem:[%s6320_s1 + $0x58] ss:$40 sps:$4 sm:$0xff]  }
  0x28   :  { %245 = vmatpush1.bf16.msra.mxu0 %v4217_v3  ;;  %602 = vmatpush1.bf16.msra.mxu1 %v4218_v4  ;;  %v4223_v7 = vld [vmem:[%s6320_s1 + $0x50] ss:$40 sps:$4 sm:$0xff]   ;;  %v4225_v9 = vld [vmem:[%s6319_s0] sm:$0xff]   ;;  %v4226_v10 = vld [vmem:[%s6319_s0 + $0x8] sm:$0xff]   ;;  %v86_v59 = vshrl.u32 %v85_v58, 7 }
  0x29   :  { %246 = vmatprep.subr.bf16.mxu0 %v4219_v5  ;;  %603 = vmatprep.subr.bf16.mxu1 %v4221_v6  ;;  %v4238_v11 = vld [vmem:[#allocation4 + $0xc0] sm:$0xff]   ;;  %v4242_v14 = vld [vmem:[#allocation4 + $0xc8] sm:$0xff]   ;;  %v4245_v16 = vld [vmem:[#allocation4 + $0xd0] sm:$0xff]  }
  0x2a   :  { %v4239_v12 = vld [vmem:[#allocation4 + $0x80] sm:$0xff]   ;;  %v4243_v15 = vld [vmem:[#allocation4 + $0x88] sm:$0xff]   ;;  %v4246_v17 = vld [vmem:[#allocation4 + $0x90] sm:$0xff]   ;;  %v5261_v60 = vsub.s32 0, %v86_v59  ;;  %v5263_v63 = vsub.s32 1, %v86_v59 }
  0x2b   :  { %v4227_v13 = vld [vmem:[%s6319_s0 + $0x10] sm:$0xff]   ;;  %v4247_v18 = vld [vmem:[#allocation4 + $0xd8] sm:$0xff]   ;;  %v4228_v20 = vld [vmem:[%s6319_s0 + $0x18] sm:$0xff]  }
  0x2c   :  { %247 = vmatpush1.bf16.msra.mxu0 %v4223_v7  ;;  %604 = vmatpush1.bf16.msra.mxu1 %v4224_v8  ;;  %v4248_v19 = vld [vmem:[#allocation4 + $0x98] sm:$0xff]   ;;  %v4249_v21 = vld [vmem:[#allocation4 + $0xe0] sm:$0xff]   ;;  %v4251_v23 = vld [vmem:[#allocation4 + $0xe8] sm:$0xff]  }
  0x2d   :  { %3648 = vmatprep.subr.bf16.mxu0 %v4238_v11  ;;  %v4250_v22 = vld [vmem:[#allocation4 + $0xa0] sm:$0xff]   ;;  %v4252_v24 = vld [vmem:[#allocation4 + $0xa8] sm:$0xff]   ;;  %v4229_v26 = vld [vmem:[%s6319_s0 + $0x20] sm:$0xff]  }
  0x2e   :  { %v4255_v25 = vld [vmem:[#allocation4 + $0x40] sm:$0xff]   ;;  %v4257_v28 = vld [vmem:[#allocation4 + $0x48] sm:$0xff]   ;;  %v4253_v29 = vld [vmem:[#allocation4 + $0xf0] sm:$0xff]  }
  0x2f   :  { %3471 = vmatmul.mubr.msk.bf16.vlgmr.msra.gmra.mrb[0].mxu0 %vm195_vm0, %v4225_v9  ;;  %3491 = vmatmul.mubr.msk.bf16.vlgmr.msra.gmra.mrb[0].mxu1 %vm195_vm0, %v4225_v9  ;;  %v4256_v27 = vld [vmem:[#allocation4] sm:$0xff]   ;;  %v4254_v30 = vld [vmem:[#allocation4 + $0xb0] sm:$0xff]   ;;  %v4258_v31 = vld [vmem:[#allocation4 + $0x8] sm:$0xff]  }
  0x30   :  { %286 = vmatprep.mubr.bf16.mxu0 %v5060_v0  ;;  %643 = vmatprep.mubr.bf16.mxu1 %v5060_v0  ;;  %v4259_v32 = vld [vmem:[#allocation4 + $0x50] sm:$0xff]   ;;  %v4230_v34 = vld [vmem:[%s6319_s0 + $0x28] sm:$0xff]   ;;  %v4231_v35 = vld [vmem:[%s6319_s0 + $0x30] sm:$0xff]  }
  0x31   :  { %3649 = vmatpush3.bf16.msra.mxu0 %v4239_v12  ;;  %3760 = vmatprep.subr.bf16.mxu1 %v4255_v25  ;;  %v4260_v33 = vld [vmem:[#allocation4 + $0x10] sm:$0xff]   ;;  %v4234_v38 = vld [vmem:[%s6319_s0 + $0x48] sm:$0xff]   ;;  %v4235_v39 = vld [vmem:[%s6319_s0 + $0x50] sm:$0xff]  }
  0x32   :  { %3650 = vmatprep.subr.bf16.mxu0 %v4242_v14  ;;  %3761 = vmatpush3.bf16.msra.mxu1 %v4256_v27  ;;  %v4232_v36 = vld [vmem:[%s6319_s0 + $0x38] sm:$0xff]   ;;  %v4233_v37 = vld [vmem:[%s6319_s0 + $0x40] sm:$0xff]   ;;  %v4265_v43 = vld [vmem:[#allocation4 + $0x60] sm:$0xff]  }
  0x33   :  { %3762 = vmatprep.subr.bf16.mxu1 %v4257_v28  ;;  %v4261_v40 = vld [vmem:[#allocation4 + $0x58] sm:$0xff]   ;;  %v4236_v41 = vld [vmem:[%s6319_s0 + $0x58] sm:$0xff]   ;;  %v4266_v44 = vld [vmem:[#allocation4 + $0x20] sm:$0xff]  }
  0x34   :  { %v4262_v42 = vld [vmem:[#allocation4 + $0x18] sm:$0xff]   ;;  %v4267_v47 = vld [vmem:[#allocation4 + $0x68] sm:$0xff]   ;;  %v4269_v50 = vld [vmem:[#allocation4 + $0x70] sm:$0xff]  }
  0x35   :  { %3651 = vmatpush3.bf16.msra.mxu0 %v4243_v15  ;;  %v4237_v45 = vld [vmem:[%s6319_s0 + $0x60] sm:$0xff]   ;;  %v4268_v49 = vld [vmem:[#allocation4 + $0x28] sm:$0xff]   ;;  %v4240_v52 = vld [vmem:[%s6319_s0 + $0x68] sm:$0xff]  }
  0x36   :  { %3652 = vmatprep.subr.bf16.mxu0 %v4245_v16  ;;  %3763 = vmatpush3.bf16.msra.mxu1 %v4258_v31  ;;  %v4263_v46 = vld [vmem:[#allocation4 + $0xf8] sm:$0xff]   ;;  %v4270_v51 = vld [vmem:[#allocation4 + $0x30] sm:$0xff]   ;;  %v4241_v55 = vld [vmem:[%s6319_s0 + $0x70] sm:$0xff]  }
  0x37   :  { %3472 = vmatmul.mubr.msk.bf16.gmra.mrb[4].mxu0 %vm195_vm0, %v4226_v10  ;;  %3492 = vmatmul.mubr.msk.bf16.gmra.mrb[4].mxu1 %vm195_vm0, %v4226_v10  ;;  %v4264_v48 = vld [vmem:[#allocation4 + $0xb8] sm:$0xff]   ;;  %v4275_v56 = vld [vmem:[%s6320_s1 + $0x14] ss:$40 sps:$4 sm:$0xff]   ;;  %v83_v61 = vld [vmem:[#allocation2] sm:$0x3] }
  0x38   :  { %296 = vmatprep.mubr.bf16.mxu0 %v5060_v0  ;;  %653 = vmatprep.mubr.bf16.mxu1 %v5060_v0  ;;  %v4271_v53 = vld [vmem:[#allocation4 + $0x78] sm:$0xff]   ;;  %v4244_v57 = vld [vmem:[%s6319_s0 + $0x78] sm:$0xff]   ;;  %v5266_v1 = vrot.slane %v83_v61, %v5261_v60  ;;  %v5272_v3 = vrot.slane %v83_v61, %v5263_v63 }
  0x39   :  { %3653 = vmatpush3.bf16.msra.mxu0 %v4246_v17  ;;  %3764 = vmatprep.subr.bf16.mxu1 %v4259_v32  ;;  %v4272_v54 = vld [vmem:[#allocation4 + $0x38] sm:$0xff]  }
  0x3a   :  { %3654 = vmatprep.subr.bf16.mxu0 %v4247_v18  ;;  %3765 = vmatpush3.bf16.msra.mxu1 %v4260_v33  ;;  %v569_v62 = vld [vmem:[#allocation2 + $0x2] sm:$0x3] }
  0x3b   :  { %3766 = vmatprep.subr.bf16.mxu1 %v4261_v40  ;;  %v5269_v2 = vrot.slane %v569_v62, %v5261_v60  ;;  %v5275_v4 = vrot.slane %v569_v62, %v5263_v63 }
  0x3d   :  { %3655 = vmatpush3.bf16.msra.mxu0 %v4248_v19 }
  0x3e   :  { %3656 = vmatprep.subr.bf16.mxu0 %v4249_v21  ;;  %3767 = vmatpush3.bf16.msra.mxu1 %v4262_v42 }
  0x3f   :  { %3473 = vmatmul.mubr.msk.bf16.gmra.mrb[8].mxu0 %vm195_vm0, %v4227_v13  ;;  %3493 = vmatmul.mubr.msk.bf16.gmra.mrb[8].mxu1 %vm195_vm0, %v4227_v13 }
  0x40   :  { %306 = vmatprep.mubr.bf16.mxu0 %v5060_v0  ;;  %663 = vmatprep.mubr.bf16.mxu1 %v5060_v0 }
  0x41   :  { %3657 = vmatpush3.bf16.msra.mxu0 %v4250_v22  ;;  %3768 = vmatprep.subr.bf16.mxu1 %v4265_v43 }
  0x42   :  { %3658 = vmatprep.subr.bf16.mxu0 %v4251_v23  ;;  %3769 = vmatpush3.bf16.msra.mxu1 %v4266_v44 }
  0x43   :  { %3770 = vmatprep.subr.bf16.mxu1 %v4267_v47 }
  0x45   :  { %3659 = vmatpush3.bf16.msra.mxu0 %v4252_v24 }
  0x46   :  { %3660 = vmatprep.subr.bf16.mxu0 %v4253_v29  ;;  %3771 = vmatpush3.bf16.msra.mxu1 %v4268_v49 }
  0x47   :  { %3474 = vmatmul.mubr.msk.bf16.gmra.mrb[12].mxu0 %vm195_vm0, %v4228_v20  ;;  %3494 = vmatmul.mubr.msk.bf16.gmra.mrb[12].mxu1 %vm195_vm0, %v4228_v20 }
  0x48   :  { %316 = vmatprep.mubr.bf16.mxu0 %v5060_v0  ;;  %673 = vmatprep.mubr.bf16.mxu1 %v5060_v0 }
  0x49   :  { %3661 = vmatpush3.bf16.msra.mxu0 %v4254_v30  ;;  %3772 = vmatprep.subr.bf16.mxu1 %v4269_v50 }
  0x4a   :  { %3662 = vmatprep.subr.bf16.mxu0 %v4263_v46  ;;  %3773 = vmatpush3.bf16.msra.mxu1 %v4270_v51 }
  0x4b   :  { %3774 = vmatprep.subr.bf16.mxu1 %v4271_v53 }
  0x4d   :  { %3663 = vmatpush3.bf16.msra.mxu0 %v4264_v48 }
  0x4e   :  { %3775 = vmatpush3.bf16.msra.mxu1 %v4272_v54  ;;  %1472 = vmatprep.subr.bf16.mxu0 %v4275_v56 }
  0x4f   :  { %3475 = vmatmul.mubr.msk.bf16.gmra.mrb[16].mxu0 %vm195_vm0, %v4229_v26  ;;  %3495 = vmatmul.mubr.msk.bf16.gmra.mrb[16].mxu1 %vm195_vm0, %v4229_v26 }
  0x50   :  { %326 = vmatprep.mubr.bf16.mxu0 %v5060_v0  ;;  %683 = vmatprep.mubr.bf16.mxu1 %v5060_v0 }
  0x57   :  { %3476 = vmatmul.mubr.msk.bf16.gmra.mrb[20].mxu0 %vm195_vm0, %v4230_v34  ;;  %3496 = vmatmul.mubr.msk.bf16.gmra.mrb[20].mxu1 %vm195_vm0, %v4230_v34 }
  0x58   :  { %336 = vmatprep.mubr.bf16.mxu0 %v5060_v0  ;;  %693 = vmatprep.mubr.bf16.mxu1 %v5060_v0 }
  0x5f   :  { %3477 = vmatmul.mubr.msk.bf16.gmra.mrb[24].mxu0 %vm195_vm0, %v4231_v35  ;;  %3497 = vmatmul.mubr.msk.bf16.gmra.mrb[24].mxu1 %vm195_vm0, %v4231_v35 }
  0x60   :  { %346 = vmatprep.mubr.bf16.mxu0 %v5060_v0  ;;  %703 = vmatprep.mubr.bf16.mxu1 %v5060_v0 }
  0x67   :  { %3478 = vmatmul.mubr.msk.bf16.gmra.mrb[28].mxu0 %vm195_vm0, %v4232_v36  ;;  %3498 = vmatmul.mubr.msk.bf16.gmra.mrb[28].mxu1 %vm195_vm0, %v4232_v36 }
  0x68   :  { %356 = vmatprep.mubr.bf16.mxu0 %v5060_v0  ;;  %713 = vmatprep.mubr.bf16.mxu1 %v5060_v0 }
  0x6f   :  { %3479 = vmatmul.mubr.msk.bf16.gmra.mrb[32].mxu0 %vm195_vm0, %v4233_v37  ;;  %3499 = vmatmul.mubr.msk.bf16.gmra.mrb[32].mxu1 %vm195_vm0, %v4233_v37 }
  0x70   :  { %366 = vmatprep.mubr.bf16.mxu0 %v5060_v0  ;;  %723 = vmatprep.mubr.bf16.mxu1 %v5060_v0 }
  0x77   :  { %3480 = vmatmul.mubr.msk.bf16.gmra.mrb[36].mxu0 %vm195_vm0, %v4234_v38  ;;  %3500 = vmatmul.mubr.msk.bf16.gmra.mrb[36].mxu1 %vm195_vm0, %v4234_v38 }
  0x78   :  { %376 = vmatprep.mubr.bf16.mxu0 %v5060_v0  ;;  %733 = vmatprep.mubr.bf16.mxu1 %v5060_v0 }
  0x7f   :  { %3481 = vmatmul.mubr.msk.bf16.gmra.mrb[40].mxu0 %vm195_vm0, %v4235_v39  ;;  %3501 = vmatmul.mubr.msk.bf16.gmra.mrb[40].mxu1 %vm195_vm0, %v4235_v39 }
  0x80   :  { %386 = vmatprep.mubr.bf16.mxu0 %v5060_v0  ;;  %743 = vmatprep.mubr.bf16.mxu1 %v5060_v0 }
  0x87   :  { %3482 = vmatmul.mubr.msk.bf16.gmra.mrb[44].mxu0 %vm195_vm0, %v4236_v41  ;;  %3502 = vmatmul.mubr.msk.bf16.gmra.mrb[44].mxu1 %vm195_vm0, %v4236_v41 }
  0x88   :  { %396 = vmatprep.mubr.bf16.mxu0 %v5060_v0  ;;  %753 = vmatprep.mubr.bf16.mxu1 %v5060_v0 }
  0x8f   :  { %3483 = vmatmul.mubr.msk.bf16.gmra.mrb[48].mxu0 %vm195_vm0, %v4237_v45  ;;  %3503 = vmatmul.mubr.msk.bf16.gmra.mrb[48].mxu1 %vm195_vm0, %v4237_v45 }
  0x90   :  { %406 = vmatprep.mubr.bf16.mxu0 %v5060_v0  ;;  %763 = vmatprep.mubr.bf16.mxu1 %v5060_v0 }
  0x97   :  { %3484 = vmatmul.mubr.msk.bf16.gmra.mrb[52].mxu0 %vm195_vm0, %v4240_v52  ;;  %3504 = vmatmul.mubr.msk.bf16.gmra.mrb[52].mxu1 %vm195_vm0, %v4240_v52 }
  0x98   :  { %416 = vmatprep.mubr.bf16.mxu0 %v5060_v0  ;;  %773 = vmatprep.mubr.bf16.mxu1 %v5060_v0 }
  0x9f   :  { %3485 = vmatmul.mubr.msk.bf16.gmra.mrb[56].mxu0 %vm195_vm0, %v4241_v55  ;;  %3505 = vmatmul.mubr.msk.bf16.gmra.mrb[56].mxu1 %vm195_vm0, %v4241_v55 }
  0xa0   :  { %426 = vmatprep.mubr.bf16.mxu0 %v5060_v0  ;;  %783 = vmatprep.mubr.bf16.mxu1 %v5060_v0 }
  0xa7   :  { %3486 = vmatmul.mubr.msk.bf16.gmra.mrb[60].mxu0 %vm195_vm0, %v4244_v57  ;;  %3506 = vmatmul.mubr.msk.bf16.gmra.mrb[60].mxu1 %vm195_vm0, %v4244_v57 }
 0x102   :  { %v278_v5 = vpop.f32.mrb[0].mxu0  ;;  %v635_v6 = vpop.f32.mrb[0].mxu1 }
 0x103   :  { %v279_v7 = vadd.f32 %v278_v5, %v5266_v1  ;;  %v636_v8 = vadd.f32 %v635_v6, %v5269_v2  ;;  %v280_v9 = vpop.f32.mrb[1].mxu0  ;;  %v637_v10 = vpop.f32.mrb[1].mxu1 }
 0x104   :  { %v281_v11 = vadd.f32 %v280_v9, %v5272_v3  ;;  %v638_v12 = vadd.f32 %v637_v10, %v5275_v4  ;;  %v282_v13 = vpop.f32.mrb[2].mxu0  ;;  %v639_v14 = vpop.f32.mrb[2].mxu1 }
 0x105   :  { %4339 = vtanh.f32 %v279_v7  ;;  %v283_v15 = vadd.f32 %v282_v13, %v5266_v1  ;;  %v284_v16 = vpop.f32.mrb[3].mxu0  ;;  %v641_v17 = vpop.f32.mrb[3].mxu1  ;;  %v640_v18 = vadd.f32 %v639_v14, %v5269_v2 }
 0x106   :  { %4341 = vtanh.f32 %v636_v8  ;;  %v285_v19 = vadd.f32 %v284_v16, %v5272_v3  ;;  %v642_v20 = vadd.f32 %v641_v17, %v5275_v4  ;;  %v4273_v8 = vld [vmem:[%s6320_s1 + $0x10] ss:$40 sps:$4 sm:$0xff]  }
 0x107   :  { %4343 = vtanh.f32 %v281_v11  ;;  %v4278_v11 = vld [vmem:[%s6320_s1 + $0x64] ss:$40 sps:$4 sm:$0xff]  }
 0x108   :  { %4345 = vtanh.f32 %v638_v12 }
 0x109   :  { %4347 = vtanh.f32 %v283_v15 }
 0x10a   :  { %4349 = vtanh.f32 %v640_v18  ;;  %v288_v21 = vpop.f32.mrb[4].mxu0  ;;  %v645_v22 = vpop.f32.mrb[4].mxu1 }
 0x10b   :  { %4351 = vtanh.f32 %v285_v19  ;;  %v289_v23 = vadd.f32 %v288_v21, %v5266_v1  ;;  %v646_v24 = vadd.f32 %v645_v22, %v5269_v2  ;;  %v290_v25 = vpop.f32.mrb[5].mxu0  ;;  %v647_v26 = vpop.f32.mrb[5].mxu1  ;;  %v4276_v21 = vld [vmem:[%s6320_s1 + $0x60] ss:$40 sps:$4 sm:$0xff]  }
 0x10c   :  { %4353 = vtanh.f32 %v642_v20  ;;  %v291_v27 = vadd.f32 %v290_v25, %v5272_v3  ;;  %v648_v28 = vadd.f32 %v647_v26, %v5275_v4  ;;  %v292_v29 = vpop.f32.mrb[6].mxu0  ;;  %v649_v30 = vpop.f32.mrb[6].mxu1 }
 0x10d   :  { %4355 = vtanh.f32 %v289_v23  ;;  %v293_v31 = vadd.f32 %v292_v29, %v5266_v1  ;;  %v294_v32 = vpop.f32.mrb[7].mxu0  ;;  %v651_v33 = vpop.f32.mrb[7].mxu1  ;;  %v650_v34 = vadd.f32 %v649_v30, %v5269_v2 }
 0x10e   :  { %4357 = vtanh.f32 %v646_v24  ;;  %v295_v36 = vadd.f32 %v294_v32, %v5272_v3  ;;  %v652_v38 = vadd.f32 %v651_v33, %v5275_v4 }
 0x10f   :  { %v4340_v35 = vpop.eup %4339  ;;  %4359 = vtanh.f32 %v291_v27 }
 0x110   :  { %v4342_v37 = vpop.eup %4341  ;;  %4361 = vtanh.f32 %v648_v28  ;;  %v4281_v28 = vld [vmem:[%s6320_s1 + $0x1c] ss:$40 sps:$4 sm:$0xff]  }
 0x111   :  { %v4344_v39 = vpop.eup %4343  ;;  %4363 = vtanh.f32 %v293_v31 }
 0x112   :  { %v4346_v40 = vpop.eup %4345  ;;  %4365 = vtanh.f32 %v650_v34  ;;  %v298_v41 = vpop.f32.mrb[8].mxu0 }
 0x113   :  { %v655_v42 = vpop.f32.mrb[8].mxu1  ;;  %v4348_v43 = vpop.eup %4347  ;;  %4367 = vtanh.f32 %v295_v36  ;;  %v299_v44 = vadd.f32 %v298_v41, %v5266_v1 }
 0x114   :  { %v656_v45 = vadd.f32 %v655_v42, %v5269_v2  ;;  %v300_v46 = vpop.f32.mrb[9].mxu0  ;;  %v657_v47 = vpop.f32.mrb[9].mxu1  ;;  %4369 = vtanh.f32 %v652_v38  ;;  %v501_v53 = vpack.c.bf16 %v4348_v43, %v4340_v35 }
 0x115   :  { %v4350_v48 = vpop.eup %4349  ;;  %v301_v49 = vadd.f32 %v300_v46, %v5272_v3  ;;  %v658_v50 = vadd.f32 %v657_v47, %v5275_v4  ;;  %v302_v51 = vpop.f32.mrb[10].mxu0  ;;  %4371 = vtanh.f32 %v299_v44 }
 0x116   :  { %v659_v52 = vpop.f32.mrb[10].mxu1  ;;  %v4352_v54 = vpop.eup %4351  ;;  %v303_v55 = vadd.f32 %v302_v51, %v5266_v1  ;;  %v858_v58 = vpack.c.bf16 %v4350_v48, %v4342_v37  ;;  %4373 = vtanh.f32 %v656_v45 }
 0x117   :  { %v304_v56 = vpop.f32.mrb[11].mxu0  ;;  %v661_v57 = vpop.f32.mrb[11].mxu1  ;;  %v660_v61 = vadd.f32 %v659_v52, %v5269_v2  ;;  %v502_v62 = vpack.c.bf16 %v4352_v54, %v4344_v39  ;;  %4375 = vtanh.f32 %v301_v49 }
 0x118   :  { %v4354_v59 = vpop.eup %4353  ;;  %v305_v6 = vadd.f32 %v304_v56, %v5272_v3  ;;  %4377 = vtanh.f32 %v658_v50  ;;  %v662_v10 = vadd.f32 %v661_v57, %v5275_v4 }
 0x119   :  { %v4356_v5 = vpop.eup %4355  ;;  %v859_v7 = vpack.c.bf16 %v4354_v59, %v4346_v40  ;;  %1307 = vmatprep.mubr.bf16.mxu1 %v502_v62  ;;  %4379 = vtanh.f32 %v303_v55 }
 0x11a   :  { %v4358_v9 = vpop.eup %4357  ;;  %1308 = vmatmul.mubr.bf16.vlgmr.msra.gmra.mrb[64].mxu1 %v501_v53  ;;  %4381 = vtanh.f32 %v660_v61  ;;  %v308_v14 = vpop.f32.mrb[12].mxu0 }
 0x11b   :  { %v4360_v12 = vpop.eup %4359  ;;  %1050 = vmatprep.mubr.bf16.mxu0 %v859_v7  ;;  %v665_v15 = vpop.f32.mrb[12].mxu1  ;;  %4383 = vtanh.f32 %v305_v6  ;;  %v309_v17 = vadd.f32 %v308_v14, %v5266_v1 }
 0x11c   :  { %v4362_v13 = vpop.eup %4361  ;;  %1051 = vmatmul.mubr.bf16.vlgmr.msra.gmra.mrb[64].mxu0 %v858_v58  ;;  %v666_v18 = vadd.f32 %v665_v15, %v5269_v2  ;;  %v310_v19 = vpop.f32.mrb[13].mxu0  ;;  %4385 = vtanh.f32 %v662_v10 }
 0x11d   :  { %v4364_v16 = vpop.eup %4363  ;;  %1473 = vmatpush1.bf16.msra.mxu0 %v4273_v8  ;;  %v667_v20 = vpop.f32.mrb[13].mxu1  ;;  %v311_v23 = vadd.f32 %v310_v19, %v5272_v3  ;;  %4387 = vtanh.f32 %v309_v17 }
 0x11e   :  { %v4366_v22 = vpop.eup %4365  ;;  %v668_v24 = vadd.f32 %v667_v20, %v5275_v4  ;;  %v312_v25 = vpop.f32.mrb[14].mxu0  ;;  %v503_v27 = vpack.c.bf16 %v4364_v16, %v4356_v5  ;;  %1474 = vmatprep.subr.bf16.mxu0 %v4278_v11  ;;  %4389 = vtanh.f32 %v666_v18 }
 0x11f   :  { %v669_v26 = vpop.f32.mrb[14].mxu1  ;;  %v4368_v29 = vpop.eup %4367  ;;  %v313_v30 = vadd.f32 %v312_v25, %v5266_v1  ;;  %v860_v33 = vpack.c.bf16 %v4366_v22, %v4358_v9  ;;  %4391 = vtanh.f32 %v311_v23 }
 0x120   :  { %v314_v31 = vpop.f32.mrb[15].mxu0  ;;  %v671_v32 = vpop.f32.mrb[15].mxu1  ;;  %v670_v35 = vadd.f32 %v669_v26, %v5269_v2  ;;  %v504_v36 = vpack.c.bf16 %v4368_v29, %v4360_v12  ;;  %4393 = vtanh.f32 %v668_v24 }
 0x121   :  { %v4370_v34 = vpop.eup %4369  ;;  %v315_v38 = vadd.f32 %v314_v31, %v5272_v3  ;;  %1475 = vmatpush1.bf16.msra.mxu0 %v4276_v21  ;;  %v672_v41 = vadd.f32 %v671_v32, %v5275_v4  ;;  %4395 = vtanh.f32 %v313_v30 }
 0x122   :  { %v4372_v37 = vpop.eup %4371  ;;  %v861_v39 = vpack.c.bf16 %v4370_v34, %v4362_v13  ;;  %1315 = vmatprep.mubr.bf16.mxu1 %v504_v36  ;;  %2118 = vmatprep.subr.bf16.mxu0 %v4281_v28  ;;  %4397 = vtanh.f32 %v670_v35  ;;  %v318_v44 = vpop.f32.mrb[16].mxu0 }
 0x123   :  { %v4374_v40 = vpop.eup %4373  ;;  %1316 = vmatmul.mubr.bf16.gmra.mrb[68].mxu1 %v503_v27  ;;  %v675_v45 = vpop.f32.mrb[16].mxu1  ;;  %4399 = vtanh.f32 %v315_v38  ;;  %v319_v47 = vadd.f32 %v318_v44, %v5266_v1 }
 0x124   :  { %v4376_v42 = vpop.eup %4375  ;;  %1058 = vmatprep.mubr.bf16.mxu0 %v861_v39  ;;  %v676_v48 = vadd.f32 %v675_v45, %v5269_v2  ;;  %v320_v49 = vpop.f32.mrb[17].mxu0  ;;  %4401 = vtanh.f32 %v672_v41 }
 0x125   :  { %v4378_v43 = vpop.eup %4377  ;;  %1059 = vmatmul.mubr.bf16.gmra.mrb[68].mxu0 %v860_v33  ;;  %v677_v50 = vpop.f32.mrb[17].mxu1  ;;  %v321_v52 = vadd.f32 %v320_v49, %v5272_v3  ;;  %4403 = vtanh.f32 %v319_v47 }
 0x126   :  { %v4380_v46 = vpop.eup %4379  ;;  %v678_v53 = vadd.f32 %v677_v50, %v5275_v4  ;;  %v322_v54 = vpop.f32.mrb[18].mxu0  ;;  %4405 = vtanh.f32 %v676_v48 }
 0x127   :  { %v4382_v51 = vpop.eup %4381  ;;  %v679_v55 = vpop.f32.mrb[18].mxu1  ;;  %v505_v56 = vpack.c.bf16 %v4380_v46, %v4372_v37  ;;  %v323_v58 = vadd.f32 %v322_v54, %v5266_v1  ;;  %4407 = vtanh.f32 %v321_v52 }
 0x128   :  { %v4384_v57 = vpop.eup %4383  ;;  %v324_v59 = vpop.f32.mrb[19].mxu0  ;;  %v862_v62 = vpack.c.bf16 %v4382_v51, %v4374_v40  ;;  %v680_v6 = vadd.f32 %v679_v55, %v5269_v2  ;;  %4409 = vtanh.f32 %v678_v53 }
 0x129   :  { %v681_v61 = vpop.f32.mrb[19].mxu1  ;;  %v4386_v5 = vpop.eup %4385  ;;  %v506_v7 = vpack.c.bf16 %v4384_v57, %v4376_v42  ;;  %v325_v9 = vadd.f32 %v324_v59, %v5272_v3  ;;  %4411 = vtanh.f32 %v323_v58 }
 0x12a   :  { %v4388_v8 = vpop.eup %4387  ;;  %v863_v10 = vpack.c.bf16 %v4386_v5, %v4378_v43  ;;  %v682_v12 = vadd.f32 %v681_v61, %v5275_v4  ;;  %4413 = vtanh.f32 %v680_v6  ;;  %v328_v15 = vpop.f32.mrb[20].mxu0 }
 0x12b   :  { %v4390_v11 = vpop.eup %4389  ;;  %1323 = vmatprep.mubr.bf16.mxu1 %v506_v7  ;;  %v685_v16 = vpop.f32.mrb[20].mxu1  ;;  %4415 = vtanh.f32 %v325_v9  ;;  %v329_v18 = vadd.f32 %v328_v15, %v5266_v1 }
 0x12c   :  { %v4392_v13 = vpop.eup %4391  ;;  %1066 = vmatprep.mubr.bf16.mxu0 %v863_v10  ;;  %1324 = vmatmul.mubr.bf16.gmra.mrb[72].mxu1 %v505_v56  ;;  %v686_v19 = vadd.f32 %v685_v16, %v5269_v2  ;;  %v330_v20 = vpop.f32.mrb[21].mxu0  ;;  %4417 = vtanh.f32 %v682_v12 }
 0x12d   :  { %v4394_v14 = vpop.eup %4393  ;;  %1067 = vmatmul.mubr.bf16.gmra.mrb[72].mxu0 %v862_v62  ;;  %v687_v21 = vpop.f32.mrb[21].mxu1  ;;  %v331_v23 = vadd.f32 %v330_v20, %v5272_v3  ;;  %4419 = vtanh.f32 %v329_v18 }
 0x12e   :  { %v4396_v17 = vpop.eup %4395  ;;  %v688_v24 = vadd.f32 %v687_v21, %v5275_v4  ;;  %v332_v25 = vpop.f32.mrb[22].mxu0  ;;  %4421 = vtanh.f32 %v686_v19 }
 0x12f   :  { %v4398_v22 = vpop.eup %4397  ;;  %v689_v26 = vpop.f32.mrb[22].mxu1  ;;  %v507_v27 = vpack.c.bf16 %v4396_v17, %v4388_v8  ;;  %v333_v29 = vadd.f32 %v332_v25, %v5266_v1  ;;  %4423 = vtanh.f32 %v331_v23 }
 0x130   :  { %v4400_v28 = vpop.eup %4399  ;;  %v334_v30 = vpop.f32.mrb[23].mxu0  ;;  %v864_v32 = vpack.c.bf16 %v4398_v22, %v4390_v11  ;;  %v690_v34 = vadd.f32 %v689_v26, %v5269_v2  ;;  %4425 = vtanh.f32 %v688_v24 }
 0x131   :  { %v691_v31 = vpop.f32.mrb[23].mxu1  ;;  %v4402_v33 = vpop.eup %4401  ;;  %v508_v35 = vpack.c.bf16 %v4400_v28, %v4392_v13  ;;  %v335_v37 = vadd.f32 %v334_v30, %v5272_v3  ;;  %4427 = vtanh.f32 %v333_v29 }
 0x132   :  { %v4404_v36 = vpop.eup %4403  ;;  %v865_v38 = vpack.c.bf16 %v4402_v33, %v4394_v14  ;;  %v692_v40 = vadd.f32 %v691_v31, %v5275_v4  ;;  %4429 = vtanh.f32 %v690_v34  ;;  %v338_v43 = vpop.f32.mrb[24].mxu0 }
 0x133   :  { %v4406_v39 = vpop.eup %4405  ;;  %1331 = vmatprep.mubr.bf16.mxu1 %v508_v35  ;;  %v695_v44 = vpop.f32.mrb[24].mxu1  ;;  %4431 = vtanh.f32 %v335_v37  ;;  %v339_v46 = vadd.f32 %v338_v43, %v5266_v1 }
 0x134   :  { %v4408_v41 = vpop.eup %4407  ;;  %1074 = vmatprep.mubr.bf16.mxu0 %v865_v38  ;;  %1332 = vmatmul.mubr.bf16.gmra.mrb[76].mxu1 %v507_v27  ;;  %v696_v47 = vadd.f32 %v695_v44, %v5269_v2  ;;  %v340_v48 = vpop.f32.mrb[25].mxu0  ;;  %4433 = vtanh.f32 %v692_v40 }
 0x135   :  { %v4410_v42 = vpop.eup %4409  ;;  %1075 = vmatmul.mubr.bf16.gmra.mrb[76].mxu0 %v864_v32  ;;  %v697_v49 = vpop.f32.mrb[25].mxu1  ;;  %v341_v51 = vadd.f32 %v340_v48, %v5272_v3  ;;  %4435 = vtanh.f32 %v339_v46 }
 0x136   :  { %v4412_v45 = vpop.eup %4411  ;;  %v698_v52 = vadd.f32 %v697_v49, %v5275_v4  ;;  %v342_v53 = vpop.f32.mrb[26].mxu0  ;;  %4437 = vtanh.f32 %v696_v47 }
 0x137   :  { %v4414_v50 = vpop.eup %4413  ;;  %v699_v54 = vpop.f32.mrb[26].mxu1  ;;  %v509_v55 = vpack.c.bf16 %v4412_v45, %v4404_v36  ;;  %v343_v57 = vadd.f32 %v342_v53, %v5266_v1  ;;  %4439 = vtanh.f32 %v341_v51 }
 0x138   :  { %v4416_v56 = vpop.eup %4415  ;;  %v344_v58 = vpop.f32.mrb[27].mxu0  ;;  %v866_v61 = vpack.c.bf16 %v4414_v50, %v4406_v39  ;;  %v700_v5 = vadd.f32 %v699_v54, %v5269_v2  ;;  %4441 = vtanh.f32 %v698_v52 }
 0x139   :  { %v701_v59 = vpop.f32.mrb[27].mxu1  ;;  %v4418_v62 = vpop.eup %4417  ;;  %v510_v6 = vpack.c.bf16 %v4416_v56, %v4408_v41  ;;  %v345_v8 = vadd.f32 %v344_v58, %v5272_v3  ;;  %4443 = vtanh.f32 %v343_v57 }
 0x13a   :  { %v4420_v7 = vpop.eup %4419  ;;  %v867_v9 = vpack.c.bf16 %v4418_v62, %v4410_v42  ;;  %v702_v11 = vadd.f32 %v701_v59, %v5275_v4  ;;  %4445 = vtanh.f32 %v700_v5  ;;  %v348_v14 = vpop.f32.mrb[28].mxu0 }
 0x13b   :  { %v4422_v10 = vpop.eup %4421  ;;  %1339 = vmatprep.mubr.bf16.mxu1 %v510_v6  ;;  %v705_v15 = vpop.f32.mrb[28].mxu1  ;;  %4447 = vtanh.f32 %v345_v8  ;;  %v349_v17 = vadd.f32 %v348_v14, %v5266_v1 }
 0x13c   :  { %v4424_v12 = vpop.eup %4423  ;;  %1082 = vmatprep.mubr.bf16.mxu0 %v867_v9  ;;  %1340 = vmatmul.mubr.bf16.gmra.mrb[80].mxu1 %v509_v55  ;;  %v706_v18 = vadd.f32 %v705_v15, %v5269_v2  ;;  %v350_v19 = vpop.f32.mrb[29].mxu0  ;;  %4449 = vtanh.f32 %v702_v11 }
 0x13d   :  { %v4426_v13 = vpop.eup %4425  ;;  %1083 = vmatmul.mubr.bf16.gmra.mrb[80].mxu0 %v866_v61  ;;  %v707_v20 = vpop.f32.mrb[29].mxu1  ;;  %v351_v22 = vadd.f32 %v350_v19, %v5272_v3  ;;  %4451 = vtanh.f32 %v349_v17 }
 0x13e   :  { %v4428_v16 = vpop.eup %4427  ;;  %v708_v23 = vadd.f32 %v707_v20, %v5275_v4  ;;  %v352_v24 = vpop.f32.mrb[30].mxu0  ;;  %4453 = vtanh.f32 %v706_v18 }
 0x13f   :  { %v4430_v21 = vpop.eup %4429  ;;  %v709_v25 = vpop.f32.mrb[30].mxu1  ;;  %v511_v26 = vpack.c.bf16 %v4428_v16, %v4420_v7  ;;  %v353_v28 = vadd.f32 %v352_v24, %v5266_v1  ;;  %4455 = vtanh.f32 %v351_v22 }
 0x140   :  { %v4432_v27 = vpop.eup %4431  ;;  %v354_v29 = vpop.f32.mrb[31].mxu0  ;;  %v868_v31 = vpack.c.bf16 %v4430_v21, %v4422_v10  ;;  %v710_v33 = vadd.f32 %v709_v25, %v5269_v2  ;;  %4457 = vtanh.f32 %v708_v23 }
 0x141   :  { %v711_v30 = vpop.f32.mrb[31].mxu1  ;;  %v4434_v32 = vpop.eup %4433  ;;  %v512_v34 = vpack.c.bf16 %v4432_v27, %v4424_v12  ;;  %v355_v36 = vadd.f32 %v354_v29, %v5272_v3  ;;  %4459 = vtanh.f32 %v353_v28 }
 0x142   :  { %v4436_v35 = vpop.eup %4435  ;;  %v869_v37 = vpack.c.bf16 %v4434_v32, %v4426_v13  ;;  %v712_v39 = vadd.f32 %v711_v30, %v5275_v4  ;;  %4461 = vtanh.f32 %v710_v33  ;;  %v358_v42 = vpop.f32.mrb[32].mxu0 }
 0x143   :  { %v4438_v38 = vpop.eup %4437  ;;  %1347 = vmatprep.mubr.bf16.mxu1 %v512_v34  ;;  %v715_v43 = vpop.f32.mrb[32].mxu1  ;;  %4463 = vtanh.f32 %v355_v36  ;;  %v359_v45 = vadd.f32 %v358_v42, %v5266_v1 }
 0x144   :  { %v4440_v40 = vpop.eup %4439  ;;  %1090 = vmatprep.mubr.bf16.mxu0 %v869_v37  ;;  %1348 = vmatmul.mubr.bf16.gmra.mrb[84].mxu1 %v511_v26  ;;  %v716_v46 = vadd.f32 %v715_v43, %v5269_v2  ;;  %v360_v47 = vpop.f32.mrb[33].mxu0  ;;  %4465 = vtanh.f32 %v712_v39 }
 0x145   :  { %v4442_v41 = vpop.eup %4441  ;;  %1091 = vmatmul.mubr.bf16.gmra.mrb[84].mxu0 %v868_v31  ;;  %v717_v48 = vpop.f32.mrb[33].mxu1  ;;  %v361_v50 = vadd.f32 %v360_v47, %v5272_v3  ;;  %4467 = vtanh.f32 %v359_v45 }
 0x146   :  { %v4444_v44 = vpop.eup %4443  ;;  %v718_v51 = vadd.f32 %v717_v48, %v5275_v4  ;;  %v362_v52 = vpop.f32.mrb[34].mxu0  ;;  %4469 = vtanh.f32 %v716_v46 }
 0x147   :  { %v4446_v49 = vpop.eup %4445  ;;  %v719_v53 = vpop.f32.mrb[34].mxu1  ;;  %v513_v54 = vpack.c.bf16 %v4444_v44, %v4436_v35  ;;  %v363_v56 = vadd.f32 %v362_v52, %v5266_v1  ;;  %4471 = vtanh.f32 %v361_v50 }
 0x148   :  { %v4448_v55 = vpop.eup %4447  ;;  %v364_v57 = vpop.f32.mrb[35].mxu0  ;;  %v870_v59 = vpack.c.bf16 %v4446_v49, %v4438_v38  ;;  %v720_v62 = vadd.f32 %v719_v53, %v5269_v2  ;;  %4473 = vtanh.f32 %v718_v51 }
 0x149   :  { %v721_v58 = vpop.f32.mrb[35].mxu1  ;;  %v4450_v61 = vpop.eup %4449  ;;  %v514_v5 = vpack.c.bf16 %v4448_v55, %v4440_v40  ;;  %v365_v7 = vadd.f32 %v364_v57, %v5272_v3  ;;  %4475 = vtanh.f32 %v363_v56 }
 0x14a   :  { %v4452_v6 = vpop.eup %4451  ;;  %v871_v8 = vpack.c.bf16 %v4450_v61, %v4442_v41  ;;  %v722_v10 = vadd.f32 %v721_v58, %v5275_v4  ;;  %4477 = vtanh.f32 %v720_v62  ;;  %v368_v13 = vpop.f32.mrb[36].mxu0 }
 0x14b   :  { %v4454_v9 = vpop.eup %4453  ;;  %1355 = vmatprep.mubr.bf16.mxu1 %v514_v5  ;;  %v725_v14 = vpop.f32.mrb[36].mxu1  ;;  %4479 = vtanh.f32 %v365_v7  ;;  %v369_v16 = vadd.f32 %v368_v13, %v5266_v1 }
 0x14c   :  { %v4456_v11 = vpop.eup %4455  ;;  %1098 = vmatprep.mubr.bf16.mxu0 %v871_v8  ;;  %1356 = vmatmul.mubr.bf16.gmra.mrb[88].mxu1 %v513_v54  ;;  %v726_v17 = vadd.f32 %v725_v14, %v5269_v2  ;;  %v370_v18 = vpop.f32.mrb[37].mxu0  ;;  %4481 = vtanh.f32 %v722_v10 }
 0x14d   :  { %v4458_v12 = vpop.eup %4457  ;;  %1099 = vmatmul.mubr.bf16.gmra.mrb[88].mxu0 %v870_v59  ;;  %v727_v19 = vpop.f32.mrb[37].mxu1  ;;  %v371_v21 = vadd.f32 %v370_v18, %v5272_v3  ;;  %4483 = vtanh.f32 %v369_v16 }
 0x14e   :  { %v4460_v15 = vpop.eup %4459  ;;  %v728_v22 = vadd.f32 %v727_v19, %v5275_v4  ;;  %v372_v23 = vpop.f32.mrb[38].mxu0  ;;  %4485 = vtanh.f32 %v726_v17 }
 0x14f   :  { %v4462_v20 = vpop.eup %4461  ;;  %v729_v24 = vpop.f32.mrb[38].mxu1  ;;  %v515_v25 = vpack.c.bf16 %v4460_v15, %v4452_v6  ;;  %v373_v27 = vadd.f32 %v372_v23, %v5266_v1  ;;  %4487 = vtanh.f32 %v371_v21 }
 0x150   :  { %v4464_v26 = vpop.eup %4463  ;;  %v374_v28 = vpop.f32.mrb[39].mxu0  ;;  %v872_v30 = vpack.c.bf16 %v4462_v20, %v4454_v9  ;;  %v730_v32 = vadd.f32 %v729_v24, %v5269_v2  ;;  %4489 = vtanh.f32 %v728_v22 }
 0x151   :  { %v731_v29 = vpop.f32.mrb[39].mxu1  ;;  %v4466_v31 = vpop.eup %4465  ;;  %v516_v33 = vpack.c.bf16 %v4464_v26, %v4456_v11  ;;  %v375_v35 = vadd.f32 %v374_v28, %v5272_v3  ;;  %4491 = vtanh.f32 %v373_v27 }
 0x152   :  { %v4468_v34 = vpop.eup %4467  ;;  %v873_v36 = vpack.c.bf16 %v4466_v31, %v4458_v12  ;;  %v732_v38 = vadd.f32 %v731_v29, %v5275_v4  ;;  %4493 = vtanh.f32 %v730_v32  ;;  %v378_v41 = vpop.f32.mrb[40].mxu0 }
 0x153   :  { %v4470_v37 = vpop.eup %4469  ;;  %1363 = vmatprep.mubr.bf16.mxu1 %v516_v33  ;;  %v735_v42 = vpop.f32.mrb[40].mxu1  ;;  %4495 = vtanh.f32 %v375_v35  ;;  %v379_v44 = vadd.f32 %v378_v41, %v5266_v1 }
 0x154   :  { %v4472_v39 = vpop.eup %4471  ;;  %1106 = vmatprep.mubr.bf16.mxu0 %v873_v36  ;;  %1364 = vmatmul.mubr.bf16.gmra.mrb[92].mxu1 %v515_v25  ;;  %v736_v45 = vadd.f32 %v735_v42, %v5269_v2  ;;  %v380_v46 = vpop.f32.mrb[41].mxu0  ;;  %4497 = vtanh.f32 %v732_v38 }
 0x155   :  { %v4474_v40 = vpop.eup %4473  ;;  %1107 = vmatmul.mubr.bf16.gmra.mrb[92].mxu0 %v872_v30  ;;  %v737_v47 = vpop.f32.mrb[41].mxu1  ;;  %v381_v49 = vadd.f32 %v380_v46, %v5272_v3  ;;  %4499 = vtanh.f32 %v379_v44 }
 0x156   :  { %v4476_v43 = vpop.eup %4475  ;;  %v738_v50 = vadd.f32 %v737_v47, %v5275_v4  ;;  %v382_v51 = vpop.f32.mrb[42].mxu0  ;;  %4501 = vtanh.f32 %v736_v45 }
 0x157   :  { %v4478_v48 = vpop.eup %4477  ;;  %v739_v52 = vpop.f32.mrb[42].mxu1  ;;  %v517_v53 = vpack.c.bf16 %v4476_v43, %v4468_v34  ;;  %v383_v55 = vadd.f32 %v382_v51, %v5266_v1  ;;  %4503 = vtanh.f32 %v381_v49 }
 0x158   :  { %v4480_v54 = vpop.eup %4479  ;;  %v384_v56 = vpop.f32.mrb[43].mxu0  ;;  %v874_v58 = vpack.c.bf16 %v4478_v48, %v4470_v37  ;;  %v740_v61 = vadd.f32 %v739_v52, %v5269_v2  ;;  %4505 = vtanh.f32 %v738_v50 }
 0x159   :  { %v741_v57 = vpop.f32.mrb[43].mxu1  ;;  %v4482_v59 = vpop.eup %4481  ;;  %v518_v62 = vpack.c.bf16 %v4480_v54, %v4472_v39  ;;  %v385_v6 = vadd.f32 %v384_v56, %v5272_v3  ;;  %4507 = vtanh.f32 %v383_v55 }
 0x15a   :  { %v4484_v5 = vpop.eup %4483  ;;  %v875_v7 = vpack.c.bf16 %v4482_v59, %v4474_v40  ;;  %v742_v9 = vadd.f32 %v741_v57, %v5275_v4  ;;  %4509 = vtanh.f32 %v740_v61  ;;  %v388_v12 = vpop.f32.mrb[44].mxu0 }
 0x15b   :  { %v4486_v8 = vpop.eup %4485  ;;  %1371 = vmatprep.mubr.bf16.mxu1 %v518_v62  ;;  %v745_v13 = vpop.f32.mrb[44].mxu1  ;;  %4511 = vtanh.f32 %v385_v6  ;;  %v389_v15 = vadd.f32 %v388_v12, %v5266_v1 }
 0x15c   :  { %v4488_v10 = vpop.eup %4487  ;;  %1114 = vmatprep.mubr.bf16.mxu0 %v875_v7  ;;  %1372 = vmatmul.mubr.bf16.gmra.mrb[96].mxu1 %v517_v53  ;;  %v746_v16 = vadd.f32 %v745_v13, %v5269_v2  ;;  %v390_v17 = vpop.f32.mrb[45].mxu0  ;;  %4513 = vtanh.f32 %v742_v9 }
 0x15d   :  { %v4490_v11 = vpop.eup %4489  ;;  %1115 = vmatmul.mubr.bf16.gmra.mrb[96].mxu0 %v874_v58  ;;  %v747_v18 = vpop.f32.mrb[45].mxu1  ;;  %v391_v20 = vadd.f32 %v390_v17, %v5272_v3  ;;  %4515 = vtanh.f32 %v389_v15 }
 0x15e   :  { %v4492_v14 = vpop.eup %4491  ;;  %v748_v21 = vadd.f32 %v747_v18, %v5275_v4  ;;  %v392_v22 = vpop.f32.mrb[46].mxu0  ;;  %4517 = vtanh.f32 %v746_v16 }
 0x15f   :  { %v4494_v19 = vpop.eup %4493  ;;  %v749_v23 = vpop.f32.mrb[46].mxu1  ;;  %v519_v24 = vpack.c.bf16 %v4492_v14, %v4484_v5  ;;  %v393_v26 = vadd.f32 %v392_v22, %v5266_v1  ;;  %4519 = vtanh.f32 %v391_v20 }
 0x160   :  { %v4496_v25 = vpop.eup %4495  ;;  %v394_v27 = vpop.f32.mrb[47].mxu0  ;;  %v876_v29 = vpack.c.bf16 %v4494_v19, %v4486_v8  ;;  %v750_v31 = vadd.f32 %v749_v23, %v5269_v2  ;;  %4521 = vtanh.f32 %v748_v21 }
 0x161   :  { %v751_v28 = vpop.f32.mrb[47].mxu1  ;;  %v4498_v30 = vpop.eup %4497  ;;  %v520_v32 = vpack.c.bf16 %v4496_v25, %v4488_v10  ;;  %v395_v34 = vadd.f32 %v394_v27, %v5272_v3  ;;  %4523 = vtanh.f32 %v393_v26 }
 0x162   :  { %v4500_v33 = vpop.eup %4499  ;;  %v877_v35 = vpack.c.bf16 %v4498_v30, %v4490_v11  ;;  %v752_v37 = vadd.f32 %v751_v28, %v5275_v4  ;;  %4525 = vtanh.f32 %v750_v31  ;;  %v398_v40 = vpop.f32.mrb[48].mxu0 }
 0x163   :  { %v4502_v36 = vpop.eup %4501  ;;  %1379 = vmatprep.mubr.bf16.mxu1 %v520_v32  ;;  %v755_v41 = vpop.f32.mrb[48].mxu1  ;;  %4527 = vtanh.f32 %v395_v34  ;;  %v399_v43 = vadd.f32 %v398_v40, %v5266_v1 }
 0x164   :  { %v4504_v38 = vpop.eup %4503  ;;  %1122 = vmatprep.mubr.bf16.mxu0 %v877_v35  ;;  %1380 = vmatmul.mubr.bf16.gmra.mrb[100].mxu1 %v519_v24  ;;  %v756_v44 = vadd.f32 %v755_v41, %v5269_v2  ;;  %v400_v45 = vpop.f32.mrb[49].mxu0  ;;  %4529 = vtanh.f32 %v752_v37 }
 0x165   :  { %v4506_v39 = vpop.eup %4505  ;;  %1123 = vmatmul.mubr.bf16.gmra.mrb[100].mxu0 %v876_v29  ;;  %v757_v46 = vpop.f32.mrb[49].mxu1  ;;  %v401_v48 = vadd.f32 %v400_v45, %v5272_v3  ;;  %4531 = vtanh.f32 %v399_v43 }
 0x166   :  { %v4508_v42 = vpop.eup %4507  ;;  %v758_v49 = vadd.f32 %v757_v46, %v5275_v4  ;;  %v402_v50 = vpop.f32.mrb[50].mxu0  ;;  %4533 = vtanh.f32 %v756_v44 }
 0x167   :  { %v4510_v47 = vpop.eup %4509  ;;  %v759_v51 = vpop.f32.mrb[50].mxu1  ;;  %v521_v52 = vpack.c.bf16 %v4508_v42, %v4500_v33  ;;  %v403_v54 = vadd.f32 %v402_v50, %v5266_v1  ;;  %4535 = vtanh.f32 %v401_v48 }
 0x168   :  { %v4512_v53 = vpop.eup %4511  ;;  %v404_v55 = vpop.f32.mrb[51].mxu0  ;;  %v878_v57 = vpack.c.bf16 %v4510_v47, %v4502_v36  ;;  %v760_v59 = vadd.f32 %v759_v51, %v5269_v2  ;;  %4537 = vtanh.f32 %v758_v49 }
 0x169   :  { %v761_v56 = vpop.f32.mrb[51].mxu1  ;;  %v4514_v58 = vpop.eup %4513  ;;  %v522_v61 = vpack.c.bf16 %v4512_v53, %v4504_v38  ;;  %v405_v5 = vadd.f32 %v404_v55, %v5272_v3  ;;  %4539 = vtanh.f32 %v403_v54 }
 0x16a   :  { %v4516_v62 = vpop.eup %4515  ;;  %v879_v6 = vpack.c.bf16 %v4514_v58, %v4506_v39  ;;  %v762_v8 = vadd.f32 %v761_v56, %v5275_v4  ;;  %4541 = vtanh.f32 %v760_v59  ;;  %v408_v11 = vpop.f32.mrb[52].mxu0 }
 0x16b   :  { %v4518_v7 = vpop.eup %4517  ;;  %1387 = vmatprep.mubr.bf16.mxu1 %v522_v61  ;;  %v765_v12 = vpop.f32.mrb[52].mxu1  ;;  %4543 = vtanh.f32 %v405_v5  ;;  %v409_v14 = vadd.f32 %v408_v11, %v5266_v1 }
 0x16c   :  { %v4520_v9 = vpop.eup %4519  ;;  %1130 = vmatprep.mubr.bf16.mxu0 %v879_v6  ;;  %1388 = vmatmul.mubr.bf16.gmra.mrb[104].mxu1 %v521_v52  ;;  %v766_v15 = vadd.f32 %v765_v12, %v5269_v2  ;;  %v410_v16 = vpop.f32.mrb[53].mxu0  ;;  %4545 = vtanh.f32 %v762_v8 }
 0x16d   :  { %v4522_v10 = vpop.eup %4521  ;;  %1131 = vmatmul.mubr.bf16.gmra.mrb[104].mxu0 %v878_v57  ;;  %v767_v17 = vpop.f32.mrb[53].mxu1  ;;  %v411_v19 = vadd.f32 %v410_v16, %v5272_v3  ;;  %4547 = vtanh.f32 %v409_v14 }
 0x16e   :  { %v4524_v13 = vpop.eup %4523  ;;  %v768_v20 = vadd.f32 %v767_v17, %v5275_v4  ;;  %v412_v21 = vpop.f32.mrb[54].mxu0  ;;  %4549 = vtanh.f32 %v766_v15 }
 0x16f   :  { %v4526_v18 = vpop.eup %4525  ;;  %v769_v22 = vpop.f32.mrb[54].mxu1  ;;  %v523_v23 = vpack.c.bf16 %v4524_v13, %v4516_v62  ;;  %v413_v25 = vadd.f32 %v412_v21, %v5266_v1  ;;  %4551 = vtanh.f32 %v411_v19 }
 0x170   :  { %v4528_v24 = vpop.eup %4527  ;;  %v414_v26 = vpop.f32.mrb[55].mxu0  ;;  %v880_v28 = vpack.c.bf16 %v4526_v18, %v4518_v7  ;;  %v770_v30 = vadd.f32 %v769_v22, %v5269_v2  ;;  %4553 = vtanh.f32 %v768_v20 }
 0x171   :  { %v771_v27 = vpop.f32.mrb[55].mxu1  ;;  %v4530_v29 = vpop.eup %4529  ;;  %v524_v31 = vpack.c.bf16 %v4528_v24, %v4520_v9  ;;  %v415_v33 = vadd.f32 %v414_v26, %v5272_v3  ;;  %4555 = vtanh.f32 %v413_v25 }
 0x172   :  { %v4532_v32 = vpop.eup %4531  ;;  %v881_v34 = vpack.c.bf16 %v4530_v29, %v4522_v10  ;;  %v772_v36 = vadd.f32 %v771_v27, %v5275_v4  ;;  %4557 = vtanh.f32 %v770_v30  ;;  %v418_v39 = vpop.f32.mrb[56].mxu0 }
 0x173   :  { %v4534_v35 = vpop.eup %4533  ;;  %1395 = vmatprep.mubr.bf16.mxu1 %v524_v31  ;;  %v775_v40 = vpop.f32.mrb[56].mxu1  ;;  %4559 = vtanh.f32 %v415_v33  ;;  %v419_v42 = vadd.f32 %v418_v39, %v5266_v1 }
 0x174   :  { %v4536_v37 = vpop.eup %4535  ;;  %1138 = vmatprep.mubr.bf16.mxu0 %v881_v34  ;;  %1396 = vmatmul.mubr.bf16.gmra.mrb[108].mxu1 %v523_v23  ;;  %v776_v43 = vadd.f32 %v775_v40, %v5269_v2  ;;  %v420_v44 = vpop.f32.mrb[57].mxu0  ;;  %4561 = vtanh.f32 %v772_v36 }
 0x175   :  { %v4538_v38 = vpop.eup %4537  ;;  %1139 = vmatmul.mubr.bf16.gmra.mrb[108].mxu0 %v880_v28  ;;  %v777_v45 = vpop.f32.mrb[57].mxu1  ;;  %v421_v47 = vadd.f32 %v420_v44, %v5272_v3  ;;  %4563 = vtanh.f32 %v419_v42 }
 0x176   :  { %v4540_v41 = vpop.eup %4539  ;;  %v778_v48 = vadd.f32 %v777_v45, %v5275_v4  ;;  %v422_v49 = vpop.f32.mrb[58].mxu0  ;;  %4565 = vtanh.f32 %v776_v43 }
 0x177   :  { %v4542_v46 = vpop.eup %4541  ;;  %v779_v50 = vpop.f32.mrb[58].mxu1  ;;  %v525_v51 = vpack.c.bf16 %v4540_v41, %v4532_v32  ;;  %v423_v53 = vadd.f32 %v422_v49, %v5266_v1  ;;  %4567 = vtanh.f32 %v421_v47 }
 0x178   :  { %v4544_v52 = vpop.eup %4543  ;;  %v424_v54 = vpop.f32.mrb[59].mxu0  ;;  %v882_v56 = vpack.c.bf16 %v4542_v46, %v4534_v35  ;;  %v780_v58 = vadd.f32 %v779_v50, %v5269_v2  ;;  %4569 = vtanh.f32 %v778_v48 }
 0x179   :  { %v781_v55 = vpop.f32.mrb[59].mxu1  ;;  %v4546_v57 = vpop.eup %4545  ;;  %v526_v59 = vpack.c.bf16 %v4544_v52, %v4536_v37  ;;  %v425_v62 = vadd.f32 %v424_v54, %v5272_v3  ;;  %4571 = vtanh.f32 %v423_v53 }
 0x17a   :  { %v4548_v61 = vpop.eup %4547  ;;  %v883_v5 = vpack.c.bf16 %v4546_v57, %v4538_v38  ;;  %v782_v7 = vadd.f32 %v781_v55, %v5275_v4  ;;  %4573 = vtanh.f32 %v780_v58  ;;  %v428_v10 = vpop.f32.mrb[60].mxu0  ;;  %v4286_v38 = vld [vmem:[#allocation4 + $0x100] sm:$0xff]   ;;  %v4288_v57 = vld [vmem:[#allocation4 + $0x108] sm:$0xff]  }
 0x17b   :  { %v4550_v6 = vpop.eup %4549  ;;  %1403 = vmatprep.mubr.bf16.mxu1 %v526_v59  ;;  %v785_v11 = vpop.f32.mrb[60].mxu1  ;;  %4575 = vtanh.f32 %v425_v62  ;;  %v429_v13 = vadd.f32 %v428_v10, %v5266_v1  ;;  %v4279_v58 = vld [vmem:[%s6320_s1 + $0x18] ss:$40 sps:$4 sm:$0xff]   ;;  %v4284_v59 = vld [vmem:[%s6320_s1 + $0x6c] ss:$40 sps:$4 sm:$0xff]  }
 0x17c   :  { %v4552_v8 = vpop.eup %4551  ;;  %1146 = vmatprep.mubr.bf16.mxu0 %v883_v5  ;;  %1404 = vmatmul.mubr.bf16.gmra.mrb[112].mxu1 %v525_v51  ;;  %v786_v14 = vadd.f32 %v785_v11, %v5269_v2  ;;  %v430_v15 = vpop.f32.mrb[61].mxu0  ;;  %4577 = vtanh.f32 %v782_v7  ;;  %v4282_v62 = vld [vmem:[%s6320_s1 + $0x68] ss:$40 sps:$4 sm:$0xff]   ;;  %v4291_v5 = vld [vmem:[%s6320_s1 + $0x24] ss:$40 sps:$4 sm:$0xff]   ;;  %v4292_v7 = vld [vmem:[#allocation4 + $0x150] sm:$0xff]  }
 0x17d   :  { %v4554_v9 = vpop.eup %4553  ;;  %1147 = vmatmul.mubr.bf16.gmra.mrb[112].mxu0 %v882_v56  ;;  %v787_v16 = vpop.f32.mrb[61].mxu1  ;;  %v431_v18 = vadd.f32 %v430_v15, %v5272_v3  ;;  %4579 = vtanh.f32 %v429_v13  ;;  %v4287_v56 = vld [vmem:[#allocation4 + $0x148] sm:$0xff]   ;;  %v4294_v11 = vld [vmem:[#allocation4 + $0x158] sm:$0xff]   ;;  %v4296_v15 = vld [vmem:[#allocation4 + $0x160] sm:$0xff]  }
 0x17e   :  { %v4556_v12 = vpop.eup %4555  ;;  %v788_v19 = vadd.f32 %v787_v16, %v5275_v4  ;;  %v432_v20 = vpop.f32.mrb[62].mxu0  ;;  %4581 = vtanh.f32 %v786_v14  ;;  %v5457_v10 = vld [vmem:[%s6319_s0 + $0x18] sm:$0xff]   ;;  %v5465_v13 = vld [vmem:[%s6319_s0 + $0x20] sm:$0xff]   ;;  %v5473_v14 = vld [vmem:[%s6319_s0 + $0x28] sm:$0xff]  }
 0x17f   :  { %v4558_v17 = vpop.eup %4557  ;;  %v789_v21 = vpop.f32.mrb[62].mxu1  ;;  %v527_v22 = vpack.c.bf16 %v4556_v12, %v4548_v61  ;;  %v433_v24 = vadd.f32 %v432_v20, %v5266_v1  ;;  %4583 = vtanh.f32 %v431_v18  ;;  %v5427_v61 = vld [vmem:[%s6319_s0] sm:$0xff]   ;;  %v4297_v16 = vld [vmem:[#allocation4 + $0x120] sm:$0xff]   ;;  %v5489_v18 = vld [vmem:[%s6319_s0 + $0x38] sm:$0xff]  }
 0x180   :  { %v4560_v23 = vpop.eup %4559  ;;  %v434_v25 = vpop.f32.mrb[63].mxu0  ;;  %v884_v27 = vpack.c.bf16 %v4558_v17, %v4550_v6  ;;  %v790_v29 = vadd.f32 %v789_v21, %v5269_v2  ;;  %4585 = vtanh.f32 %v788_v19  ;;  %v4285_v2 = vld [vmem:[#allocation4 + $0x140] sm:$0xff]   ;;  %v4295_v12 = vld [vmem:[#allocation4 + $0x118] sm:$0xff]   ;;  %v4298_v19 = vld [vmem:[#allocation4 + $0x168] sm:$0xff]  }
 0x181   :  { %v791_v26 = vpop.f32.mrb[63].mxu1  ;;  %v4562_v28 = vpop.eup %4561  ;;  %v528_v30 = vpack.c.bf16 %v4560_v23, %v4552_v8  ;;  %v435_v32 = vadd.f32 %v434_v25, %v5272_v3  ;;  %4587 = vtanh.f32 %v433_v24  ;;  %3872 = vmatprep.subr.bf16.mxu1 %v4285_v2  ;;  %v5441_v6 = vld [vmem:[%s6319_s0 + $0x8] sm:$0xff]   ;;  %v4293_v8 = vld [vmem:[#allocation4 + $0x110] sm:$0xff]   ;;  %v5481_v17 = vld [vmem:[%s6319_s0 + $0x30] sm:$0xff]  }
 0x182   :  { %v4564_v31 = vpop.eup %4563  ;;  %v885_v33 = vpack.c.bf16 %v4562_v28, %v4554_v9  ;;  %v792_v35 = vadd.f32 %v791_v26, %v5275_v4  ;;  %4589 = vtanh.f32 %v790_v29  ;;  %3873 = vmatpush3.bf16.msra.mxu1 %v4286_v38  ;;  %v5449_v9 = vld [vmem:[%s6319_s0 + $0x10] sm:$0xff]   ;;  %v5497_v21 = vld [vmem:[%s6319_s0 + $0x40] sm:$0xff]   ;;  %v5523_v2 = vld [vmem:[%s6319_s0 + $0x58] sm:$0xff]  }
 0x183   :  { %v4566_v34 = vpop.eup %4565  ;;  %1411 = vmatprep.mubr.bf16.mxu1 %v528_v30  ;;  %4591 = vtanh.f32 %v435_v32  ;;  %3874 = vmatprep.subr.bf16.mxu1 %v4287_v56  ;;  %v4299_v20 = vld [vmem:[#allocation4 + $0x128] sm:$0xff]   ;;  %v4303_v23 = vld [vmem:[#allocation4 + $0x170] sm:$0xff]  }
 0x184   :  { %v4568_v36 = vpop.eup %4567  ;;  %1154 = vmatprep.mubr.bf16.mxu0 %v885_v33  ;;  %1412 = vmatmul.mubr.bf16.gmra.mrb[116].mxu1 %v527_v22  ;;  %4593 = vtanh.f32 %v792_v35  ;;  %v5505_v22 = vld [vmem:[%s6319_s0 + $0x48] sm:$0xff]   ;;  %v4304_v24 = vld [vmem:[#allocation4 + $0x130] sm:$0xff]   ;;  %v5513_v25 = vld [vmem:[%s6319_s0 + $0x50] sm:$0xff]  }
 0x185   :  { %v4570_v1 = vpop.eup %4569  ;;  %1155 = vmatmul.mubr.bf16.gmra.mrb[116].mxu0 %v884_v27 }
 0x186   :  { %v4572_v37 = vpop.eup %4571  ;;  %3875 = vmatpush3.bf16.msra.mxu1 %v4288_v57 }
 0x187   :  { %v4574_v39 = vpop.eup %4573  ;;  %v529_v3 = vpack.c.bf16 %v4572_v37, %v4564_v31  ;;  %3876 = vmatprep.subr.bf16.mxu1 %v4292_v7 }
 0x188   :  { %v4576_v40 = vpop.eup %4575  ;;  %v886_v41 = vpack.c.bf16 %v4574_v39, %v4566_v34  ;;  %v4305_v39 = vld [vmem:[#allocation4 + $0x178] sm:$0xff]  }
 0x189   :  { %v4578_v42 = vpop.eup %4577  ;;  %v530_v4 = vpack.c.bf16 %v4576_v40, %v4568_v36 }
 0x18a   :  { %v4580_v43 = vpop.eup %4579  ;;  %v887_v44 = vpack.c.bf16 %v4578_v42, %v4570_v1  ;;  %3877 = vmatpush3.bf16.msra.mxu1 %v4293_v8 }
 0x18b   :  { %v4582_v45 = vpop.eup %4581  ;;  %1419 = vmatprep.mubr.bf16.mxu1 %v530_v4  ;;  %3878 = vmatprep.subr.bf16.mxu1 %v4294_v11 }
 0x18c   :  { %v4584_v46 = vpop.eup %4583  ;;  %1162 = vmatprep.mubr.bf16.mxu0 %v887_v44  ;;  %1420 = vmatmul.mubr.bf16.gmra.mrb[120].mxu1 %v529_v3  ;;  %v4306_v3 = vld [vmem:[#allocation4 + $0x138] sm:$0xff]  }
 0x18d   :  { %v4586_v47 = vpop.eup %4585  ;;  %1163 = vmatmul.mubr.bf16.gmra.mrb[120].mxu0 %v886_v41 }
 0x18e   :  { %v4588_v48 = vpop.eup %4587  ;;  %3879 = vmatpush3.bf16.msra.mxu1 %v4295_v12 }
 0x18f   :  { %v4590_v49 = vpop.eup %4589  ;;  %v531_v50 = vpack.c.bf16 %v4588_v48, %v4580_v43  ;;  %3880 = vmatprep.subr.bf16.mxu1 %v4296_v15 }
 0x190   :  { %v4592_v51 = vpop.eup %4591  ;;  %v888_v52 = vpack.c.bf16 %v4590_v49, %v4582_v45 }
 0x191   :  { %v4594_v53 = vpop.eup %4593  ;;  %v532_v54 = vpack.c.bf16 %v4592_v51, %v4584_v46 }
 0x192   :  { %v889_v55 = vpack.c.bf16 %v4594_v53, %v4586_v47  ;;  %3881 = vmatpush3.bf16.msra.mxu1 %v4297_v16  ;;  %v5547_v16 = vld [vmem:[%s6319_s0 + $0x68] sm:$0xff]  }
 0x193   :  { %1427 = vmatprep.mubr.bf16.mxu1 %v532_v54  ;;  %3882 = vmatprep.subr.bf16.mxu1 %v4298_v19 }
 0x194   :  { %1170 = vmatprep.mubr.bf16.mxu0 %v889_v55  ;;  %1428 = vmatmul.mubr.bf16.gmra.mrb[124].mxu1 %v531_v50 }
 0x195   :  { %1171 = vmatmul.mubr.bf16.gmra.mrb[124].mxu0 %v888_v52  ;;  %v5535_v52 = vld [vmem:[%s6319_s0 + $0x60] sm:$0xff]  }
 0x196   :  { %1504 = vmatprep.mubr.bf16.mxu0 %v5060_v0  ;;  %3883 = vmatpush3.bf16.msra.mxu1 %v4299_v20  ;;  %v4307_v20 = vld [vmem:[#allocation4 + $0x1c0] sm:$0xff]  }
 0x197   :  { %3884 = vmatprep.subr.bf16.mxu1 %v4303_v23 }
 0x19a   :  { %3885 = vmatpush3.bf16.msra.mxu1 %v4304_v24 }
 0x19b   :  { %3886 = vmatprep.subr.bf16.mxu1 %v4305_v39 }
 0x19d   :  { %3543 = vmatmul.mubr.msk.bf16.vlgmr.msra.gmra.mrb[128].mxu0 %vm195_vm0, %v5427_v61 }
 0x19e   :  { %2119 = vmatpush1.bf16.msra.mxu0 %v4279_v58  ;;  %1514 = vmatprep.mubr.bf16.mxu0 %v5060_v0 }
 0x19f   :  { %2120 = vmatprep.subr.bf16.mxu0 %v4284_v59  ;;  %3887 = vmatpush3.bf16.msra.mxu1 %v4306_v3 }
 0x1a0   :  { %3984 = vmatprep.subr.bf16.mxu1 %v4307_v20 }
 0x1a2   :  { %2121 = vmatpush1.bf16.msra.mxu0 %v4282_v62 }
 0x1a3   :  { %2764 = vmatprep.subr.bf16.mxu0 %v4291_v5 }
 0x1a5   :  { %3544 = vmatmul.mubr.msk.bf16.gmra.mrb[132].mxu0 %vm195_vm0, %v5441_v6 }
 0x1a6   :  { %1524 = vmatprep.mubr.bf16.mxu0 %v5060_v0 }
 0x1ad   :  { %3545 = vmatmul.mubr.msk.bf16.gmra.mrb[136].mxu0 %vm195_vm0, %v5449_v9 }
 0x1ae   :  { %1534 = vmatprep.mubr.bf16.mxu0 %v5060_v0 }
 0x1b5   :  { %3546 = vmatmul.mubr.msk.bf16.gmra.mrb[140].mxu0 %vm195_vm0, %v5457_v10 }
 0x1b6   :  { %1544 = vmatprep.mubr.bf16.mxu0 %v5060_v0 }
 0x1bd   :  { %3547 = vmatmul.mubr.msk.bf16.gmra.mrb[144].mxu0 %vm195_vm0, %v5465_v13 }
 0x1be   :  { %1554 = vmatprep.mubr.bf16.mxu0 %v5060_v0 }
 0x1c5   :  { %3548 = vmatmul.mubr.msk.bf16.gmra.mrb[148].mxu0 %vm195_vm0, %v5473_v14 }
 0x1c6   :  { %1564 = vmatprep.mubr.bf16.mxu0 %v5060_v0 }
 0x1cd   :  { %3549 = vmatmul.mubr.msk.bf16.gmra.mrb[152].mxu0 %vm195_vm0, %v5481_v17 }
 0x1ce   :  { %1574 = vmatprep.mubr.bf16.mxu0 %v5060_v0 }
 0x1d5   :  { %3550 = vmatmul.mubr.msk.bf16.gmra.mrb[156].mxu0 %vm195_vm0, %v5489_v18 }
 0x1d6   :  { %1584 = vmatprep.mubr.bf16.mxu0 %v5060_v0 }
 0x1dd   :  { %3551 = vmatmul.mubr.msk.bf16.gmra.mrb[160].mxu0 %vm195_vm0, %v5497_v21 }
 0x1de   :  { %1594 = vmatprep.mubr.bf16.mxu0 %v5060_v0 }
 0x1e5   :  { %3552 = vmatmul.mubr.msk.bf16.gmra.mrb[164].mxu0 %vm195_vm0, %v5505_v22 }
 0x1e6   :  { %1604 = vmatprep.mubr.bf16.mxu0 %v5060_v0 }
 0x1ed   :  { %3553 = vmatmul.mubr.msk.bf16.gmra.mrb[168].mxu0 %vm195_vm0, %v5513_v25  ;;  %v3776_v26 = vpop.f32.mrb[64].mxu1 }
 0x1ee   :  { %1614 = vmatprep.mubr.bf16.mxu0 %v5060_v0  ;;  %v3777_v28 = vpop.f32.mrb[65].mxu1 }
 0x1ef   :  { %v3664_v27 = vpop.f32.mrb[64].mxu0  ;;  %v3778_v30 = vadd.f32 %v3777_v28, %v3776_v26  ;;  %v3779_v31 = vpop.f32.mrb[66].mxu1 }
 0x1f0   :  { %v3665_v29 = vpop.f32.mrb[65].mxu0  ;;  %v3780_v34 = vpop.f32.mrb[67].mxu1 }
 0x1f1   :  { %v3666_v32 = vadd.f32 %v3665_v29, %v3664_v27  ;;  %v3667_v33 = vpop.f32.mrb[66].mxu0  ;;  %v3781_v36 = vadd.f32 %v3780_v34, %v3779_v31 }
 0x1f2   :  { %v3668_v35 = vpop.f32.mrb[67].mxu0 }
 0x1f3   :  { %v5518_v1 = vadd.f32 %v3778_v30, %v3666_v32  ;;  %v3669_v37 = vadd.f32 %v3668_v35, %v3667_v33 }
 0x1f5   :  { %3554 = vmatmul.mubr.msk.bf16.gmra.mrb[172].mxu0 %vm195_vm0, %v5523_v2  ;;  %v5527_v38 = vadd.f32 %v3781_v36, %v3669_v37  ;;  %v5559_v37 = vld [vmem:[%s6319_s0 + $0x70] sm:$0xff]  }
 0x1f6   :  { %1624 = vmatprep.mubr.bf16.mxu0 %v5060_v0  ;;  %v3782_v40 = vpop.f32.mrb[68].mxu1 }
 0x1f7   :  { %v3783_v42 = vpop.f32.mrb[69].mxu1 }
 0x1f8   :  { %v3670_v41 = vpop.f32.mrb[68].mxu0  ;;  %v3784_v43 = vadd.f32 %v3783_v42, %v3782_v40  ;;  %v3785_v44 = vpop.f32.mrb[70].mxu1 }
 0x1f9   :  { %v3671_v4 = vpop.f32.mrb[69].mxu0  ;;  %v3786_v47 = vpop.f32.mrb[71].mxu1 }
 0x1fa   :  { %v3672_v45 = vadd.f32 %v3671_v4, %v3670_v41  ;;  %v3673_v46 = vpop.f32.mrb[70].mxu0  ;;  %v3787_v49 = vadd.f32 %v3786_v47, %v3785_v44 }
 0x1fb   :  { %v3674_v48 = vpop.f32.mrb[71].mxu0 }
 0x1fc   :  { %v5530_v50 = vadd.f32 %v3784_v43, %v3672_v45  ;;  %v3675_v51 = vadd.f32 %v3674_v48, %v3673_v46 }
 0x1fd   :  { %3555 = vmatmul.mubr.msk.bf16.gmra.mrb[176].mxu0 %vm195_vm0, %v5535_v52 }
 0x1fe   :  { %v5539_v53 = vadd.f32 %v3787_v49, %v3675_v51  ;;  %1634 = vmatprep.mubr.bf16.mxu0 %v5060_v0 }
 0x1ff   :  { %v3788_v54 = vpop.f32.mrb[72].mxu1 }
 0x200   :  { %v3676_v55 = vpop.f32.mrb[72].mxu0  ;;  %v3789_v56 = vpop.f32.mrb[73].mxu1 }
 0x201   :  { %v3677_v57 = vpop.f32.mrb[73].mxu0  ;;  %v3790_v58 = vadd.f32 %v3789_v56, %v3788_v54  ;;  %v3791_v59 = vpop.f32.mrb[74].mxu1  ;;  %v5571_v54 = vld [vmem:[%s6319_s0 + $0x78] sm:$0xff]  }
 0x202   :  { %v3678_v62 = vadd.f32 %v3677_v57, %v3676_v55  ;;  %v3679_v5 = vpop.f32.mrb[74].mxu0  ;;  %v3792_v7 = vpop.f32.mrb[75].mxu1 }
 0x203   :  { %v3680_v8 = vpop.f32.mrb[75].mxu0  ;;  %v3793_v11 = vadd.f32 %v3792_v7, %v3791_v59 }
 0x204   :  { %v5542_v12 = vadd.f32 %v3790_v58, %v3678_v62  ;;  %v3681_v15 = vadd.f32 %v3680_v8, %v3679_v5 }
 0x205   :  { %3556 = vmatmul.mubr.msk.bf16.gmra.mrb[180].mxu0 %vm195_vm0, %v5547_v16 }
 0x206   :  { %v5551_v19 = vadd.f32 %v3793_v11, %v3681_v15  ;;  %1644 = vmatprep.mubr.bf16.mxu0 %v5060_v0  ;;  %v4289_v15 = vld [vmem:[%s6320_s1 + $0x20] ss:$40 sps:$4 sm:$0xff]  }
 0x207   :  { %v3794_v23 = vpop.f32.mrb[76].mxu1 }
 0x208   :  { %v3682_v24 = vpop.f32.mrb[76].mxu0  ;;  %v3795_v26 = vpop.f32.mrb[77].mxu1 }
 0x209   :  { %v3683_v27 = vpop.f32.mrb[77].mxu0  ;;  %v3796_v28 = vadd.f32 %v3795_v26, %v3794_v23  ;;  %v3797_v29 = vpop.f32.mrb[78].mxu1 }
 0x20a   :  { %v3684_v30 = vadd.f32 %v3683_v27, %v3682_v24  ;;  %v3685_v31 = vpop.f32.mrb[78].mxu0  ;;  %v3798_v32 = vpop.f32.mrb[79].mxu1  ;;  %v4302_v24 = vld [vmem:[%s6320_s1 + $0x74] ss:$40 sps:$4 sm:$0xff]  }
 0x20b   :  { %v3686_v33 = vpop.f32.mrb[79].mxu0  ;;  %v3799_v34 = vadd.f32 %v3798_v32, %v3797_v29  ;;  %v4300_v29 = vld [vmem:[%s6320_s1 + $0x70] ss:$40 sps:$4 sm:$0xff]  }
 0x20c   :  { %v5554_v35 = vadd.f32 %v3796_v28, %v3684_v30  ;;  %v3687_v36 = vadd.f32 %v3686_v33, %v3685_v31 }
 0x20d   :  { %3557 = vmatmul.mubr.msk.bf16.gmra.mrb[184].mxu0 %vm195_vm0, %v5559_v37 }
 0x20e   :  { %v5563_v39 = vadd.f32 %v3799_v34, %v3687_v36  ;;  %1654 = vmatprep.mubr.bf16.mxu0 %v5060_v0 }
 0x20f   :  { %v3800_v3 = vpop.f32.mrb[80].mxu1 }
 0x210   :  { %v3688_v40 = vpop.f32.mrb[80].mxu0  ;;  %v3801_v41 = vpop.f32.mrb[81].mxu1 }
 0x211   :  { %v3689_v42 = vpop.f32.mrb[81].mxu0  ;;  %v3802_v4 = vadd.f32 %v3801_v41, %v3800_v3  ;;  %v3803_v43 = vpop.f32.mrb[82].mxu1 }
 0x212   :  { %v3690_v44 = vadd.f32 %v3689_v42, %v3688_v40  ;;  %v3691_v45 = vpop.f32.mrb[82].mxu0  ;;  %v3804_v46 = vpop.f32.mrb[83].mxu1 }
 0x213   :  { %v3692_v47 = vpop.f32.mrb[83].mxu0  ;;  %v3805_v48 = vadd.f32 %v3804_v46, %v3803_v43 }
 0x214   :  { %v5566_v49 = vadd.f32 %v3802_v4, %v3690_v44  ;;  %v3693_v51 = vadd.f32 %v3692_v47, %v3691_v45 }
 0x215   :  { %3558 = vmatmul.mubr.msk.bf16.gmra.mrb[188].mxu0 %vm195_vm0, %v5571_v54 }
 0x216   :  { %v5575_v55 = vadd.f32 %v3805_v48, %v3693_v51  ;;  %2150 = vmatprep.mubr.bf16.mxu0 %v5060_v0 }
 0x217   :  { %v3806_v56 = vpop.f32.mrb[84].mxu1 }
 0x218   :  { %v3694_v57 = vpop.f32.mrb[84].mxu0  ;;  %v3807_v58 = vpop.f32.mrb[85].mxu1 }
 0x219   :  { %v3695_v59 = vpop.f32.mrb[85].mxu0  ;;  %v3808_v62 = vadd.f32 %v3807_v58, %v3806_v56  ;;  %v3809_v5 = vpop.f32.mrb[86].mxu1 }
 0x21a   :  { %v3696_v7 = vadd.f32 %v3695_v59, %v3694_v57  ;;  %v3697_v8 = vpop.f32.mrb[86].mxu0  ;;  %v3810_v11 = vpop.f32.mrb[87].mxu1 }
 0x21b   :  { %v3698_v20 = vpop.f32.mrb[87].mxu0  ;;  %v3811_v23 = vadd.f32 %v3810_v11, %v3809_v5 }
 0x21c   :  { %v5584_v26 = vadd.f32 %v3808_v62, %v3696_v7  ;;  %v3699_v27 = vadd.f32 %v3698_v20, %v3697_v8 }
 0x21d   :  { %3579 = vmatmul.mubr.msk.bf16.vlgmr.msra.gmra.mrb[192].mxu0 %vm195_vm0, %v5427_v61 }
 0x21e   :  { %v5588_v28 = vadd.f32 %v3811_v23, %v3699_v27  ;;  %2765 = vmatpush1.bf16.msra.mxu0 %v4289_v15  ;;  %2160 = vmatprep.mubr.bf16.mxu0 %v5060_v0 }
 0x21f   :  { %v3812_v30 = vpop.f32.mrb[88].mxu1  ;;  %2766 = vmatprep.subr.bf16.mxu0 %v4302_v24 }
 0x220   :  { %v3700_v31 = vpop.f32.mrb[88].mxu0  ;;  %v3813_v32 = vpop.f32.mrb[89].mxu1 }
 0x221   :  { %v3701_v33 = vpop.f32.mrb[89].mxu0  ;;  %v3814_v34 = vadd.f32 %v3813_v32, %v3812_v30  ;;  %v3815_v36 = vpop.f32.mrb[90].mxu1 }
 0x222   :  { %v3702_v3 = vadd.f32 %v3701_v33, %v3700_v31  ;;  %v3703_v40 = vpop.f32.mrb[90].mxu0  ;;  %v3816_v41 = vpop.f32.mrb[91].mxu1  ;;  %2767 = vmatpush1.bf16.msra.mxu0 %v4300_v29 }
 0x223   :  { %v3704_v42 = vpop.f32.mrb[91].mxu0  ;;  %v3817_v4 = vadd.f32 %v3816_v41, %v3815_v36 }
 0x224   :  { %v5594_v43 = vadd.f32 %v3814_v34, %v3702_v3  ;;  %v3705_v44 = vadd.f32 %v3704_v42, %v3703_v40 }
 0x225   :  { %3580 = vmatmul.mubr.msk.bf16.gmra.mrb[196].mxu0 %vm195_vm0, %v5441_v6 }
 0x226   :  { %v5598_v45 = vadd.f32 %v3817_v4, %v3705_v44  ;;  %2170 = vmatprep.mubr.bf16.mxu0 %v5060_v0 }
 0x227   :  { %v3818_v46 = vpop.f32.mrb[92].mxu1 }
 0x228   :  { %v3706_v47 = vpop.f32.mrb[92].mxu0  ;;  %v3819_v48 = vpop.f32.mrb[93].mxu1 }
 0x229   :  { %v3707_v51 = vpop.f32.mrb[93].mxu0  ;;  %v3820_v56 = vadd.f32 %v3819_v48, %v3818_v46  ;;  %v3821_v57 = vpop.f32.mrb[94].mxu1 }
 0x22a   :  { %v3708_v58 = vadd.f32 %v3707_v51, %v3706_v47  ;;  %v3709_v59 = vpop.f32.mrb[94].mxu0  ;;  %v3822_v62 = vpop.f32.mrb[95].mxu1 }
 0x22b   :  { %v3710_v5 = vpop.f32.mrb[95].mxu0  ;;  %v3823_v7 = vadd.f32 %v3822_v62, %v3821_v57 }
 0x22c   :  { %v5601_v8 = vadd.f32 %v3820_v56, %v3708_v58  ;;  %v3711_v11 = vadd.f32 %v3710_v5, %v3709_v59 }
 0x22d   :  { %3581 = vmatmul.mubr.msk.bf16.gmra.mrb[200].mxu0 %vm195_vm0, %v5449_v9 }
 0x22e   :  { %v5605_v15 = vadd.f32 %v3823_v7, %v3711_v11  ;;  %2180 = vmatprep.mubr.bf16.mxu0 %v5060_v0 }
 0x22f   :  { %v3824_v20 = vpop.f32.mrb[96].mxu1 }
 0x230   :  { %v3712_v23 = vpop.f32.mrb[96].mxu0  ;;  %v3825_v24 = vpop.f32.mrb[97].mxu1 }
 0x231   :  { %v3713_v27 = vpop.f32.mrb[97].mxu0  ;;  %v3826_v29 = vadd.f32 %v3825_v24, %v3824_v20  ;;  %v3827_v30 = vpop.f32.mrb[98].mxu1 }
 0x232   :  { %v3714_v31 = vadd.f32 %v3713_v27, %v3712_v23  ;;  %v3715_v32 = vpop.f32.mrb[98].mxu0  ;;  %v3828_v33 = vpop.f32.mrb[99].mxu1 }
 0x233   :  { %v3716_v34 = vpop.f32.mrb[99].mxu0  ;;  %v3829_v36 = vadd.f32 %v3828_v33, %v3827_v30 }
 0x234   :  { %v5608_v3 = vadd.f32 %v3826_v29, %v3714_v31  ;;  %v3717_v40 = vadd.f32 %v3716_v34, %v3715_v32 }
 0x235   :  { %3582 = vmatmul.mubr.msk.bf16.gmra.mrb[204].mxu0 %vm195_vm0, %v5457_v10 }
 0x236   :  { %v5612_v41 = vadd.f32 %v3829_v36, %v3717_v40  ;;  %2190 = vmatprep.mubr.bf16.mxu0 %v5060_v0 }
 0x237   :  { %v3830_v42 = vpop.f32.mrb[100].mxu1 }
 0x238   :  { %v3718_v4 = vpop.f32.mrb[100].mxu0  ;;  %v3831_v44 = vpop.f32.mrb[101].mxu1 }
 0x239   :  { %v3719_v46 = vpop.f32.mrb[101].mxu0  ;;  %v3832_v47 = vadd.f32 %v3831_v44, %v3830_v42  ;;  %v3833_v48 = vpop.f32.mrb[102].mxu1 }
 0x23a   :  { %v3720_v51 = vadd.f32 %v3719_v46, %v3718_v4  ;;  %v3721_v56 = vpop.f32.mrb[102].mxu0  ;;  %v3834_v57 = vpop.f32.mrb[103].mxu1 }
 0x23b   :  { %v3722_v58 = vpop.f32.mrb[103].mxu0  ;;  %v3835_v59 = vadd.f32 %v3834_v57, %v3833_v48 }
 0x23c   :  { %v5615_v62 = vadd.f32 %v3832_v47, %v3720_v51  ;;  %v3723_v5 = vadd.f32 %v3722_v58, %v3721_v56 }
 0x23d   :  { %3583 = vmatmul.mubr.msk.bf16.gmra.mrb[208].mxu0 %vm195_vm0, %v5465_v13 }
 0x23e   :  { %v5619_v10 = vadd.f32 %v3835_v59, %v3723_v5  ;;  %2200 = vmatprep.mubr.bf16.mxu0 %v5060_v0 }
 0x23f   :  { %v3836_v7 = vpop.f32.mrb[104].mxu1 }
 0x240   :  { %v3724_v11 = vpop.f32.mrb[104].mxu0  ;;  %v3837_v20 = vpop.f32.mrb[105].mxu1 }
 0x241   :  { %v3725_v23 = vpop.f32.mrb[105].mxu0  ;;  %v3838_v24 = vadd.f32 %v3837_v20, %v3836_v7  ;;  %v3839_v27 = vpop.f32.mrb[106].mxu1 }
 0x242   :  { %v3726_v29 = vadd.f32 %v3725_v23, %v3724_v11  ;;  %v3727_v30 = vpop.f32.mrb[106].mxu0  ;;  %v3840_v31 = vpop.f32.mrb[107].mxu1 }
 0x243   :  { %v3728_v32 = vpop.f32.mrb[107].mxu0  ;;  %v3841_v33 = vadd.f32 %v3840_v31, %v3839_v27 }
 0x244   :  { %v5622_v34 = vadd.f32 %v3838_v24, %v3726_v29  ;;  %v3729_v36 = vadd.f32 %v3728_v32, %v3727_v30 }
 0x245   :  { %3584 = vmatmul.mubr.msk.bf16.gmra.mrb[212].mxu0 %vm195_vm0, %v5473_v14 }
 0x246   :  { %v5626_v13 = vadd.f32 %v3841_v33, %v3729_v36  ;;  %2210 = vmatprep.mubr.bf16.mxu0 %v5060_v0 }
 0x247   :  { %v3842_v40 = vpop.f32.mrb[108].mxu1 }
 0x248   :  { %v3730_v42 = vpop.f32.mrb[108].mxu0  ;;  %v3843_v4 = vpop.f32.mrb[109].mxu1 }
 0x249   :  { %v3731_v44 = vpop.f32.mrb[109].mxu0  ;;  %v3844_v46 = vadd.f32 %v3843_v4, %v3842_v40  ;;  %v3845_v47 = vpop.f32.mrb[110].mxu1 }
 0x24a   :  { %v3732_v48 = vadd.f32 %v3731_v44, %v3730_v42  ;;  %v3733_v51 = vpop.f32.mrb[110].mxu0  ;;  %v3846_v56 = vpop.f32.mrb[111].mxu1 }
 0x24b   :  { %v3734_v57 = vpop.f32.mrb[111].mxu0  ;;  %v3847_v58 = vadd.f32 %v3846_v56, %v3845_v47 }
 0x24c   :  { %v5629_v59 = vadd.f32 %v3844_v46, %v3732_v48  ;;  %v3735_v5 = vadd.f32 %v3734_v57, %v3733_v51 }
 0x24d   :  { %3585 = vmatmul.mubr.msk.bf16.gmra.mrb[216].mxu0 %vm195_vm0, %v5481_v17 }
 0x24e   :  { %v5633_v14 = vadd.f32 %v3847_v58, %v3735_v5  ;;  %2220 = vmatprep.mubr.bf16.mxu0 %v5060_v0 }
 0x24f   :  { %v3848_v7 = vpop.f32.mrb[112].mxu1 }
 0x250   :  { %v3736_v11 = vpop.f32.mrb[112].mxu0  ;;  %v3849_v20 = vpop.f32.mrb[113].mxu1 }
 0x251   :  { %v3737_v23 = vpop.f32.mrb[113].mxu0  ;;  %v3850_v24 = vadd.f32 %v3849_v20, %v3848_v7  ;;  %v3851_v27 = vpop.f32.mrb[114].mxu1 }
 0x252   :  { %v3738_v29 = vadd.f32 %v3737_v23, %v3736_v11  ;;  %v3739_v30 = vpop.f32.mrb[114].mxu0  ;;  %v3852_v31 = vpop.f32.mrb[115].mxu1 }
 0x253   :  { %v3740_v32 = vpop.f32.mrb[115].mxu0  ;;  %v3853_v33 = vadd.f32 %v3852_v31, %v3851_v27 }
 0x254   :  { %v5636_v36 = vadd.f32 %v3850_v24, %v3738_v29  ;;  %v3741_v40 = vadd.f32 %v3740_v32, %v3739_v30 }
 0x255   :  { %3586 = vmatmul.mubr.msk.bf16.gmra.mrb[220].mxu0 %vm195_vm0, %v5489_v18 }
 0x256   :  { %v5640_v17 = vadd.f32 %v3853_v33, %v3741_v40  ;;  %2230 = vmatprep.mubr.bf16.mxu0 %v5060_v0 }
 0x257   :  { %v3854_v42 = vpop.f32.mrb[116].mxu1 }
 0x258   :  { %v3742_v4 = vpop.f32.mrb[116].mxu0  ;;  %v3855_v44 = vpop.f32.mrb[117].mxu1 }
 0x259   :  { %v3743_v46 = vpop.f32.mrb[117].mxu0  ;;  %v3856_v47 = vadd.f32 %v3855_v44, %v3854_v42  ;;  %v3857_v48 = vpop.f32.mrb[118].mxu1 }
 0x25a   :  { %v3744_v51 = vadd.f32 %v3743_v46, %v3742_v4  ;;  %v3745_v56 = vpop.f32.mrb[118].mxu0  ;;  %v3858_v57 = vpop.f32.mrb[119].mxu1 }
 0x25b   :  { %v3746_v58 = vpop.f32.mrb[119].mxu0  ;;  %v3859_v5 = vadd.f32 %v3858_v57, %v3857_v48 }
 0x25c   :  { %v5643_v7 = vadd.f32 %v3856_v47, %v3744_v51  ;;  %v3747_v11 = vadd.f32 %v3746_v58, %v3745_v56 }
 0x25d   :  { %3587 = vmatmul.mubr.msk.bf16.gmra.mrb[224].mxu0 %vm195_vm0, %v5497_v21 }
 0x25e   :  { %v5647_v18 = vadd.f32 %v3859_v5, %v3747_v11  ;;  %2240 = vmatprep.mubr.bf16.mxu0 %v5060_v0 }
 0x25f   :  { %v3860_v20 = vpop.f32.mrb[120].mxu1 }
 0x260   :  { %v3748_v23 = vpop.f32.mrb[120].mxu0  ;;  %v3861_v24 = vpop.f32.mrb[121].mxu1 }
 0x261   :  { %v3749_v27 = vpop.f32.mrb[121].mxu0  ;;  %v3862_v29 = vadd.f32 %v3861_v24, %v3860_v20  ;;  %v3863_v30 = vpop.f32.mrb[122].mxu1  ;;  %v1440_v20 = vld [vmem:[#allocation2 + $0x4] sm:$0x3] }
 0x262   :  { %v3750_v31 = vadd.f32 %v3749_v27, %v3748_v23  ;;  %v3751_v32 = vpop.f32.mrb[122].mxu0  ;;  %v3864_v33 = vpop.f32.mrb[123].mxu1 }
 0x263   :  { %v3752_v40 = vpop.f32.mrb[123].mxu0  ;;  %v3865_v42 = vadd.f32 %v3864_v33, %v3863_v30 }
 0x264   :  { %v5650_v4 = vadd.f32 %v3862_v29, %v3750_v31  ;;  %v3753_v44 = vadd.f32 %v3752_v40, %v3751_v32  ;;  %v5667_v31 = vrot.slane %v1440_v20, %v5263_v63 }
 0x265   :  { %3588 = vmatmul.mubr.msk.bf16.gmra.mrb[228].mxu0 %vm195_vm0, %v5505_v22  ;;  %v5662_v22 = vrot.slane %v1440_v20, %v5261_v60 }
 0x266   :  { %v5654_v21 = vadd.f32 %v3865_v42, %v3753_v44  ;;  %2250 = vmatprep.mubr.bf16.mxu0 %v5060_v0 }
 0x267   :  { %v3866_v46 = vpop.f32.mrb[124].mxu1 }
 0x268   :  { %v3754_v47 = vpop.f32.mrb[124].mxu0  ;;  %v3867_v48 = vpop.f32.mrb[125].mxu1 }
 0x269   :  { %v3755_v51 = vpop.f32.mrb[125].mxu0  ;;  %v3868_v56 = vadd.f32 %v3867_v48, %v3866_v46  ;;  %v3869_v57 = vpop.f32.mrb[126].mxu1 }
 0x26a   :  { %v3756_v58 = vadd.f32 %v3755_v51, %v3754_v47  ;;  %v3757_v5 = vpop.f32.mrb[126].mxu0  ;;  %v3870_v11 = vpop.f32.mrb[127].mxu1 }
 0x26b   :  { %v3758_v23 = vpop.f32.mrb[127].mxu0  ;;  %v3871_v24 = vadd.f32 %v3870_v11, %v3869_v57 }
 0x26c   :  { %v5657_v27 = vadd.f32 %v3868_v56, %v3756_v58  ;;  %v3759_v29 = vadd.f32 %v3758_v23, %v3757_v5 }
 0x26d   :  { %3589 = vmatmul.mubr.msk.bf16.gmra.mrb[232].mxu0 %vm195_vm0, %v5513_v25 }
 0x26e   :  { %v5664_v30 = vadd.f32 %v3871_v24, %v3759_v29  ;;  %2260 = vmatprep.mubr.bf16.mxu0 %v5060_v0 }
 0x270   :  { %v1506_v32 = vpop.f32.mrb[128].mxu0 }
 0x271   :  { %v1507_v33 = vadd.f32 %v1506_v32, %v5662_v22  ;;  %v1508_v40 = vpop.f32.mrb[129].mxu0 }
 0x272   :  { %v1509_v42 = vadd.f32 %v1508_v40, %v5667_v31  ;;  %v1510_v44 = vpop.f32.mrb[130].mxu0 }
 0x273   :  { %4595 = vtanh.f32 %v1507_v33  ;;  %v1511_v25 = vadd.f32 %v1510_v44, %v5662_v22  ;;  %v1512_v46 = vpop.f32.mrb[131].mxu0 }
 0x274   :  { %4597 = vtanh.f32 %v1509_v42  ;;  %v1513_v47 = vadd.f32 %v1512_v46, %v5667_v31 }
 0x275   :  { %4599 = vtanh.f32 %v1511_v25  ;;  %3590 = vmatmul.mubr.msk.bf16.gmra.mrb[236].mxu0 %vm195_vm0, %v5523_v2  ;;  %v4308_v25 = vld [vmem:[#allocation4 + $0x180] sm:$0xff]  }
 0x276   :  { %4601 = vtanh.f32 %v1513_v47  ;;  %2270 = vmatprep.mubr.bf16.mxu0 %v5060_v0 }
 0x278   :  { %v1516_v48 = vpop.f32.mrb[132].mxu0 }
 0x279   :  { %v1517_v51 = vadd.f32 %v1516_v48, %v5662_v22  ;;  %v1518_v56 = vpop.f32.mrb[133].mxu0  ;;  %v4309_v48 = vld [vmem:[#allocation4 + $0x1c8] sm:$0xff]  }
 0x27a   :  { %v1519_v57 = vadd.f32 %v1518_v56, %v5667_v31  ;;  %v1520_v58 = vpop.f32.mrb[134].mxu0 }
 0x27b   :  { %4603 = vtanh.f32 %v1517_v51  ;;  %v1521_v5 = vadd.f32 %v1520_v58, %v5662_v22  ;;  %v1522_v11 = vpop.f32.mrb[135].mxu0  ;;  %v4310_v58 = vld [vmem:[#allocation4 + $0x188] sm:$0xff]  }
 0x27c   :  { %4605 = vtanh.f32 %v1519_v57  ;;  %v1523_v20 = vadd.f32 %v1522_v11, %v5667_v31  ;;  %v4311_v11 = vld [vmem:[#allocation4 + $0x1d0] sm:$0xff]  }
 0x27d   :  { %v4596_v23 = vpop.eup %4595  ;;  %4607 = vtanh.f32 %v1521_v5  ;;  %3591 = vmatmul.mubr.msk.bf16.gmra.mrb[240].mxu0 %vm195_vm0, %v5535_v52 }
 0x27e   :  { %v4598_v2 = vpop.eup %4597  ;;  %4609 = vtanh.f32 %v1523_v20  ;;  %2280 = vmatprep.mubr.bf16.mxu0 %v5060_v0 }
 0x27f   :  { %v4600_v24 = vpop.eup %4599 }
 0x280   :  { %v4602_v29 = vpop.eup %4601  ;;  %v1526_v32 = vpop.f32.mrb[136].mxu0  ;;  %v1729_v33 = vpack.c.bf16 %v4600_v24, %v4596_v23 }
 0x281   :  { %v1527_v40 = vadd.f32 %v1526_v32, %v5662_v22  ;;  %v1528_v42 = vpop.f32.mrb[137].mxu0  ;;  %v1730_v44 = vpack.c.bf16 %v4602_v29, %v4598_v2 }
 0x282   :  { %v1529_v46 = vadd.f32 %v1528_v42, %v5667_v31  ;;  %v1530_v47 = vpop.f32.mrb[138].mxu0 }
 0x283   :  { %4611 = vtanh.f32 %v1527_v40  ;;  %v1531_v52 = vadd.f32 %v1530_v47, %v5662_v22  ;;  %v1532_v51 = vpop.f32.mrb[139].mxu0  ;;  %1921 = vmatprep.mubr.bf16.mxu1 %v1730_v44  ;;  %v4312_v40 = vld [vmem:[#allocation4 + $0x190] sm:$0xff]   ;;  %v4313_v44 = vld [vmem:[#allocation4 + $0x1d8] sm:$0xff]  }
 0x284   :  { %4613 = vtanh.f32 %v1529_v46  ;;  %v1533_v56 = vadd.f32 %v1532_v51, %v5667_v31  ;;  %1922 = vmatmul.mubr.bf16.vlgmr.msra.gmra.mrb[128].mxu1 %v1729_v33 }
 0x285   :  { %v4604_v57 = vpop.eup %4603  ;;  %4615 = vtanh.f32 %v1531_v52  ;;  %3985 = vmatpush3.bf16.msra.mxu1 %v4308_v25  ;;  %3592 = vmatmul.mubr.msk.bf16.gmra.mrb[244].mxu0 %vm195_vm0, %v5547_v16  ;;  %v4314_v52 = vld [vmem:[#allocation4 + $0x198] sm:$0xff]  }
 0x286   :  { %v4606_v5 = vpop.eup %4605  ;;  %4617 = vtanh.f32 %v1533_v56  ;;  %2290 = vmatprep.mubr.bf16.mxu0 %v5060_v0  ;;  %3986 = vmatprep.subr.bf16.mxu1 %v4309_v48  ;;  %v4315_v56 = vld [vmem:[#allocation4 + $0x1e0] sm:$0xff]  }
 0x287   :  { %v4608_v20 = vpop.eup %4607 }
 0x288   :  { %v4610_v23 = vpop.eup %4609  ;;  %v1536_v2 = vpop.f32.mrb[140].mxu0  ;;  %v1731_v24 = vpack.c.bf16 %v4608_v20, %v4604_v57 }
 0x289   :  { %v1537_v29 = vadd.f32 %v1536_v2, %v5662_v22  ;;  %v1538_v32 = vpop.f32.mrb[141].mxu0  ;;  %v1732_v33 = vpack.c.bf16 %v4610_v23, %v4606_v5  ;;  %3987 = vmatpush3.bf16.msra.mxu1 %v4310_v58 }
 0x28a   :  { %v1539_v42 = vadd.f32 %v1538_v32, %v5667_v31  ;;  %v1540_v16 = vpop.f32.mrb[142].mxu0  ;;  %3988 = vmatprep.subr.bf16.mxu1 %v4311_v11  ;;  %v4317_v32 = vld [vmem:[#allocation4 + $0x1e8] sm:$0xff]  }
 0x28b   :  { %4619 = vtanh.f32 %v1537_v29  ;;  %v1541_v25 = vadd.f32 %v1540_v16, %v5662_v22  ;;  %v1542_v46 = vpop.f32.mrb[143].mxu0  ;;  %1929 = vmatprep.mubr.bf16.mxu1 %v1732_v33 }
 0x28c   :  { %4621 = vtanh.f32 %v1539_v42  ;;  %v1543_v47 = vadd.f32 %v1542_v46, %v5667_v31  ;;  %1930 = vmatmul.mubr.bf16.gmra.mrb[132].mxu1 %v1731_v24  ;;  %v4316_v24 = vld [vmem:[#allocation4 + $0x1a0] sm:$0xff]   ;;  %v4319_v46 = vld [vmem:[#allocation4 + $0x1f0] sm:$0xff]  }
 0x28d   :  { %v4612_v48 = vpop.eup %4611  ;;  %4623 = vtanh.f32 %v1541_v25  ;;  %3593 = vmatmul.mubr.msk.bf16.gmra.mrb[248].mxu0 %vm195_vm0, %v5559_v37  ;;  %3989 = vmatpush3.bf16.msra.mxu1 %v4312_v40 }
 0x28e   :  { %v4614_v51 = vpop.eup %4613  ;;  %4625 = vtanh.f32 %v1543_v47  ;;  %2300 = vmatprep.mubr.bf16.mxu0 %v5060_v0  ;;  %3990 = vmatprep.subr.bf16.mxu1 %v4313_v44  ;;  %v4318_v44 = vld [vmem:[#allocation4 + $0x1a8] sm:$0xff]  }
 0x28f   :  { %v4616_v57 = vpop.eup %4615 }
 0x290   :  { %v4618_v58 = vpop.eup %4617  ;;  %v1546_v5 = vpop.f32.mrb[144].mxu0  ;;  %v1733_v11 = vpack.c.bf16 %v4616_v57, %v4612_v48 }
 0x291   :  { %v1547_v20 = vadd.f32 %v1546_v5, %v5662_v22  ;;  %v1548_v23 = vpop.f32.mrb[145].mxu0  ;;  %v1734_v2 = vpack.c.bf16 %v4618_v58, %v4614_v51  ;;  %3991 = vmatpush3.bf16.msra.mxu1 %v4314_v52  ;;  %v4320_v5 = vld [vmem:[#allocation4 + $0x1b0] sm:$0xff]  }
 0x292   :  { %v1549_v37 = vadd.f32 %v1548_v23, %v5667_v31  ;;  %v1550_v29 = vpop.f32.mrb[146].mxu0  ;;  %3992 = vmatprep.subr.bf16.mxu1 %v4315_v56 }
 0x293   :  { %4627 = vtanh.f32 %v1547_v20  ;;  %v1551_v33 = vadd.f32 %v1550_v29, %v5662_v22  ;;  %v1552_v40 = vpop.f32.mrb[147].mxu0  ;;  %1937 = vmatprep.mubr.bf16.mxu1 %v1734_v2  ;;  %v4321_v20 = vld [vmem:[#allocation4 + $0x1f8] sm:$0xff]  }
 0x294   :  { %4629 = vtanh.f32 %v1549_v37  ;;  %v1553_v42 = vadd.f32 %v1552_v40, %v5667_v31  ;;  %1938 = vmatmul.mubr.bf16.gmra.mrb[136].mxu1 %v1733_v11  ;;  %v4322_v29 = vld [vmem:[#allocation4 + $0x1b8] sm:$0xff]  }
 0x295   :  { %v4620_v16 = vpop.eup %4619  ;;  %4631 = vtanh.f32 %v1551_v33  ;;  %3594 = vmatmul.mubr.msk.bf16.gmra.mrb[252].mxu0 %vm195_vm0, %v5571_v54  ;;  %3993 = vmatpush3.bf16.msra.mxu1 %v4316_v24  ;;  %v4323_v33 = vld [vmem:[#allocation4 + $0x240] sm:$0xff]  }
 0x296   :  { %v4622_v25 = vpop.eup %4621  ;;  %4633 = vtanh.f32 %v1553_v42  ;;  %2796 = vmatprep.mubr.bf16.mxu0 %v5060_v0  ;;  %3994 = vmatprep.subr.bf16.mxu1 %v4317_v32 }
 0x297   :  { %v4624_v47 = vpop.eup %4623 }
 0x298   :  { %v4626_v48 = vpop.eup %4625  ;;  %v1556_v52 = vpop.f32.mrb[148].mxu0  ;;  %v1735_v51 = vpack.c.bf16 %v4624_v47, %v4620_v16 }
 0x299   :  { %v1557_v56 = vadd.f32 %v1556_v52, %v5662_v22  ;;  %v1558_v57 = vpop.f32.mrb[149].mxu0  ;;  %v1736_v58 = vpack.c.bf16 %v4626_v48, %v4622_v25  ;;  %3995 = vmatpush3.bf16.msra.mxu1 %v4318_v44 }
 0x29a   :  { %v1559_v54 = vadd.f32 %v1558_v57, %v5667_v31  ;;  %v1560_v11 = vpop.f32.mrb[150].mxu0  ;;  %3996 = vmatprep.subr.bf16.mxu1 %v4319_v46 }
 0x29b   :  { %4635 = vtanh.f32 %v1557_v56  ;;  %v1561_v23 = vadd.f32 %v1560_v11, %v5662_v22  ;;  %v1562_v2 = vpop.f32.mrb[151].mxu0  ;;  %1945 = vmatprep.mubr.bf16.mxu1 %v1736_v58 }
 0x29c   :  { %4637 = vtanh.f32 %v1559_v54  ;;  %v1563_v24 = vadd.f32 %v1562_v2, %v5667_v31  ;;  %1946 = vmatmul.mubr.bf16.gmra.mrb[140].mxu1 %v1735_v51 }
 0x29d   :  { %v4628_v37 = vpop.eup %4627  ;;  %4639 = vtanh.f32 %v1561_v23  ;;  %3615 = vmatmul.mubr.msk.bf16.vlgmr.msra.gmra.mrb[0].mxu0 %vm195_vm0, %v5427_v61  ;;  %3997 = vmatpush3.bf16.msra.mxu1 %v4320_v5 }
 0x29e   :  { %v4630_v32 = vpop.eup %4629  ;;  %4641 = vtanh.f32 %v1563_v24  ;;  %2806 = vmatprep.mubr.bf16.mxu0 %v5060_v0  ;;  %3998 = vmatprep.subr.bf16.mxu1 %v4321_v20 }
 0x29f   :  { %v4632_v40 = vpop.eup %4631 }
 0x2a0   :  { %v4634_v42 = vpop.eup %4633  ;;  %v1566_v16 = vpop.f32.mrb[152].mxu0  ;;  %v1737_v44 = vpack.c.bf16 %v4632_v40, %v4628_v37 }
 0x2a1   :  { %v1567_v25 = vadd.f32 %v1566_v16, %v5662_v22  ;;  %v1568_v46 = vpop.f32.mrb[153].mxu0  ;;  %v1738_v47 = vpack.c.bf16 %v4634_v42, %v4630_v32  ;;  %3999 = vmatpush3.bf16.msra.mxu1 %v4322_v29 }
 0x2a2   :  { %v1569_v48 = vadd.f32 %v1568_v46, %v5667_v31  ;;  %v1570_v61 = vpop.f32.mrb[154].mxu0  ;;  %4096 = vmatprep.subr.bf16.mxu1 %v4323_v33 }
 0x2a3   :  { %4643 = vtanh.f32 %v1567_v25  ;;  %v1571_v52 = vadd.f32 %v1570_v61, %v5662_v22  ;;  %v1572_v51 = vpop.f32.mrb[155].mxu0  ;;  %1953 = vmatprep.mubr.bf16.mxu1 %v1738_v47 }
 0x2a4   :  { %4645 = vtanh.f32 %v1569_v48  ;;  %v1573_v56 = vadd.f32 %v1572_v51, %v5667_v31  ;;  %1954 = vmatmul.mubr.bf16.gmra.mrb[144].mxu1 %v1737_v44 }
 0x2a5   :  { %v4636_v57 = vpop.eup %4635  ;;  %4647 = vtanh.f32 %v1571_v52  ;;  %3616 = vmatmul.mubr.msk.bf16.gmra.mrb[4].mxu0 %vm195_vm0, %v5441_v6 }
 0x2a6   :  { %v4638_v58 = vpop.eup %4637  ;;  %4649 = vtanh.f32 %v1573_v56  ;;  %2816 = vmatprep.mubr.bf16.mxu0 %v5060_v0 }
 0x2a7   :  { %v4640_v5 = vpop.eup %4639 }
 0x2a8   :  { %v4642_v54 = vpop.eup %4641  ;;  %v1576_v11 = vpop.f32.mrb[156].mxu0  ;;  %v1739_v20 = vpack.c.bf16 %v4640_v5, %v4636_v57  ;;  %v4995_v5 = vld [vmem:[%s6319_s0 + $0x18] sm:$0xff]  }
 0x2a9   :  { %v1577_v23 = vadd.f32 %v1576_v11, %v5662_v22  ;;  %v1578_v2 = vpop.f32.mrb[157].mxu0  ;;  %v1740_v24 = vpack.c.bf16 %v4642_v54, %v4638_v58 }
 0x2aa   :  { %v1579_v37 = vadd.f32 %v1578_v2, %v5667_v31  ;;  %v1580_v29 = vpop.f32.mrb[158].mxu0 }
 0x2ab   :  { %4651 = vtanh.f32 %v1577_v23  ;;  %v1581_v32 = vadd.f32 %v1580_v29, %v5662_v22  ;;  %v1582_v33 = vpop.f32.mrb[159].mxu0  ;;  %1961 = vmatprep.mubr.bf16.mxu1 %v1740_v24 }
 0x2ac   :  { %4653 = vtanh.f32 %v1579_v37  ;;  %v1583_v6 = vadd.f32 %v1582_v33, %v5667_v31  ;;  %1962 = vmatmul.mubr.bf16.gmra.mrb[148].mxu1 %v1739_v20 }
 0x2ad   :  { %v4644_v40 = vpop.eup %4643  ;;  %4655 = vtanh.f32 %v1581_v32  ;;  %3617 = vmatmul.mubr.msk.bf16.gmra.mrb[8].mxu0 %vm195_vm0, %v5449_v9 }
 0x2ae   :  { %v4646_v42 = vpop.eup %4645  ;;  %4657 = vtanh.f32 %v1583_v6  ;;  %2826 = vmatprep.mubr.bf16.mxu0 %v5060_v0 }
 0x2af   :  { %v4648_v16 = vpop.eup %4647 }
 0x2b0   :  { %v4650_v44 = vpop.eup %4649  ;;  %v1586_v25 = vpop.f32.mrb[160].mxu0  ;;  %v1741_v46 = vpack.c.bf16 %v4648_v16, %v4644_v40 }
 0x2b1   :  { %v1587_v47 = vadd.f32 %v1586_v25, %v5662_v22  ;;  %v1588_v48 = vpop.f32.mrb[161].mxu0  ;;  %v1742_v61 = vpack.c.bf16 %v4650_v44, %v4646_v42  ;;  %v4996_v44 = vld [vmem:[%s6319_s0 + $0x20] sm:$0xff]  }
 0x2b2   :  { %v1589_v52 = vadd.f32 %v1588_v48, %v5667_v31  ;;  %v1590_v51 = vpop.f32.mrb[162].mxu0 }
 0x2b3   :  { %4659 = vtanh.f32 %v1587_v47  ;;  %v1591_v56 = vadd.f32 %v1590_v51, %v5662_v22  ;;  %v1592_v57 = vpop.f32.mrb[163].mxu0  ;;  %1969 = vmatprep.mubr.bf16.mxu1 %v1742_v61 }
 0x2b4   :  { %4661 = vtanh.f32 %v1589_v52  ;;  %v1593_v9 = vadd.f32 %v1592_v57, %v5667_v31  ;;  %1970 = vmatmul.mubr.bf16.gmra.mrb[152].mxu1 %v1741_v46 }
 0x2b5   :  { %v4652_v58 = vpop.eup %4651  ;;  %4663 = vtanh.f32 %v1591_v56  ;;  %3618 = vmatmul.mubr.msk.bf16.gmra.mrb[12].mxu0 %vm195_vm0, %v4995_v5 }
 0x2b6   :  { %v4654_v54 = vpop.eup %4653  ;;  %4665 = vtanh.f32 %v1593_v9  ;;  %2836 = vmatprep.mubr.bf16.mxu0 %v5060_v0 }
 0x2b7   :  { %v4656_v11 = vpop.eup %4655 }
 0x2b8   :  { %v4658_v20 = vpop.eup %4657  ;;  %v1596_v23 = vpop.f32.mrb[164].mxu0  ;;  %v1743_v2 = vpack.c.bf16 %v4656_v11, %v4652_v58 }
 0x2b9   :  { %v1597_v24 = vadd.f32 %v1596_v23, %v5662_v22  ;;  %v1598_v37 = vpop.f32.mrb[165].mxu0  ;;  %v1744_v29 = vpack.c.bf16 %v4658_v20, %v4654_v54  ;;  %v4997_v20 = vld [vmem:[%s6319_s0 + $0x28] sm:$0xff]  }
 0x2ba   :  { %v1599_v32 = vadd.f32 %v1598_v37, %v5667_v31  ;;  %v1600_v33 = vpop.f32.mrb[166].mxu0 }
 0x2bb   :  { %4667 = vtanh.f32 %v1597_v24  ;;  %v1601_v6 = vadd.f32 %v1600_v33, %v5662_v22  ;;  %v1602_v40 = vpop.f32.mrb[167].mxu0  ;;  %1977 = vmatprep.mubr.bf16.mxu1 %v1744_v29 }
 0x2bc   :  { %4669 = vtanh.f32 %v1599_v32  ;;  %v1603_v42 = vadd.f32 %v1602_v40, %v5667_v31  ;;  %1978 = vmatmul.mubr.bf16.gmra.mrb[156].mxu1 %v1743_v2 }
 0x2bd   :  { %v4660_v16 = vpop.eup %4659  ;;  %4671 = vtanh.f32 %v1601_v6  ;;  %3619 = vmatmul.mubr.msk.bf16.gmra.mrb[16].mxu0 %vm195_vm0, %v4996_v44 }
 0x2be   :  { %v4662_v25 = vpop.eup %4661  ;;  %4673 = vtanh.f32 %v1603_v42  ;;  %2846 = vmatprep.mubr.bf16.mxu0 %v5060_v0 }
 0x2bf   :  { %v4664_v46 = vpop.eup %4663 }
 0x2c0   :  { %v4666_v47 = vpop.eup %4665  ;;  %v1606_v48 = vpop.f32.mrb[168].mxu0  ;;  %v1745_v61 = vpack.c.bf16 %v4664_v46, %v4660_v16 }
 0x2c1   :  { %v1607_v52 = vadd.f32 %v1606_v48, %v5662_v22  ;;  %v1608_v51 = vpop.f32.mrb[169].mxu0  ;;  %v1746_v56 = vpack.c.bf16 %v4666_v47, %v4662_v25  ;;  %v4998_v47 = vld [vmem:[%s6319_s0 + $0x30] sm:$0xff]  }
 0x2c2   :  { %v1609_v57 = vadd.f32 %v1608_v51, %v5667_v31  ;;  %v1610_v9 = vpop.f32.mrb[170].mxu0 }
 0x2c3   :  { %4675 = vtanh.f32 %v1607_v52  ;;  %v1611_v58 = vadd.f32 %v1610_v9, %v5662_v22  ;;  %v1612_v5 = vpop.f32.mrb[171].mxu0  ;;  %1985 = vmatprep.mubr.bf16.mxu1 %v1746_v56 }
 0x2c4   :  { %4677 = vtanh.f32 %v1609_v57  ;;  %v1613_v54 = vadd.f32 %v1612_v5, %v5667_v31  ;;  %1986 = vmatmul.mubr.bf16.gmra.mrb[160].mxu1 %v1745_v61 }
 0x2c5   :  { %v4668_v11 = vpop.eup %4667  ;;  %4679 = vtanh.f32 %v1611_v58  ;;  %3620 = vmatmul.mubr.msk.bf16.gmra.mrb[20].mxu0 %vm195_vm0, %v4997_v20 }
 0x2c6   :  { %v4670_v23 = vpop.eup %4669  ;;  %4681 = vtanh.f32 %v1613_v54  ;;  %2856 = vmatprep.mubr.bf16.mxu0 %v5060_v0 }
 0x2c7   :  { %v4672_v2 = vpop.eup %4671 }
 0x2c8   :  { %v4674_v24 = vpop.eup %4673  ;;  %v1616_v37 = vpop.f32.mrb[172].mxu0  ;;  %v1747_v29 = vpack.c.bf16 %v4672_v2, %v4668_v11 }
 0x2c9   :  { %v1617_v32 = vadd.f32 %v1616_v37, %v5662_v22  ;;  %v1618_v33 = vpop.f32.mrb[173].mxu0  ;;  %v1748_v6 = vpack.c.bf16 %v4674_v24, %v4670_v23  ;;  %v4999_v24 = vld [vmem:[%s6319_s0 + $0x38] sm:$0xff]  }
 0x2ca   :  { %v1619_v40 = vadd.f32 %v1618_v33, %v5667_v31  ;;  %v1620_v42 = vpop.f32.mrb[174].mxu0 }
 0x2cb   :  { %4683 = vtanh.f32 %v1617_v32  ;;  %v1621_v16 = vadd.f32 %v1620_v42, %v5662_v22  ;;  %v1622_v44 = vpop.f32.mrb[175].mxu0  ;;  %1993 = vmatprep.mubr.bf16.mxu1 %v1748_v6 }
 0x2cc   :  { %4685 = vtanh.f32 %v1619_v40  ;;  %v1623_v25 = vadd.f32 %v1622_v44, %v5667_v31  ;;  %1994 = vmatmul.mubr.bf16.gmra.mrb[164].mxu1 %v1747_v29 }
 0x2cd   :  { %v4676_v46 = vpop.eup %4675  ;;  %4687 = vtanh.f32 %v1621_v16  ;;  %3621 = vmatmul.mubr.msk.bf16.gmra.mrb[24].mxu0 %vm195_vm0, %v4998_v47 }
 0x2ce   :  { %v4678_v48 = vpop.eup %4677  ;;  %4689 = vtanh.f32 %v1623_v25  ;;  %2866 = vmatprep.mubr.bf16.mxu0 %v5060_v0 }
 0x2cf   :  { %v4680_v61 = vpop.eup %4679 }
 0x2d0   :  { %v4682_v52 = vpop.eup %4681  ;;  %v1626_v51 = vpop.f32.mrb[176].mxu0  ;;  %v1749_v56 = vpack.c.bf16 %v4680_v61, %v4676_v46 }
 0x2d1   :  { %v1627_v57 = vadd.f32 %v1626_v51, %v5662_v22  ;;  %v1628_v9 = vpop.f32.mrb[177].mxu0  ;;  %v1750_v58 = vpack.c.bf16 %v4682_v52, %v4678_v48  ;;  %v5000_v52 = vld [vmem:[%s6319_s0 + $0x40] sm:$0xff]  }
 0x2d2   :  { %v1629_v5 = vadd.f32 %v1628_v9, %v5667_v31  ;;  %v1630_v54 = vpop.f32.mrb[178].mxu0 }
 0x2d3   :  { %4691 = vtanh.f32 %v1627_v57  ;;  %v1631_v11 = vadd.f32 %v1630_v54, %v5662_v22  ;;  %v1632_v20 = vpop.f32.mrb[179].mxu0  ;;  %2001 = vmatprep.mubr.bf16.mxu1 %v1750_v58 }
 0x2d4   :  { %4693 = vtanh.f32 %v1629_v5  ;;  %v1633_v23 = vadd.f32 %v1632_v20, %v5667_v31  ;;  %2002 = vmatmul.mubr.bf16.gmra.mrb[168].mxu1 %v1749_v56 }
 0x2d5   :  { %v4684_v2 = vpop.eup %4683  ;;  %4695 = vtanh.f32 %v1631_v11  ;;  %3622 = vmatmul.mubr.msk.bf16.gmra.mrb[28].mxu0 %vm195_vm0, %v4999_v24 }
 0x2d6   :  { %v4686_v37 = vpop.eup %4685  ;;  %4697 = vtanh.f32 %v1633_v23  ;;  %2876 = vmatprep.mubr.bf16.mxu0 %v5060_v0 }
 0x2d7   :  { %v4688_v29 = vpop.eup %4687 }
 0x2d8   :  { %v4690_v32 = vpop.eup %4689  ;;  %v1636_v33 = vpop.f32.mrb[180].mxu0  ;;  %v1751_v6 = vpack.c.bf16 %v4688_v29, %v4684_v2 }
 0x2d9   :  { %v1637_v40 = vadd.f32 %v1636_v33, %v5662_v22  ;;  %v1638_v42 = vpop.f32.mrb[181].mxu0  ;;  %v1752_v16 = vpack.c.bf16 %v4690_v32, %v4686_v37  ;;  %v5001_v32 = vld [vmem:[%s6319_s0 + $0x48] sm:$0xff]  }
 0x2da   :  { %v1639_v44 = vadd.f32 %v1638_v42, %v5667_v31  ;;  %v1640_v25 = vpop.f32.mrb[182].mxu0 }
 0x2db   :  { %4699 = vtanh.f32 %v1637_v40  ;;  %v1641_v46 = vadd.f32 %v1640_v25, %v5662_v22  ;;  %v1642_v47 = vpop.f32.mrb[183].mxu0  ;;  %2009 = vmatprep.mubr.bf16.mxu1 %v1752_v16 }
 0x2dc   :  { %4701 = vtanh.f32 %v1639_v44  ;;  %v1643_v48 = vadd.f32 %v1642_v47, %v5667_v31  ;;  %2010 = vmatmul.mubr.bf16.gmra.mrb[172].mxu1 %v1751_v6 }
 0x2dd   :  { %v4692_v61 = vpop.eup %4691  ;;  %4703 = vtanh.f32 %v1641_v46  ;;  %3623 = vmatmul.mubr.msk.bf16.gmra.mrb[32].mxu0 %vm195_vm0, %v5000_v52 }
 0x2de   :  { %v4694_v51 = vpop.eup %4693  ;;  %4705 = vtanh.f32 %v1643_v48  ;;  %2886 = vmatprep.mubr.bf16.mxu0 %v5060_v0 }
 0x2df   :  { %v4696_v56 = vpop.eup %4695 }
 0x2e0   :  { %v4698_v57 = vpop.eup %4697  ;;  %v1646_v9 = vpop.f32.mrb[184].mxu0  ;;  %v1753_v58 = vpack.c.bf16 %v4696_v56, %v4692_v61  ;;  %v2086_v61 = vld [vmem:[#allocation2 + $0x6] sm:$0x3] }
 0x2e1   :  { %v1647_v5 = vadd.f32 %v1646_v9, %v5662_v22  ;;  %v1648_v54 = vpop.f32.mrb[185].mxu0  ;;  %v1754_v11 = vpack.c.bf16 %v4698_v57, %v4694_v51  ;;  %v5002_v9 = vld [vmem:[%s6319_s0 + $0x50] sm:$0xff]  }
 0x2e2   :  { %v1649_v20 = vadd.f32 %v1648_v54, %v5667_v31  ;;  %v1650_v23 = vpop.f32.mrb[186].mxu0 }
 0x2e3   :  { %4707 = vtanh.f32 %v1647_v5  ;;  %v1651_v2 = vadd.f32 %v1650_v23, %v5662_v22  ;;  %v1652_v24 = vpop.f32.mrb[187].mxu0  ;;  %2017 = vmatprep.mubr.bf16.mxu1 %v1754_v11 }
 0x2e4   :  { %4709 = vtanh.f32 %v1649_v20  ;;  %v1653_v37 = vadd.f32 %v1652_v24, %v5667_v31  ;;  %2018 = vmatmul.mubr.bf16.gmra.mrb[176].mxu1 %v1753_v58  ;;  %v5798_v58 = vrot.slane %v2086_v61, %v5261_v60 }
 0x2e5   :  { %v4700_v29 = vpop.eup %4699  ;;  %4711 = vtanh.f32 %v1651_v2  ;;  %3624 = vmatmul.mubr.msk.bf16.gmra.mrb[36].mxu0 %vm195_vm0, %v5001_v32 }
 0x2e6   :  { %v4702_v33 = vpop.eup %4701  ;;  %4713 = vtanh.f32 %v1653_v37  ;;  %2896 = vmatprep.mubr.bf16.mxu0 %v5060_v0 }
 0x2e7   :  { %v4704_v6 = vpop.eup %4703 }
 0x2e8   :  { %v4706_v40 = vpop.eup %4705  ;;  %v1656_v42 = vpop.f32.mrb[188].mxu0  ;;  %v1755_v16 = vpack.c.bf16 %v4704_v6, %v4700_v29 }
 0x2e9   :  { %v1657_v44 = vadd.f32 %v1656_v42, %v5662_v22  ;;  %v1658_v25 = vpop.f32.mrb[189].mxu0  ;;  %v1756_v46 = vpack.c.bf16 %v4706_v40, %v4702_v33  ;;  %v5003_v42 = vld [vmem:[%s6319_s0 + $0x58] sm:$0xff]  }
 0x2ea   :  { %v1659_v47 = vadd.f32 %v1658_v25, %v5667_v31  ;;  %v1660_v48 = vpop.f32.mrb[190].mxu0 }
 0x2eb   :  { %4715 = vtanh.f32 %v1657_v44  ;;  %v1661_v52 = vadd.f32 %v1660_v48, %v5662_v22  ;;  %v1662_v51 = vpop.f32.mrb[191].mxu0  ;;  %2025 = vmatprep.mubr.bf16.mxu1 %v1756_v46  ;;  %v5801_v22 = vrot.slane %v2086_v61, %v5263_v63 }
 0x2ec   :  { %4717 = vtanh.f32 %v1659_v47  ;;  %v1663_v56 = vadd.f32 %v1662_v51, %v5667_v31  ;;  %2026 = vmatmul.mubr.bf16.gmra.mrb[180].mxu1 %v1755_v16 }
 0x2ed   :  { %v4708_v57 = vpop.eup %4707  ;;  %4719 = vtanh.f32 %v1661_v52  ;;  %3625 = vmatmul.mubr.msk.bf16.gmra.mrb[40].mxu0 %vm195_vm0, %v5002_v9 }
 0x2ee   :  { %v4710_v5 = vpop.eup %4709  ;;  %4721 = vtanh.f32 %v1663_v56  ;;  %2906 = vmatprep.mubr.bf16.mxu0 %v5060_v0 }
 0x2ef   :  { %v4712_v31 = vpop.eup %4711 }
 0x2f0   :  { %v4714_v54 = vpop.eup %4713  ;;  %v2152_v11 = vpop.f32.mrb[192].mxu0  ;;  %v1757_v20 = vpack.c.bf16 %v4712_v31, %v4708_v57 }
 0x2f1   :  { %v2153_v23 = vadd.f32 %v2152_v11, %v5798_v58  ;;  %v2154_v2 = vpop.f32.mrb[193].mxu0  ;;  %v1758_v24 = vpack.c.bf16 %v4714_v54, %v4710_v5  ;;  %v5004_v54 = vld [vmem:[%s6319_s0 + $0x60] sm:$0xff]  }
 0x2f2   :  { %v2155_v37 = vadd.f32 %v2154_v2, %v5801_v22  ;;  %v2156_v29 = vpop.f32.mrb[194].mxu0 }
 0x2f3   :  { %4723 = vtanh.f32 %v2153_v23  ;;  %v2157_v32 = vadd.f32 %v2156_v29, %v5798_v58  ;;  %2033 = vmatprep.mubr.bf16.mxu1 %v1758_v24  ;;  %v2158_v33 = vpop.f32.mrb[195].mxu0 }
 0x2f4   :  { %4725 = vtanh.f32 %v2155_v37  ;;  %v2159_v6 = vadd.f32 %v2158_v33, %v5801_v22  ;;  %2034 = vmatmul.mubr.bf16.gmra.mrb[184].mxu1 %v1757_v20  ;;  %v4324_v33 = vld [vmem:[#allocation4 + $0x200] sm:$0xff]  }
 0x2f5   :  { %v4716_v40 = vpop.eup %4715  ;;  %4727 = vtanh.f32 %v2157_v32  ;;  %3626 = vmatmul.mubr.msk.bf16.gmra.mrb[44].mxu0 %vm195_vm0, %v5003_v42  ;;  %v4325_v42 = vld [vmem:[#allocation4 + $0x248] sm:$0xff]  }
 0x2f6   :  { %v4718_v16 = vpop.eup %4717  ;;  %4729 = vtanh.f32 %v2159_v6  ;;  %2916 = vmatprep.mubr.bf16.mxu0 %v5060_v0 }
 0x2f7   :  { %v4720_v44 = vpop.eup %4719 }
 0x2f8   :  { %v4722_v25 = vpop.eup %4721  ;;  %v2162_v46 = vpop.f32.mrb[196].mxu0  ;;  %v1759_v47 = vpack.c.bf16 %v4720_v44, %v4716_v40 }
 0x2f9   :  { %v2163_v48 = vadd.f32 %v2162_v46, %v5798_v58  ;;  %v2164_v61 = vpop.f32.mrb[197].mxu0  ;;  %v1760_v52 = vpack.c.bf16 %v4722_v25, %v4718_v16 }
 0x2fa   :  { %v2165_v51 = vadd.f32 %v2164_v61, %v5801_v22  ;;  %v2166_v56 = vpop.f32.mrb[198].mxu0 }
 0x2fb   :  { %4731 = vtanh.f32 %v2163_v48  ;;  %v2167_v57 = vadd.f32 %v2166_v56, %v5798_v58  ;;  %2041 = vmatprep.mubr.bf16.mxu1 %v1760_v52  ;;  %v2168_v9 = vpop.f32.mrb[199].mxu0  ;;  %v4326_v48 = vld [vmem:[#allocation4 + $0x208] sm:$0xff]   ;;  %v4327_v52 = vld [vmem:[#allocation4 + $0x250] sm:$0xff]  }
 0x2fc   :  { %4733 = vtanh.f32 %v2165_v51  ;;  %v2169_v5 = vadd.f32 %v2168_v9, %v5801_v22  ;;  %2042 = vmatmul.mubr.bf16.gmra.mrb[188].mxu1 %v1759_v47  ;;  %v5005_v47 = vld [vmem:[%s6319_s0 + $0x68] sm:$0xff]  }
 0x2fd   :  { %v4724_v31 = vpop.eup %4723  ;;  %4735 = vtanh.f32 %v2167_v57  ;;  %3627 = vmatmul.mubr.msk.bf16.gmra.mrb[48].mxu0 %vm195_vm0, %v5004_v54 }
 0x2fe   :  { %v4726_v11 = vpop.eup %4725  ;;  %4737 = vtanh.f32 %v2169_v5  ;;  %2926 = vmatprep.mubr.bf16.mxu0 %v5060_v0 }
 0x2ff   :  { %v4728_v20 = vpop.eup %4727 }
 0x300   :  { %v4730_v23 = vpop.eup %4729  ;;  %v2172_v2 = vpop.f32.mrb[200].mxu0  ;;  %v2375_v24 = vpack.c.bf16 %v4728_v20, %v4724_v31 }
 0x301   :  { %v2173_v37 = vadd.f32 %v2172_v2, %v5798_v58  ;;  %v2174_v29 = vpop.f32.mrb[201].mxu0  ;;  %v2376_v32 = vpack.c.bf16 %v4730_v23, %v4726_v11  ;;  %v4328_v11 = vld [vmem:[#allocation4 + $0x210] sm:$0xff]   ;;  %v4329_v2 = vld [vmem:[#allocation4 + $0x258] sm:$0xff]  }
 0x302   :  { %v2175_v6 = vadd.f32 %v2174_v29, %v5801_v22  ;;  %v2176_v40 = vpop.f32.mrb[202].mxu0 }
 0x303   :  { %4739 = vtanh.f32 %v2173_v37  ;;  %v2177_v16 = vadd.f32 %v2176_v40, %v5798_v58  ;;  %v2178_v44 = vpop.f32.mrb[203].mxu0  ;;  %2567 = vmatprep.mubr.bf16.mxu1 %v2376_v32 }
 0x304   :  { %4741 = vtanh.f32 %v2175_v6  ;;  %v2179_v25 = vadd.f32 %v2178_v44, %v5801_v22  ;;  %2568 = vmatmul.mubr.bf16.vlgmr.msra.gmra.mrb[192].mxu1 %v2375_v24  ;;  %v4330_v6 = vld [vmem:[#allocation4 + $0x218] sm:$0xff]  }
 0x305   :  { %v4732_v46 = vpop.eup %4731  ;;  %4743 = vtanh.f32 %v2177_v16  ;;  %4097 = vmatpush3.bf16.msra.mxu1 %v4324_v33  ;;  %3628 = vmatmul.mubr.msk.bf16.gmra.mrb[52].mxu0 %vm195_vm0, %v5005_v47  ;;  %v5006_v33 = vld [vmem:[%s6319_s0 + $0x70] sm:$0xff]  }
 0x306   :  { %v4734_v61 = vpop.eup %4733  ;;  %4745 = vtanh.f32 %v2179_v25  ;;  %2936 = vmatprep.mubr.bf16.mxu0 %v5060_v0  ;;  %4098 = vmatprep.subr.bf16.mxu1 %v4325_v42  ;;  %v4331_v42 = vld [vmem:[#allocation4 + $0x260] sm:$0xff]  }
 0x307   :  { %v4736_v51 = vpop.eup %4735 }
 0x308   :  { %v4738_v56 = vpop.eup %4737  ;;  %v2182_v57 = vpop.f32.mrb[204].mxu0  ;;  %v2377_v9 = vpack.c.bf16 %v4736_v51, %v4732_v46 }
 0x309   :  { %v2183_v5 = vadd.f32 %v2182_v57, %v5798_v58  ;;  %v2184_v31 = vpop.f32.mrb[205].mxu0  ;;  %v2378_v54 = vpack.c.bf16 %v4738_v56, %v4734_v61  ;;  %4099 = vmatpush3.bf16.msra.mxu1 %v4326_v48  ;;  %v4333_v57 = vld [vmem:[#allocation4 + $0x268] sm:$0xff]  }
 0x30a   :  { %v2185_v20 = vadd.f32 %v2184_v31, %v5801_v22  ;;  %v2186_v23 = vpop.f32.mrb[206].mxu0  ;;  %4100 = vmatprep.subr.bf16.mxu1 %v4327_v52  ;;  %v4332_v52 = vld [vmem:[#allocation4 + $0x220] sm:$0xff]  }
 0x30b   :  { %4747 = vtanh.f32 %v2183_v5  ;;  %v2187_v24 = vadd.f32 %v2186_v23, %v5798_v58  ;;  %v2188_v37 = vpop.f32.mrb[207].mxu0  ;;  %2575 = vmatprep.mubr.bf16.mxu1 %v2378_v54  ;;  %v5007_v54 = vld [vmem:[%s6319_s0 + $0x78] sm:$0xff]  }
 0x30c   :  { %4749 = vtanh.f32 %v2185_v20  ;;  %v2189_v29 = vadd.f32 %v2188_v37, %v5801_v22  ;;  %2576 = vmatmul.mubr.bf16.gmra.mrb[196].mxu1 %v2377_v9  ;;  %v4335_v23 = vld [vmem:[#allocation4 + $0x270] sm:$0xff]  }
 0x30d   :  { %v4740_v32 = vpop.eup %4739  ;;  %4751 = vtanh.f32 %v2187_v24  ;;  %3629 = vmatmul.mubr.msk.bf16.gmra.mrb[56].mxu0 %vm195_vm0, %v5006_v33  ;;  %4101 = vmatpush3.bf16.msra.mxu1 %v4328_v11  ;;  %v4334_v11 = vld [vmem:[#allocation4 + $0x228] sm:$0xff]  }
 0x30e   :  { %v4742_v40 = vpop.eup %4741  ;;  %4753 = vtanh.f32 %v2189_v29  ;;  %2946 = vmatprep.mubr.bf16.mxu0 %v5060_v0  ;;  %4102 = vmatprep.subr.bf16.mxu1 %v4329_v2 }
 0x30f   :  { %v4744_v16 = vpop.eup %4743 }
 0x310   :  { %v4746_v44 = vpop.eup %4745  ;;  %v2192_v25 = vpop.f32.mrb[208].mxu0  ;;  %v2379_v46 = vpack.c.bf16 %v4744_v16, %v4740_v32 }
 0x311   :  { %v2193_v47 = vadd.f32 %v2192_v25, %v5798_v58  ;;  %v2194_v48 = vpop.f32.mrb[209].mxu0  ;;  %v2380_v61 = vpack.c.bf16 %v4746_v44, %v4742_v40  ;;  %4103 = vmatpush3.bf16.msra.mxu1 %v4330_v6  ;;  %v4336_v40 = vld [vmem:[#allocation4 + $0x230] sm:$0xff]   ;;  %v4337_v44 = vld [vmem:[#allocation4 + $0x278] sm:$0xff]  }
 0x312   :  { %v2195_v51 = vadd.f32 %v2194_v48, %v5801_v22  ;;  %v2196_v56 = vpop.f32.mrb[210].mxu0  ;;  %4104 = vmatprep.subr.bf16.mxu1 %v4331_v42 }
 0x313   :  { %4755 = vtanh.f32 %v2193_v47  ;;  %v2197_v0 = vadd.f32 %v2196_v56, %v5798_v58  ;;  %v2198_v9 = vpop.f32.mrb[211].mxu0  ;;  %2583 = vmatprep.mubr.bf16.mxu1 %v2380_v61  ;;  %v4338_v61 = vld [vmem:[#allocation4 + $0x238] sm:$0xff]  }
 0x314   :  { %4757 = vtanh.f32 %v2195_v51  ;;  %v2199_v5 = vadd.f32 %v2198_v9, %v5801_v22  ;;  %2584 = vmatmul.mubr.bf16.gmra.mrb[200].mxu1 %v2379_v46 }
 0x315   :  { %v4748_v31 = vpop.eup %4747  ;;  %4759 = vtanh.f32 %v2197_v0  ;;  %3630 = vmatmul.mubr.msk.bf16.gmra.mrb[60].mxu0 %vm195_vm0, %v5007_v54  ;;  %4105 = vmatpush3.bf16.msra.mxu1 %v4332_v52 }
 0x316   :  { %v4750_v20 = vpop.eup %4749  ;;  %4761 = vtanh.f32 %v2199_v5  ;;  %4106 = vmatprep.subr.bf16.mxu1 %v4333_v57 }
 0x317   :  { %v4752_v2 = vpop.eup %4751 }
 0x318   :  { %v4754_v24 = vpop.eup %4753  ;;  %v2202_v37 = vpop.f32.mrb[212].mxu0  ;;  %v2381_v29 = vpack.c.bf16 %v4752_v2, %v4748_v31 }
 0x319   :  { %v2203_v32 = vadd.f32 %v2202_v37, %v5798_v58  ;;  %v2204_v33 = vpop.f32.mrb[213].mxu0  ;;  %v2382_v6 = vpack.c.bf16 %v4754_v24, %v4750_v20  ;;  %4107 = vmatpush3.bf16.msra.mxu1 %v4334_v11 }
 0x31a   :  { %v2205_v42 = vadd.f32 %v2204_v33, %v5801_v22  ;;  %v2206_v16 = vpop.f32.mrb[214].mxu0  ;;  %4108 = vmatprep.subr.bf16.mxu1 %v4335_v23 }
 0x31b   :  { %4763 = vtanh.f32 %v2203_v32  ;;  %v2207_v25 = vadd.f32 %v2206_v16, %v5798_v58  ;;  %v2208_v46 = vpop.f32.mrb[215].mxu0  ;;  %2591 = vmatprep.mubr.bf16.mxu1 %v2382_v6 }
 0x31c   :  { %4765 = vtanh.f32 %v2205_v42  ;;  %v2209_v47 = vadd.f32 %v2208_v46, %v5801_v22  ;;  %2592 = vmatmul.mubr.bf16.gmra.mrb[204].mxu1 %v2381_v29 }
 0x31d   :  { %v4756_v48 = vpop.eup %4755  ;;  %4767 = vtanh.f32 %v2207_v25  ;;  %4109 = vmatpush3.bf16.msra.mxu1 %v4336_v40 }
 0x31e   :  { %v4758_v52 = vpop.eup %4757  ;;  %4769 = vtanh.f32 %v2209_v47  ;;  %4110 = vmatprep.subr.bf16.mxu1 %v4337_v44 }
 0x31f   :  { %v4760_v51 = vpop.eup %4759 }
 0x320   :  { %v4762_v56 = vpop.eup %4761  ;;  %v2212_v57 = vpop.f32.mrb[216].mxu0  ;;  %v2383_v0 = vpack.c.bf16 %v4760_v51, %v4756_v48 }
 0x321   :  { %v2213_v9 = vadd.f32 %v2212_v57, %v5798_v58  ;;  %v2214_v5 = vpop.f32.mrb[217].mxu0  ;;  %v2384_v31 = vpack.c.bf16 %v4762_v56, %v4758_v52  ;;  %4111 = vmatpush3.bf16.msra.mxu1 %v4338_v61 }
 0x322   :  { %v2215_v54 = vadd.f32 %v2214_v5, %v5801_v22  ;;  %v2216_v11 = vpop.f32.mrb[218].mxu0 }
 0x323   :  { %4771 = vtanh.f32 %v2213_v9  ;;  %v2217_v20 = vadd.f32 %v2216_v11, %v5798_v58  ;;  %v2218_v23 = vpop.f32.mrb[219].mxu0  ;;  %2599 = vmatprep.mubr.bf16.mxu1 %v2384_v31 }
 0x324   :  { %4773 = vtanh.f32 %v2215_v54  ;;  %v2219_v2 = vadd.f32 %v2218_v23, %v5801_v22  ;;  %2600 = vmatmul.mubr.bf16.gmra.mrb[208].mxu1 %v2383_v0 }
 0x325   :  { %v4764_v24 = vpop.eup %4763  ;;  %4775 = vtanh.f32 %v2217_v20 }
 0x326   :  { %v4766_v37 = vpop.eup %4765  ;;  %4777 = vtanh.f32 %v2219_v2 }
 0x327   :  { %v4768_v29 = vpop.eup %4767 }
 0x328   :  { %v4770_v32 = vpop.eup %4769  ;;  %v2222_v33 = vpop.f32.mrb[220].mxu0  ;;  %v2385_v6 = vpack.c.bf16 %v4768_v29, %v4764_v24 }
 0x329   :  { %v2223_v40 = vadd.f32 %v2222_v33, %v5798_v58  ;;  %v2224_v42 = vpop.f32.mrb[221].mxu0  ;;  %v2386_v16 = vpack.c.bf16 %v4770_v32, %v4766_v37 }
 0x32a   :  { %v2225_v44 = vadd.f32 %v2224_v42, %v5801_v22  ;;  %v2226_v25 = vpop.f32.mrb[222].mxu0 }
 0x32b   :  { %4779 = vtanh.f32 %v2223_v40  ;;  %v2227_v46 = vadd.f32 %v2226_v25, %v5798_v58  ;;  %v2228_v47 = vpop.f32.mrb[223].mxu0  ;;  %2607 = vmatprep.mubr.bf16.mxu1 %v2386_v16 }
 0x32c   :  { %4781 = vtanh.f32 %v2225_v44  ;;  %v2229_v48 = vadd.f32 %v2228_v47, %v5801_v22  ;;  %2608 = vmatmul.mubr.bf16.gmra.mrb[212].mxu1 %v2385_v6 }
 0x32d   :  { %v4772_v61 = vpop.eup %4771  ;;  %4783 = vtanh.f32 %v2227_v46 }
 0x32e   :  { %v4774_v52 = vpop.eup %4773  ;;  %4785 = vtanh.f32 %v2229_v48 }
 0x32f   :  { %v4776_v51 = vpop.eup %4775 }
 0x330   :  { %v4778_v56 = vpop.eup %4777  ;;  %v2232_v57 = vpop.f32.mrb[224].mxu0  ;;  %v2387_v0 = vpack.c.bf16 %v4776_v51, %v4772_v61 }
 0x331   :  { %v2233_v9 = vadd.f32 %v2232_v57, %v5798_v58  ;;  %v2234_v5 = vpop.f32.mrb[225].mxu0  ;;  %v2388_v31 = vpack.c.bf16 %v4778_v56, %v4774_v52 }
 0x332   :  { %v2235_v54 = vadd.f32 %v2234_v5, %v5801_v22  ;;  %v2236_v11 = vpop.f32.mrb[226].mxu0 }
 0x333   :  { %4787 = vtanh.f32 %v2233_v9  ;;  %v2237_v20 = vadd.f32 %v2236_v11, %v5798_v58  ;;  %v2238_v23 = vpop.f32.mrb[227].mxu0  ;;  %2615 = vmatprep.mubr.bf16.mxu1 %v2388_v31 }
 0x334   :  { %4789 = vtanh.f32 %v2235_v54  ;;  %v2239_v2 = vadd.f32 %v2238_v23, %v5801_v22  ;;  %2616 = vmatmul.mubr.bf16.gmra.mrb[216].mxu1 %v2387_v0 }
 0x335   :  { %v4780_v24 = vpop.eup %4779  ;;  %4791 = vtanh.f32 %v2237_v20 }
 0x336   :  { %v4782_v37 = vpop.eup %4781  ;;  %4793 = vtanh.f32 %v2239_v2 }
 0x337   :  { %v4784_v29 = vpop.eup %4783 }
 0x338   :  { %v4786_v32 = vpop.eup %4785  ;;  %v2242_v33 = vpop.f32.mrb[228].mxu0  ;;  %v2389_v6 = vpack.c.bf16 %v4784_v29, %v4780_v24 }
 0x339   :  { %v2243_v40 = vadd.f32 %v2242_v33, %v5798_v58  ;;  %v2244_v42 = vpop.f32.mrb[229].mxu0  ;;  %v2390_v16 = vpack.c.bf16 %v4786_v32, %v4782_v37 }
 0x33a   :  { %v2245_v44 = vadd.f32 %v2244_v42, %v5801_v22  ;;  %v2246_v25 = vpop.f32.mrb[230].mxu0 }
 0x33b   :  { %4795 = vtanh.f32 %v2243_v40  ;;  %v2247_v46 = vadd.f32 %v2246_v25, %v5798_v58  ;;  %v2248_v47 = vpop.f32.mrb[231].mxu0  ;;  %2623 = vmatprep.mubr.bf16.mxu1 %v2390_v16 }
 0x33c   :  { %4797 = vtanh.f32 %v2245_v44  ;;  %v2249_v48 = vadd.f32 %v2248_v47, %v5801_v22  ;;  %2624 = vmatmul.mubr.bf16.gmra.mrb[220].mxu1 %v2389_v6 }
 0x33d   :  { %v4788_v61 = vpop.eup %4787  ;;  %4799 = vtanh.f32 %v2247_v46 }
 0x33e   :  { %v4790_v52 = vpop.eup %4789  ;;  %4801 = vtanh.f32 %v2249_v48 }
 0x33f   :  { %v4792_v51 = vpop.eup %4791 }
 0x340   :  { %v4794_v56 = vpop.eup %4793  ;;  %v2252_v57 = vpop.f32.mrb[232].mxu0  ;;  %v2391_v0 = vpack.c.bf16 %v4792_v51, %v4788_v61 }
 0x341   :  { %v2253_v9 = vadd.f32 %v2252_v57, %v5798_v58  ;;  %v2254_v5 = vpop.f32.mrb[233].mxu0  ;;  %v2392_v31 = vpack.c.bf16 %v4794_v56, %v4790_v52 }
 0x342   :  { %v2255_v54 = vadd.f32 %v2254_v5, %v5801_v22  ;;  %v2256_v11 = vpop.f32.mrb[234].mxu0 }
 0x343   :  { %4803 = vtanh.f32 %v2253_v9  ;;  %v2257_v20 = vadd.f32 %v2256_v11, %v5798_v58  ;;  %v2258_v23 = vpop.f32.mrb[235].mxu0  ;;  %2631 = vmatprep.mubr.bf16.mxu1 %v2392_v31 }
 0x344   :  { %4805 = vtanh.f32 %v2255_v54  ;;  %v2259_v2 = vadd.f32 %v2258_v23, %v5801_v22  ;;  %2632 = vmatmul.mubr.bf16.gmra.mrb[224].mxu1 %v2391_v0 }
 0x345   :  { %v4796_v24 = vpop.eup %4795  ;;  %4807 = vtanh.f32 %v2257_v20 }
 0x346   :  { %v4798_v37 = vpop.eup %4797  ;;  %4809 = vtanh.f32 %v2259_v2 }
 0x347   :  { %v4800_v29 = vpop.eup %4799 }
 0x348   :  { %v4802_v32 = vpop.eup %4801  ;;  %v2262_v33 = vpop.f32.mrb[236].mxu0  ;;  %v2393_v6 = vpack.c.bf16 %v4800_v29, %v4796_v24 }
 0x349   :  { %v2263_v40 = vadd.f32 %v2262_v33, %v5798_v58  ;;  %v2264_v42 = vpop.f32.mrb[237].mxu0  ;;  %v2394_v16 = vpack.c.bf16 %v4802_v32, %v4798_v37 }
 0x34a   :  { %v2265_v44 = vadd.f32 %v2264_v42, %v5801_v22  ;;  %v2266_v25 = vpop.f32.mrb[238].mxu0 }
 0x34b   :  { %4811 = vtanh.f32 %v2263_v40  ;;  %v2267_v46 = vadd.f32 %v2266_v25, %v5798_v58  ;;  %v2268_v47 = vpop.f32.mrb[239].mxu0  ;;  %2639 = vmatprep.mubr.bf16.mxu1 %v2394_v16 }
 0x34c   :  { %4813 = vtanh.f32 %v2265_v44  ;;  %v2269_v48 = vadd.f32 %v2268_v47, %v5801_v22  ;;  %2640 = vmatmul.mubr.bf16.gmra.mrb[228].mxu1 %v2393_v6 }
 0x34d   :  { %v4804_v61 = vpop.eup %4803  ;;  %4815 = vtanh.f32 %v2267_v46 }
 0x34e   :  { %v4806_v52 = vpop.eup %4805  ;;  %4817 = vtanh.f32 %v2269_v48 }
 0x34f   :  { %v4808_v51 = vpop.eup %4807 }
 0x350   :  { %v4810_v56 = vpop.eup %4809  ;;  %v2272_v57 = vpop.f32.mrb[240].mxu0  ;;  %v2395_v0 = vpack.c.bf16 %v4808_v51, %v4804_v61 }
 0x351   :  { %v2273_v9 = vadd.f32 %v2272_v57, %v5798_v58  ;;  %v2274_v5 = vpop.f32.mrb[241].mxu0  ;;  %v2396_v31 = vpack.c.bf16 %v4810_v56, %v4806_v52 }
 0x352   :  { %v2275_v54 = vadd.f32 %v2274_v5, %v5801_v22  ;;  %v2276_v11 = vpop.f32.mrb[242].mxu0 }
 0x353   :  { %4819 = vtanh.f32 %v2273_v9  ;;  %v2277_v20 = vadd.f32 %v2276_v11, %v5798_v58  ;;  %v2278_v23 = vpop.f32.mrb[243].mxu0  ;;  %2647 = vmatprep.mubr.bf16.mxu1 %v2396_v31 }
 0x354   :  { %4821 = vtanh.f32 %v2275_v54  ;;  %v2279_v2 = vadd.f32 %v2278_v23, %v5801_v22  ;;  %2648 = vmatmul.mubr.bf16.gmra.mrb[232].mxu1 %v2395_v0 }
 0x355   :  { %v4812_v24 = vpop.eup %4811  ;;  %4823 = vtanh.f32 %v2277_v20 }
 0x356   :  { %v4814_v37 = vpop.eup %4813  ;;  %4825 = vtanh.f32 %v2279_v2 }
 0x357   :  { %v4816_v29 = vpop.eup %4815  ;;  %v3888_v32 = vpop.f32.mrb[128].mxu1 }
 0x358   :  { %v4818_v33 = vpop.eup %4817  ;;  %v3889_v6 = vpop.f32.mrb[129].mxu1  ;;  %v2397_v42 = vpack.c.bf16 %v4816_v29, %v4812_v24 }
 0x359   :  { %v2282_v40 = vpop.f32.mrb[244].mxu0  ;;  %v3890_v16 = vadd.f32 %v3889_v6, %v3888_v32  ;;  %v3891_v25 = vpop.f32.mrb[130].mxu1  ;;  %v2398_v47 = vpack.c.bf16 %v4818_v33, %v4814_v37 }
 0x35a   :  { %v2283_v44 = vadd.f32 %v2282_v40, %v5798_v58  ;;  %v2284_v46 = vpop.f32.mrb[245].mxu0  ;;  %v3892_v61 = vpop.f32.mrb[131].mxu1 }
 0x35b   :  { %v2285_v48 = vadd.f32 %v2284_v46, %v5801_v22  ;;  %v2286_v52 = vpop.f32.mrb[246].mxu0  ;;  %v5883_v51 = vadd.f32 %v3890_v16, %v5518_v1  ;;  %v3893_v56 = vadd.f32 %v3892_v61, %v3891_v25  ;;  %2655 = vmatprep.mubr.bf16.mxu1 %v2398_v47 }
 0x35c   :  { %4827 = vtanh.f32 %v2283_v44  ;;  %v2287_v57 = vadd.f32 %v2286_v52, %v5798_v58  ;;  %v2288_v0 = vpop.f32.mrb[247].mxu0  ;;  %2656 = vmatmul.mubr.bf16.gmra.mrb[236].mxu1 %v2397_v42 }
 0x35d   :  { %4829 = vtanh.f32 %v2285_v48  ;;  %v2289_v9 = vadd.f32 %v2288_v0, %v5801_v22  ;;  %v4820_v5 = vpop.eup %4819  ;;  %v5888_v31 = vadd.f32 %v3893_v56, %v5527_v38 }
 0x35e   :  { %4831 = vtanh.f32 %v2287_v57  ;;  %v4822_v54 = vpop.eup %4821 }
 0x35f   :  { %4833 = vtanh.f32 %v2289_v9  ;;  %v4824_v11 = vpop.eup %4823  ;;  %v3894_v1 = vpop.f32.mrb[132].mxu1 }
 0x360   :  { %v4826_v20 = vpop.eup %4825  ;;  %v3895_v23 = vpop.f32.mrb[133].mxu1  ;;  %v2399_v24 = vpack.c.bf16 %v4824_v11, %v4820_v5 }
 0x361   :  { %v2292_v2 = vpop.f32.mrb[248].mxu0  ;;  %v3896_v37 = vadd.f32 %v3895_v23, %v3894_v1  ;;  %v3897_v32 = vpop.f32.mrb[134].mxu1  ;;  %v2400_v6 = vpack.c.bf16 %v4826_v20, %v4822_v54 }
 0x362   :  { %v2293_v29 = vadd.f32 %v2292_v2, %v5798_v58  ;;  %v2294_v33 = vpop.f32.mrb[249].mxu0  ;;  %v3898_v42 = vpop.f32.mrb[135].mxu1 }
 0x363   :  { %v2295_v40 = vadd.f32 %v2294_v33, %v5801_v22  ;;  %v2296_v38 = vpop.f32.mrb[250].mxu0  ;;  %v5893_v16 = vadd.f32 %v3896_v37, %v5530_v50  ;;  %v3899_v44 = vadd.f32 %v3898_v42, %v3897_v32  ;;  %2663 = vmatprep.mubr.bf16.mxu1 %v2400_v6  ;;  %v2732_v37 = vld [vmem:[#allocation2 + $0x8] sm:$0x3] }
 0x364   :  { %4835 = vtanh.f32 %v2293_v29  ;;  %v2297_v25 = vadd.f32 %v2296_v38, %v5798_v58  ;;  %v2298_v46 = vpop.f32.mrb[251].mxu0  ;;  %2664 = vmatmul.mubr.bf16.gmra.mrb[240].mxu1 %v2399_v24 }
 0x365   :  { %4837 = vtanh.f32 %v2295_v40  ;;  %v2299_v47 = vadd.f32 %v2298_v46, %v5801_v22  ;;  %v5898_v61 = vadd.f32 %v3899_v44, %v5539_v53  ;;  %v5911_v44 = vrot.slane %v2732_v37, %v5261_v60 }
 0x366   :  { %v4828_v48 = vpop.eup %4827  ;;  %4839 = vtanh.f32 %v2297_v25  ;;  %v5914_v25 = vrot.slane %v2732_v37, %v5263_v63 }
 0x367   :  { %v4830_v52 = vpop.eup %4829  ;;  %4841 = vtanh.f32 %v2299_v47  ;;  %v3900_v50 = vpop.f32.mrb[136].mxu1 }
 0x368   :  { %v4832_v56 = vpop.eup %4831  ;;  %v3901_v0 = vpop.f32.mrb[137].mxu1 }
 0x369   :  { %v4834_v57 = vpop.eup %4833  ;;  %v2302_v9 = vpop.f32.mrb[252].mxu0  ;;  %v2401_v5 = vpack.c.bf16 %v4832_v56, %v4828_v48  ;;  %v3902_v54 = vadd.f32 %v3901_v0, %v3900_v50 }
 0x36a   :  { %v2303_v11 = vadd.f32 %v2302_v9, %v5798_v58  ;;  %v3903_v1 = vpop.f32.mrb[138].mxu1  ;;  %v2304_v20 = vpop.f32.mrb[253].mxu0  ;;  %v2402_v23 = vpack.c.bf16 %v4834_v57, %v4830_v52 }
 0x36b   :  { %v2305_v2 = vadd.f32 %v2304_v20, %v5801_v22  ;;  %v3904_v24 = vpop.f32.mrb[139].mxu1  ;;  %v2306_v53 = vpop.f32.mrb[254].mxu0  ;;  %v5903_v29 = vadd.f32 %v3902_v54, %v5542_v12 }
 0x36c   :  { %4843 = vtanh.f32 %v2303_v11  ;;  %v3905_v32 = vadd.f32 %v3904_v24, %v3903_v1  ;;  %v2307_v33 = vadd.f32 %v2306_v53, %v5798_v58  ;;  %v2308_v6 = vpop.f32.mrb[255].mxu0  ;;  %2671 = vmatprep.mubr.bf16.mxu1 %v2402_v23 }
 0x36d   :  { %4845 = vtanh.f32 %v2305_v2  ;;  %v2309_v40 = vadd.f32 %v2308_v6, %v5801_v22  ;;  %2672 = vmatmul.mubr.bf16.gmra.mrb[244].mxu1 %v2401_v5 }
 0x36e   :  { %v4836_v42 = vpop.eup %4835  ;;  %v5908_v38 = vadd.f32 %v3905_v32, %v5551_v19  ;;  %4847 = vtanh.f32 %v2307_v33 }
 0x36f   :  { %v4838_v12 = vpop.eup %4837  ;;  %4849 = vtanh.f32 %v2309_v40  ;;  %v3906_v46 = vpop.f32.mrb[140].mxu1 }
 0x370   :  { %v4840_v58 = vpop.eup %4839  ;;  %v3907_v48 = vpop.f32.mrb[141].mxu1 }
 0x371   :  { %v4842_v47 = vpop.eup %4841  ;;  %v2798_v52 = vpop.f32.mrb[0].mxu0  ;;  %v2403_v22 = vpack.c.bf16 %v4840_v58, %v4836_v42  ;;  %v3908_v56 = vadd.f32 %v3907_v48, %v3906_v46 }
 0x372   :  { %v2799_v50 = vadd.f32 %v2798_v52, %v5911_v44  ;;  %v3909_v19 = vpop.f32.mrb[142].mxu1  ;;  %v2800_v57 = vpop.f32.mrb[1].mxu0  ;;  %v2404_v0 = vpack.c.bf16 %v4842_v47, %v4838_v12 }
 0x373   :  { %v2801_v60 = vadd.f32 %v2800_v57, %v5914_v25  ;;  %v3910_v9 = vpop.f32.mrb[143].mxu1  ;;  %v2802_v5 = vpop.f32.mrb[2].mxu0  ;;  %v5919_v54 = vadd.f32 %v3908_v56, %v5554_v35 }
 0x374   :  { %4851 = vtanh.f32 %v2799_v50  ;;  %v3911_v63 = vadd.f32 %v3910_v9, %v3909_v19  ;;  %v2803_v11 = vadd.f32 %v2802_v5, %v5911_v44  ;;  %2679 = vmatprep.mubr.bf16.mxu1 %v2404_v0  ;;  %v2804_v1 = vpop.f32.mrb[3].mxu0 }
 0x375   :  { %4853 = vtanh.f32 %v2801_v60  ;;  %v2805_v20 = vadd.f32 %v2804_v1, %v5914_v25  ;;  %2680 = vmatmul.mubr.bf16.gmra.mrb[248].mxu1 %v2403_v22 }
 0x376   :  { %v4844_v23 = vpop.eup %4843  ;;  %v5924_v2 = vadd.f32 %v3911_v63, %v5563_v39  ;;  %4855 = vtanh.f32 %v2803_v11 }
 0x377   :  { %v4846_v24 = vpop.eup %4845  ;;  %4857 = vtanh.f32 %v2805_v20  ;;  %v3912_v35 = vpop.f32.mrb[144].mxu1 }
 0x378   :  { %v4848_v53 = vpop.eup %4847  ;;  %v3913_v32 = vpop.f32.mrb[145].mxu1 }
 0x379   :  { %v4850_v37 = vpop.eup %4849  ;;  %v2808_v33 = vpop.f32.mrb[4].mxu0  ;;  %v2405_v6 = vpack.c.bf16 %v4848_v53, %v4844_v23  ;;  %v3914_v40 = vadd.f32 %v3913_v32, %v3912_v35 }
 0x37a   :  { %v2809_v42 = vadd.f32 %v2808_v33, %v5911_v44  ;;  %v3915_v12 = vpop.f32.mrb[146].mxu1  ;;  %v2810_v58 = vpop.f32.mrb[5].mxu0  ;;  %v2406_v46 = vpack.c.bf16 %v4850_v37, %v4846_v24 }
 0x37b   :  { %v2811_v47 = vadd.f32 %v2810_v58, %v5914_v25  ;;  %v3916_v48 = vpop.f32.mrb[147].mxu1  ;;  %v2812_v39 = vpop.f32.mrb[6].mxu0  ;;  %v5929_v52 = vadd.f32 %v3914_v40, %v5566_v49 }
 0x37c   :  { %4859 = vtanh.f32 %v2809_v42  ;;  %v3917_v22 = vadd.f32 %v3916_v48, %v3915_v12  ;;  %v2813_v56 = vadd.f32 %v2812_v39, %v5911_v44  ;;  %2687 = vmatprep.mubr.bf16.mxu1 %v2406_v46  ;;  %v2814_v50 = vpop.f32.mrb[7].mxu0 }
 0x37d   :  { %4861 = vtanh.f32 %v2811_v47  ;;  %v2815_v19 = vadd.f32 %v2814_v50, %v5914_v25  ;;  %2688 = vmatmul.mubr.bf16.gmra.mrb[252].mxu1 %v2405_v6 }
 0x37e   :  { %v4852_v57 = vpop.eup %4851  ;;  %v5934_v0 = vadd.f32 %v3917_v22, %v5575_v55  ;;  %4863 = vtanh.f32 %v2813_v56 }
 0x37f   :  { %v4854_v60 = vpop.eup %4853  ;;  %4865 = vtanh.f32 %v2815_v19  ;;  %v3918_v49 = vpop.f32.mrb[148].mxu1 }
 0x380   :  { %v4856_v9 = vpop.eup %4855  ;;  %v3919_v11 = vpop.f32.mrb[149].mxu1 }
 0x381   :  { %v4858_v5 = vpop.eup %4857  ;;  %v3021_v63 = vpack.c.bf16 %v4856_v9, %v4852_v57  ;;  %v2818_v1 = vpop.f32.mrb[8].mxu0  ;;  %v3920_v20 = vadd.f32 %v3919_v11, %v3918_v49 }
 0x382   :  { %v2819_v23 = vadd.f32 %v2818_v1, %v5911_v44  ;;  %v3921_v24 = vpop.f32.mrb[150].mxu1  ;;  %v2820_v53 = vpop.f32.mrb[9].mxu0  ;;  %v3022_v35 = vpack.c.bf16 %v4858_v5, %v4854_v60 }
 0x383   :  { %v2821_v37 = vadd.f32 %v2820_v53, %v5914_v25  ;;  %v3922_v32 = vpop.f32.mrb[151].mxu1  ;;  %v2822_v55 = vpop.f32.mrb[10].mxu0  ;;  %v5939_v33 = vadd.f32 %v3920_v20, %v5584_v26 }
 0x384   :  { %4867 = vtanh.f32 %v2819_v23  ;;  %v3923_v6 = vadd.f32 %v3922_v32, %v3921_v24  ;;  %v2823_v40 = vadd.f32 %v2822_v55, %v5911_v44  ;;  %v2824_v42 = vpop.f32.mrb[11].mxu0  ;;  %3213 = vmatprep.mubr.bf16.mxu1 %v3022_v35 }
 0x385   :  { %4869 = vtanh.f32 %v2821_v37  ;;  %v2825_v12 = vadd.f32 %v2824_v42, %v5914_v25  ;;  %3214 = vmatmul.mubr.bf16.vlgmr.msra.gmra.mrb[0].mxu1 %v3021_v63 }
 0x386   :  { %v4860_v58 = vpop.eup %4859  ;;  %v5944_v46 = vadd.f32 %v3923_v6, %v5588_v28  ;;  %4871 = vtanh.f32 %v2823_v40 }
 0x387   :  { %v4862_v47 = vpop.eup %4861  ;;  %4873 = vtanh.f32 %v2825_v12  ;;  %v3924_v26 = vpop.f32.mrb[152].mxu1 }
 0x388   :  { %v4864_v48 = vpop.eup %4863  ;;  %v3925_v56 = vpop.f32.mrb[153].mxu1 }
 0x389   :  { %v4866_v39 = vpop.eup %4865  ;;  %v3023_v22 = vpack.c.bf16 %v4864_v48, %v4860_v58  ;;  %v2828_v50 = vpop.f32.mrb[12].mxu0  ;;  %v3926_v19 = vadd.f32 %v3925_v56, %v3924_v26 }
 0x38a   :  { %v2829_v57 = vadd.f32 %v2828_v50, %v5911_v44  ;;  %v3927_v60 = vpop.f32.mrb[154].mxu1  ;;  %v2830_v9 = vpop.f32.mrb[13].mxu0  ;;  %v3024_v49 = vpack.c.bf16 %v4866_v39, %v4862_v47 }
 0x38b   :  { %v2831_v5 = vadd.f32 %v2830_v9, %v5914_v25  ;;  %v3928_v63 = vpop.f32.mrb[155].mxu1  ;;  %v2832_v28 = vpop.f32.mrb[14].mxu0  ;;  %v5949_v11 = vadd.f32 %v3926_v19, %v5594_v43 }
 0x38c   :  { %4875 = vtanh.f32 %v2829_v57  ;;  %v3929_v1 = vadd.f32 %v3928_v63, %v3927_v60  ;;  %v2833_v20 = vadd.f32 %v2832_v28, %v5911_v44  ;;  %v2834_v23 = vpop.f32.mrb[15].mxu0  ;;  %3221 = vmatprep.mubr.bf16.mxu1 %v3024_v49 }
 0x38d   :  { %4877 = vtanh.f32 %v2831_v5  ;;  %v2835_v24 = vadd.f32 %v2834_v23, %v5914_v25  ;;  %3222 = vmatmul.mubr.bf16.gmra.mrb[4].mxu1 %v3023_v22 }
 0x38e   :  { %v4868_v53 = vpop.eup %4867  ;;  %v5954_v35 = vadd.f32 %v3929_v1, %v5598_v45  ;;  %4879 = vtanh.f32 %v2833_v20 }
 0x38f   :  { %v4870_v37 = vpop.eup %4869  ;;  %4881 = vtanh.f32 %v2835_v24  ;;  %v3930_v43 = vpop.f32.mrb[156].mxu1 }
 0x390   :  { %v4872_v32 = vpop.eup %4871  ;;  %v3931_v40 = vpop.f32.mrb[157].mxu1 }
 0x391   :  { %v4874_v55 = vpop.eup %4873  ;;  %v3025_v6 = vpack.c.bf16 %v4872_v32, %v4868_v53  ;;  %v2838_v42 = vpop.f32.mrb[16].mxu0  ;;  %v3932_v12 = vadd.f32 %v3931_v40, %v3930_v43 }
 0x392   :  { %v2839_v58 = vadd.f32 %v2838_v42, %v5911_v44  ;;  %v3933_v47 = vpop.f32.mrb[158].mxu1  ;;  %v2840_v48 = vpop.f32.mrb[17].mxu0  ;;  %v3026_v26 = vpack.c.bf16 %v4874_v55, %v4870_v37 }
 0x393   :  { %v2841_v39 = vadd.f32 %v2840_v48, %v5914_v25  ;;  %v3934_v22 = vpop.f32.mrb[159].mxu1  ;;  %v2842_v45 = vpop.f32.mrb[18].mxu0  ;;  %v5959_v56 = vadd.f32 %v3932_v12, %v5601_v8 }
 0x394   :  { %4883 = vtanh.f32 %v2839_v58  ;;  %v3935_v50 = vadd.f32 %v3934_v22, %v3933_v47  ;;  %v2843_v19 = vadd.f32 %v2842_v45, %v5911_v44  ;;  %v2844_v57 = vpop.f32.mrb[19].mxu0  ;;  %3229 = vmatprep.mubr.bf16.mxu1 %v3026_v26 }
 0x395   :  { %4885 = vtanh.f32 %v2841_v39  ;;  %v2845_v60 = vadd.f32 %v2844_v57, %v5914_v25  ;;  %3230 = vmatmul.mubr.bf16.gmra.mrb[8].mxu1 %v3025_v6 }
 0x396   :  { %v4876_v9 = vpop.eup %4875  ;;  %v5964_v49 = vadd.f32 %v3935_v50, %v5605_v15  ;;  %4887 = vtanh.f32 %v2843_v19 }
 0x397   :  { %v4878_v5 = vpop.eup %4877  ;;  %4889 = vtanh.f32 %v2845_v60  ;;  %v3936_v8 = vpop.f32.mrb[160].mxu1 }
 0x398   :  { %v4880_v63 = vpop.eup %4879  ;;  %v3937_v20 = vpop.f32.mrb[161].mxu1 }
 0x399   :  { %v4882_v28 = vpop.eup %4881  ;;  %v3027_v1 = vpack.c.bf16 %v4880_v63, %v4876_v9  ;;  %v2848_v23 = vpop.f32.mrb[20].mxu0  ;;  %v3938_v24 = vadd.f32 %v3937_v20, %v3936_v8 }
 0x39a   :  { %v2849_v53 = vadd.f32 %v2848_v23, %v5911_v44  ;;  %v3939_v37 = vpop.f32.mrb[162].mxu1  ;;  %v2850_v32 = vpop.f32.mrb[21].mxu0  ;;  %v3028_v43 = vpack.c.bf16 %v4882_v28, %v4878_v5 }
 0x39b   :  { %v2851_v55 = vadd.f32 %v2850_v32, %v5914_v25  ;;  %v3940_v6 = vpop.f32.mrb[163].mxu1  ;;  %v2852_v15 = vpop.f32.mrb[22].mxu0  ;;  %v5969_v40 = vadd.f32 %v3938_v24, %v5608_v3 }
 0x39c   :  { %4891 = vtanh.f32 %v2849_v53  ;;  %v3941_v42 = vadd.f32 %v3940_v6, %v3939_v37  ;;  %v2853_v12 = vadd.f32 %v2852_v15, %v5911_v44  ;;  %v2854_v58 = vpop.f32.mrb[23].mxu0  ;;  %3237 = vmatprep.mubr.bf16.mxu1 %v3028_v43 }
 0x39d   :  { %4893 = vtanh.f32 %v2851_v55  ;;  %v2855_v47 = vadd.f32 %v2854_v58, %v5914_v25  ;;  %3238 = vmatmul.mubr.bf16.gmra.mrb[12].mxu1 %v3027_v1 }
 0x39e   :  { %v4884_v48 = vpop.eup %4883  ;;  %v5974_v26 = vadd.f32 %v3941_v42, %v5612_v41  ;;  %4895 = vtanh.f32 %v2853_v12 }
 0x39f   :  { %v4886_v39 = vpop.eup %4885  ;;  %4897 = vtanh.f32 %v2855_v47  ;;  %v3942_v3 = vpop.f32.mrb[164].mxu1 }
 0x3a0   :  { %v4888_v22 = vpop.eup %4887  ;;  %v3943_v19 = vpop.f32.mrb[165].mxu1 }
 0x3a1   :  { %v4890_v45 = vpop.eup %4889  ;;  %v3029_v50 = vpack.c.bf16 %v4888_v22, %v4884_v48  ;;  %v2858_v57 = vpop.f32.mrb[24].mxu0  ;;  %v3944_v60 = vadd.f32 %v3943_v19, %v3942_v3 }
 0x3a2   :  { %v2859_v9 = vadd.f32 %v2858_v57, %v5911_v44  ;;  %v3945_v5 = vpop.f32.mrb[166].mxu1  ;;  %v2860_v63 = vpop.f32.mrb[25].mxu0  ;;  %v3030_v8 = vpack.c.bf16 %v4890_v45, %v4886_v39 }
 0x3a3   :  { %v2861_v28 = vadd.f32 %v2860_v63, %v5914_v25  ;;  %v3946_v1 = vpop.f32.mrb[167].mxu1  ;;  %v2862_v41 = vpop.f32.mrb[26].mxu0  ;;  %v5979_v20 = vadd.f32 %v3944_v60, %v5615_v62 }
 0x3a4   :  { %4899 = vtanh.f32 %v2859_v9  ;;  %v3947_v23 = vadd.f32 %v3946_v1, %v3945_v5  ;;  %v2863_v24 = vadd.f32 %v2862_v41, %v5911_v44  ;;  %v2864_v53 = vpop.f32.mrb[27].mxu0  ;;  %3245 = vmatprep.mubr.bf16.mxu1 %v3030_v8 }
 0x3a5   :  { %4901 = vtanh.f32 %v2861_v28  ;;  %v2865_v37 = vadd.f32 %v2864_v53, %v5914_v25  ;;  %3246 = vmatmul.mubr.bf16.gmra.mrb[16].mxu1 %v3029_v50 }
 0x3a6   :  { %v4892_v32 = vpop.eup %4891  ;;  %v5984_v43 = vadd.f32 %v3947_v23, %v5619_v10  ;;  %4903 = vtanh.f32 %v2863_v24 }
 0x3a7   :  { %v4894_v55 = vpop.eup %4893  ;;  %4905 = vtanh.f32 %v2865_v37  ;;  %v3948_v62 = vpop.f32.mrb[168].mxu1 }
 0x3a8   :  { %v4896_v6 = vpop.eup %4895  ;;  %v3949_v12 = vpop.f32.mrb[169].mxu1 }
 0x3a9   :  { %v4898_v15 = vpop.eup %4897  ;;  %v3031_v42 = vpack.c.bf16 %v4896_v6, %v4892_v32  ;;  %v2868_v58 = vpop.f32.mrb[28].mxu0  ;;  %v3950_v47 = vadd.f32 %v3949_v12, %v3948_v62 }
 0x3aa   :  { %v2869_v48 = vadd.f32 %v2868_v58, %v5911_v44  ;;  %v3951_v39 = vpop.f32.mrb[170].mxu1  ;;  %v2870_v22 = vpop.f32.mrb[29].mxu0  ;;  %v3032_v3 = vpack.c.bf16 %v4898_v15, %v4894_v55 }
 0x3ab   :  { %v2871_v45 = vadd.f32 %v2870_v22, %v5914_v25  ;;  %v3952_v50 = vpop.f32.mrb[171].mxu1  ;;  %v2872_v10 = vpop.f32.mrb[30].mxu0  ;;  %v5989_v19 = vadd.f32 %v3950_v47, %v5622_v34 }
 0x3ac   :  { %4907 = vtanh.f32 %v2869_v48  ;;  %v3953_v57 = vadd.f32 %v3952_v50, %v3951_v39  ;;  %v2873_v60 = vadd.f32 %v2872_v10, %v5911_v44  ;;  %v2874_v9 = vpop.f32.mrb[31].mxu0  ;;  %3253 = vmatprep.mubr.bf16.mxu1 %v3032_v3 }
 0x3ad   :  { %4909 = vtanh.f32 %v2871_v45  ;;  %v2875_v5 = vadd.f32 %v2874_v9, %v5914_v25  ;;  %3254 = vmatmul.mubr.bf16.gmra.mrb[20].mxu1 %v3031_v42 }
 0x3ae   :  { %v4900_v63 = vpop.eup %4899  ;;  %v5994_v8 = vadd.f32 %v3953_v57, %v5626_v13  ;;  %4911 = vtanh.f32 %v2873_v60 }
 0x3af   :  { %v4902_v28 = vpop.eup %4901  ;;  %4913 = vtanh.f32 %v2875_v5  ;;  %v3954_v34 = vpop.f32.mrb[172].mxu1 }
 0x3b0   :  { %v4904_v1 = vpop.eup %4903  ;;  %v3955_v24 = vpop.f32.mrb[173].mxu1 }
 0x3b1   :  { %v4906_v41 = vpop.eup %4905  ;;  %v3033_v23 = vpack.c.bf16 %v4904_v1, %v4900_v63  ;;  %v2878_v53 = vpop.f32.mrb[32].mxu0  ;;  %v3956_v37 = vadd.f32 %v3955_v24, %v3954_v34 }
 0x3b2   :  { %v2879_v32 = vadd.f32 %v2878_v53, %v5911_v44  ;;  %v3957_v55 = vpop.f32.mrb[174].mxu1  ;;  %v2880_v6 = vpop.f32.mrb[33].mxu0  ;;  %v3034_v62 = vpack.c.bf16 %v4906_v41, %v4902_v28 }
 0x3b3   :  { %v2881_v15 = vadd.f32 %v2880_v6, %v5914_v25  ;;  %v3958_v42 = vpop.f32.mrb[175].mxu1  ;;  %v2882_v13 = vpop.f32.mrb[34].mxu0  ;;  %v5999_v12 = vadd.f32 %v3956_v37, %v5629_v59 }
 0x3b4   :  { %4915 = vtanh.f32 %v2879_v32  ;;  %v3959_v58 = vadd.f32 %v3958_v42, %v3957_v55  ;;  %v2883_v47 = vadd.f32 %v2882_v13, %v5911_v44  ;;  %v2884_v48 = vpop.f32.mrb[35].mxu0  ;;  %3261 = vmatprep.mubr.bf16.mxu1 %v3034_v62 }
 0x3b5   :  { %4917 = vtanh.f32 %v2881_v15  ;;  %v2885_v39 = vadd.f32 %v2884_v48, %v5914_v25  ;;  %3262 = vmatmul.mubr.bf16.gmra.mrb[24].mxu1 %v3033_v23 }
 0x3b6   :  { %v4908_v22 = vpop.eup %4907  ;;  %v6004_v3 = vadd.f32 %v3959_v58, %v5633_v14  ;;  %4919 = vtanh.f32 %v2883_v47 }
 0x3b7   :  { %v4910_v45 = vpop.eup %4909  ;;  %4921 = vtanh.f32 %v2885_v39  ;;  %v3960_v59 = vpop.f32.mrb[176].mxu1 }
 0x3b8   :  { %v4912_v50 = vpop.eup %4911  ;;  %v3961_v60 = vpop.f32.mrb[177].mxu1 }
 0x3b9   :  { %v4914_v10 = vpop.eup %4913  ;;  %v3035_v57 = vpack.c.bf16 %v4912_v50, %v4908_v22  ;;  %v2888_v9 = vpop.f32.mrb[36].mxu0  ;;  %v3962_v5 = vadd.f32 %v3961_v60, %v3960_v59 }
 0x3ba   :  { %v2889_v63 = vadd.f32 %v2888_v9, %v5911_v44  ;;  %v3963_v28 = vpop.f32.mrb[178].mxu1  ;;  %v2890_v1 = vpop.f32.mrb[37].mxu0  ;;  %v3036_v34 = vpack.c.bf16 %v4914_v10, %v4910_v45 }
 0x3bb   :  { %v2891_v41 = vadd.f32 %v2890_v1, %v5914_v25  ;;  %v3964_v23 = vpop.f32.mrb[179].mxu1  ;;  %v2892_v14 = vpop.f32.mrb[38].mxu0  ;;  %v6009_v24 = vadd.f32 %v3962_v5, %v5636_v36 }
 0x3bc   :  { %4923 = vtanh.f32 %v2889_v63  ;;  %v3965_v53 = vadd.f32 %v3964_v23, %v3963_v28  ;;  %v2893_v37 = vadd.f32 %v2892_v14, %v5911_v44  ;;  %v2894_v32 = vpop.f32.mrb[39].mxu0  ;;  %3269 = vmatprep.mubr.bf16.mxu1 %v3036_v34 }
 0x3bd   :  { %4925 = vtanh.f32 %v2891_v41  ;;  %v2895_v55 = vadd.f32 %v2894_v32, %v5914_v25  ;;  %3270 = vmatmul.mubr.bf16.gmra.mrb[28].mxu1 %v3035_v57 }
 0x3be   :  { %v4916_v6 = vpop.eup %4915  ;;  %v6014_v62 = vadd.f32 %v3965_v53, %v5640_v17  ;;  %4927 = vtanh.f32 %v2893_v37 }
 0x3bf   :  { %v4918_v15 = vpop.eup %4917  ;;  %4929 = vtanh.f32 %v2895_v55  ;;  %v3966_v36 = vpop.f32.mrb[180].mxu1 }
 0x3c0   :  { %v4920_v42 = vpop.eup %4919  ;;  %v3967_v47 = vpop.f32.mrb[181].mxu1 }
 0x3c1   :  { %v4922_v13 = vpop.eup %4921  ;;  %v3037_v58 = vpack.c.bf16 %v4920_v42, %v4916_v6  ;;  %v2898_v48 = vpop.f32.mrb[40].mxu0  ;;  %v3968_v39 = vadd.f32 %v3967_v47, %v3966_v36 }
 0x3c2   :  { %v2899_v22 = vadd.f32 %v2898_v48, %v5911_v44  ;;  %v3969_v45 = vpop.f32.mrb[182].mxu1  ;;  %v2900_v50 = vpop.f32.mrb[41].mxu0  ;;  %v3038_v59 = vpack.c.bf16 %v4922_v13, %v4918_v15 }
 0x3c3   :  { %v2901_v10 = vadd.f32 %v2900_v50, %v5914_v25  ;;  %v3970_v57 = vpop.f32.mrb[183].mxu1  ;;  %v2902_v17 = vpop.f32.mrb[42].mxu0  ;;  %v6019_v60 = vadd.f32 %v3968_v39, %v5643_v7 }
 0x3c4   :  { %4931 = vtanh.f32 %v2899_v22  ;;  %v3971_v9 = vadd.f32 %v3970_v57, %v3969_v45  ;;  %v2903_v5 = vadd.f32 %v2902_v17, %v5911_v44  ;;  %v2904_v63 = vpop.f32.mrb[43].mxu0  ;;  %3277 = vmatprep.mubr.bf16.mxu1 %v3038_v59 }
 0x3c5   :  { %4933 = vtanh.f32 %v2901_v10  ;;  %v2905_v28 = vadd.f32 %v2904_v63, %v5914_v25  ;;  %3278 = vmatmul.mubr.bf16.gmra.mrb[32].mxu1 %v3037_v58 }
 0x3c6   :  { %v4924_v1 = vpop.eup %4923  ;;  %v6024_v34 = vadd.f32 %v3971_v9, %v5647_v18  ;;  %4935 = vtanh.f32 %v2903_v5 }
 0x3c7   :  { %v4926_v41 = vpop.eup %4925  ;;  %4937 = vtanh.f32 %v2905_v28  ;;  %v3972_v7 = vpop.f32.mrb[184].mxu1 }
 0x3c8   :  { %v4928_v23 = vpop.eup %4927  ;;  %v3973_v37 = vpop.f32.mrb[185].mxu1 }
 0x3c9   :  { %v4930_v14 = vpop.eup %4929  ;;  %v3039_v53 = vpack.c.bf16 %v4928_v23, %v4924_v1  ;;  %v2908_v32 = vpop.f32.mrb[44].mxu0  ;;  %v3974_v55 = vadd.f32 %v3973_v37, %v3972_v7 }
 0x3ca   :  { %v2909_v6 = vadd.f32 %v2908_v32, %v5911_v44  ;;  %v3975_v15 = vpop.f32.mrb[186].mxu1  ;;  %v2910_v42 = vpop.f32.mrb[45].mxu0  ;;  %v3040_v36 = vpack.c.bf16 %v4930_v14, %v4926_v41 }
 0x3cb   :  { %v2911_v13 = vadd.f32 %v2910_v42, %v5914_v25  ;;  %v3976_v58 = vpop.f32.mrb[187].mxu1  ;;  %v2912_v18 = vpop.f32.mrb[46].mxu0  ;;  %v6029_v47 = vadd.f32 %v3974_v55, %v5650_v4 }
 0x3cc   :  { %4939 = vtanh.f32 %v2909_v6  ;;  %v3977_v48 = vadd.f32 %v3976_v58, %v3975_v15  ;;  %v2913_v39 = vadd.f32 %v2912_v18, %v5911_v44  ;;  %v2914_v22 = vpop.f32.mrb[47].mxu0  ;;  %3285 = vmatprep.mubr.bf16.mxu1 %v3040_v36 }
 0x3cd   :  { %4941 = vtanh.f32 %v2911_v13  ;;  %v2915_v45 = vadd.f32 %v2914_v22, %v5914_v25  ;;  %3286 = vmatmul.mubr.bf16.gmra.mrb[36].mxu1 %v3039_v53 }
 0x3ce   :  { %v4932_v50 = vpop.eup %4931  ;;  %v6034_v59 = vadd.f32 %v3977_v48, %v5654_v21  ;;  %4943 = vtanh.f32 %v2913_v39 }
 0x3cf   :  { %v4934_v10 = vpop.eup %4933  ;;  %4945 = vtanh.f32 %v2915_v45  ;;  %v3978_v4 = vpop.f32.mrb[188].mxu1 }
 0x3d0   :  { %v4936_v57 = vpop.eup %4935  ;;  %v3979_v5 = vpop.f32.mrb[189].mxu1 }
 0x3d1   :  { %v4938_v17 = vpop.eup %4937  ;;  %v3041_v9 = vpack.c.bf16 %v4936_v57, %v4932_v50  ;;  %v2918_v63 = vpop.f32.mrb[48].mxu0  ;;  %v3980_v28 = vadd.f32 %v3979_v5, %v3978_v4 }
 0x3d2   :  { %v2919_v1 = vadd.f32 %v2918_v63, %v5911_v44  ;;  %v3981_v41 = vpop.f32.mrb[190].mxu1  ;;  %v2920_v23 = vpop.f32.mrb[49].mxu0  ;;  %v3042_v7 = vpack.c.bf16 %v4938_v17, %v4934_v10 }
 0x3d3   :  { %v2921_v14 = vadd.f32 %v2920_v23, %v5914_v25  ;;  %v3982_v53 = vpop.f32.mrb[191].mxu1  ;;  %v2922_v21 = vpop.f32.mrb[50].mxu0  ;;  %v6039_v37 = vadd.f32 %v3980_v28, %v5657_v27 }
 0x3d4   :  { %4947 = vtanh.f32 %v2919_v1  ;;  %v3983_v32 = vadd.f32 %v3982_v53, %v3981_v41  ;;  %v2923_v55 = vadd.f32 %v2922_v21, %v5911_v44  ;;  %v2924_v6 = vpop.f32.mrb[51].mxu0  ;;  %3293 = vmatprep.mubr.bf16.mxu1 %v3042_v7 }
 0x3d5   :  { %4949 = vtanh.f32 %v2921_v14  ;;  %v2925_v15 = vadd.f32 %v2924_v6, %v5914_v25  ;;  %3294 = vmatmul.mubr.bf16.gmra.mrb[40].mxu1 %v3041_v9 }
 0x3d6   :  { %v4940_v42 = vpop.eup %4939  ;;  %v6044_v36 = vadd.f32 %v3983_v32, %v5664_v30  ;;  %4951 = vtanh.f32 %v2923_v55 }
 0x3d7   :  { %v4942_v13 = vpop.eup %4941  ;;  %4953 = vtanh.f32 %v2925_v15  ;;  %v4000_v27 = vpop.f32.mrb[192].mxu1 }
 0x3d8   :  { %v4944_v58 = vpop.eup %4943  ;;  %v4001_v39 = vpop.f32.mrb[193].mxu1 }
 0x3d9   :  { %v4946_v18 = vpop.eup %4945  ;;  %v3043_v48 = vpack.c.bf16 %v4944_v58, %v4940_v42  ;;  %v2928_v22 = vpop.f32.mrb[52].mxu0  ;;  %v4002_v45 = vadd.f32 %v4001_v39, %v4000_v27 }
 0x3da   :  { %v2929_v50 = vadd.f32 %v2928_v22, %v5911_v44  ;;  %v4003_v10 = vpop.f32.mrb[194].mxu1  ;;  %v2930_v57 = vpop.f32.mrb[53].mxu0  ;;  %v3044_v4 = vpack.c.bf16 %v4946_v18, %v4942_v13 }
 0x3db   :  { %v2931_v17 = vadd.f32 %v2930_v57, %v5914_v25  ;;  %v4004_v9 = vpop.f32.mrb[195].mxu1  ;;  %v2932_v30 = vpop.f32.mrb[54].mxu0  ;;  %v6049_v5 = vadd.f32 %v4002_v45, %v5883_v51 }
 0x3dc   :  { %4955 = vtanh.f32 %v2929_v50  ;;  %v4005_v63 = vadd.f32 %v4004_v9, %v4003_v10  ;;  %v2933_v28 = vadd.f32 %v2932_v30, %v5911_v44  ;;  %v2934_v1 = vpop.f32.mrb[55].mxu0  ;;  %3301 = vmatprep.mubr.bf16.mxu1 %v3044_v4 }
 0x3dd   :  { %4957 = vtanh.f32 %v2931_v17  ;;  %v2935_v41 = vadd.f32 %v2934_v1, %v5914_v25  ;;  %3302 = vmatmul.mubr.bf16.gmra.mrb[44].mxu1 %v3043_v48 }
 0x3de   :  { %v4948_v23 = vpop.eup %4947  ;;  %v6054_v7 = vadd.f32 %v4005_v63, %v5888_v31  ;;  %4959 = vtanh.f32 %v2933_v28 }
 0x3df   :  { %v4950_v14 = vpop.eup %4949  ;;  %4961 = vtanh.f32 %v2935_v41  ;;  %v4006_v51 = vpop.f32.mrb[196].mxu1 }
 0x3e0   :  { %v4952_v53 = vpop.eup %4951  ;;  %v4007_v55 = vpop.f32.mrb[197].mxu1 }
 0x3e1   :  { %v4954_v21 = vpop.eup %4953  ;;  %v3045_v32 = vpack.c.bf16 %v4952_v53, %v4948_v23  ;;  %v2938_v6 = vpop.f32.mrb[56].mxu0  ;;  %v4008_v15 = vadd.f32 %v4007_v55, %v4006_v51 }
 0x3e2   :  { %v2939_v42 = vadd.f32 %v2938_v6, %v5911_v44  ;;  %v4009_v13 = vpop.f32.mrb[198].mxu1  ;;  %v2940_v58 = vpop.f32.mrb[57].mxu0  ;;  %v3046_v27 = vpack.c.bf16 %v4954_v21, %v4950_v14 }
 0x3e3   :  { %v2941_v18 = vadd.f32 %v2940_v58, %v5914_v25  ;;  %v4010_v48 = vpop.f32.mrb[199].mxu1  ;;  %v2942_v31 = vpop.f32.mrb[58].mxu0  ;;  %v6059_v39 = vadd.f32 %v4008_v15, %v5893_v16 }
 0x3e4   :  { %4963 = vtanh.f32 %v2939_v42  ;;  %v4011_v22 = vadd.f32 %v4010_v48, %v4009_v13  ;;  %v2943_v45 = vadd.f32 %v2942_v31, %v5911_v44  ;;  %v2944_v50 = vpop.f32.mrb[59].mxu0  ;;  %3309 = vmatprep.mubr.bf16.mxu1 %v3046_v27 }
 0x3e5   :  { %4965 = vtanh.f32 %v2941_v18  ;;  %v2945_v10 = vadd.f32 %v2944_v50, %v5914_v25  ;;  %3310 = vmatmul.mubr.bf16.gmra.mrb[48].mxu1 %v3045_v32 }
 0x3e6   :  { %v4956_v57 = vpop.eup %4955  ;;  %v6064_v4 = vadd.f32 %v4011_v22, %v5898_v61  ;;  %4967 = vtanh.f32 %v2943_v45 }
 0x3e7   :  { %v4958_v17 = vpop.eup %4957  ;;  %4969 = vtanh.f32 %v2945_v10  ;;  %v4012_v16 = vpop.f32.mrb[200].mxu1 }
 0x3e8   :  { %v4960_v9 = vpop.eup %4959  ;;  %v4013_v28 = vpop.f32.mrb[201].mxu1 }
 0x3e9   :  { %v4962_v30 = vpop.eup %4961  ;;  %v3047_v63 = vpack.c.bf16 %v4960_v9, %v4956_v57  ;;  %v2948_v1 = vpop.f32.mrb[60].mxu0  ;;  %v4014_v41 = vadd.f32 %v4013_v28, %v4012_v16 }
 0x3ea   :  { %v2949_v23 = vadd.f32 %v2948_v1, %v5911_v44  ;;  %v4015_v14 = vpop.f32.mrb[202].mxu1  ;;  %v2950_v53 = vpop.f32.mrb[61].mxu0  ;;  %v3048_v51 = vpack.c.bf16 %v4962_v30, %v4958_v17 }
 0x3eb   :  { %v2951_v21 = vadd.f32 %v2950_v53, %v5914_v25  ;;  %v4016_v32 = vpop.f32.mrb[203].mxu1  ;;  %v2952_v61 = vpop.f32.mrb[62].mxu0  ;;  %v6069_v55 = vadd.f32 %v4014_v41, %v5903_v29 }
 0x3ec   :  { %4971 = vtanh.f32 %v2949_v23  ;;  %v4017_v6 = vadd.f32 %v4016_v32, %v4015_v14  ;;  %v2953_v15 = vadd.f32 %v2952_v61, %v5911_v44  ;;  %v2954_v42 = vpop.f32.mrb[63].mxu0  ;;  %3317 = vmatprep.mubr.bf16.mxu1 %v3048_v51 }
 0x3ed   :  { %4973 = vtanh.f32 %v2951_v21  ;;  %v2955_v13 = vadd.f32 %v2954_v42, %v5914_v25  ;;  %3318 = vmatmul.mubr.bf16.gmra.mrb[52].mxu1 %v3047_v63 }
 0x3ee   :  { %v4964_v58 = vpop.eup %4963  ;;  %v6074_v27 = vadd.f32 %v4017_v6, %v5908_v38  ;;  %4975 = vtanh.f32 %v2953_v15 }
 0x3ef   :  { %v4966_v18 = vpop.eup %4965  ;;  %4977 = vtanh.f32 %v2955_v13  ;;  %v4018_v29 = vpop.f32.mrb[204].mxu1 }
 0x3f0   :  { %v4968_v48 = vpop.eup %4967  ;;  %v4019_v45 = vpop.f32.mrb[205].mxu1 }
 0x3f1   :  { %v4970_v31 = vpop.eup %4969  ;;  %v3049_v22 = vpack.c.bf16 %v4968_v48, %v4964_v58  ;;  %v4020_v50 = vadd.f32 %v4019_v45, %v4018_v29  ;;  %v4021_v44 = vpop.f32.mrb[206].mxu1 }
 0x3f2   :  { %v3050_v10 = vpack.c.bf16 %v4970_v31, %v4966_v18  ;;  %v4022_v57 = vpop.f32.mrb[207].mxu1 }
 0x3f3   :  { %v6077_v17 = vadd.f32 %v4020_v50, %v5919_v54  ;;  %v4023_v25 = vadd.f32 %v4022_v57, %v4021_v44 }
 0x3f4   :  { %3325 = vmatprep.mubr.bf16.mxu1 %v3050_v10 }
 0x3f5   :  { %3326 = vmatmul.mubr.bf16.gmra.mrb[56].mxu1 %v3049_v22  ;;  %v6080_v9 = vadd.f32 %v4023_v25, %v5924_v2 }
 0x3f6   :  { %v4972_v38 = vpop.eup %4971 }
 0x3f7   :  { %v4974_v16 = vpop.eup %4973  ;;  %v4024_v63 = vpop.f32.mrb[208].mxu1 }
 0x3f8   :  { %v4976_v30 = vpop.eup %4975  ;;  %v4025_v41 = vpop.f32.mrb[209].mxu1 }
 0x3f9   :  { %v4978_v28 = vpop.eup %4977  ;;  %v3051_v1 = vpack.c.bf16 %v4976_v30, %v4972_v38  ;;  %v4026_v23 = vadd.f32 %v4025_v41, %v4024_v63  ;;  %v4027_v14 = vpop.f32.mrb[210].mxu1 }
 0x3fa   :  { %v3052_v53 = vpack.c.bf16 %v4978_v28, %v4974_v16  ;;  %v4028_v51 = vpop.f32.mrb[211].mxu1 }
 0x3fb   :  { %v6083_v54 = vadd.f32 %v4026_v23, %v5929_v52  ;;  %v4029_v21 = vadd.f32 %v4028_v51, %v4027_v14 }
 0x3fc   :  { %3333 = vmatprep.mubr.bf16.mxu1 %v3052_v53 }
 0x3fd   :  { %3334 = vmatmul.mubr.bf16.gmra.mrb[60].mxu1 %v3051_v1  ;;  %v6086_v32 = vadd.f32 %v4029_v21, %v5934_v0 }
 0x3ff   :  { %v4030_v2 = vpop.f32.mrb[212].mxu1 }
 0x400   :  { %v4031_v61 = vpop.f32.mrb[213].mxu1 }
 0x401   :  { %v4032_v6 = vadd.f32 %v4031_v61, %v4030_v2  ;;  %v4033_v15 = vpop.f32.mrb[214].mxu1 }
 0x402   :  { %v4034_v42 = vpop.f32.mrb[215].mxu1 }
 0x403   :  { %v6089_v13 = vadd.f32 %v4032_v6, %v5939_v33  ;;  %v4035_v58 = vadd.f32 %v4034_v42, %v4033_v15 }
 0x405   :  { %v6092_v18 = vadd.f32 %v4035_v58, %v5944_v46 }
 0x407   :  { %v4036_v52 = vpop.f32.mrb[216].mxu1 }
 0x408   :  { %v4037_v48 = vpop.f32.mrb[217].mxu1 }
 0x409   :  { %v4038_v29 = vadd.f32 %v4037_v48, %v4036_v52  ;;  %v4039_v31 = vpop.f32.mrb[218].mxu1 }
 0x40a   :  { %v4040_v22 = vpop.f32.mrb[219].mxu1 }
 0x40b   :  { %v6095_v0 = vadd.f32 %v4038_v29, %v5949_v11  ;;  %v4041_v45 = vadd.f32 %v4040_v22, %v4039_v31 }
 0x40d   :  { %v6098_v50 = vadd.f32 %v4041_v45, %v5954_v35 }
 0x40f   :  { %v4042_v44 = vpop.f32.mrb[220].mxu1 }
 0x410   :  { %v4043_v10 = vpop.f32.mrb[221].mxu1 }
 0x411   :  { %v4044_v33 = vadd.f32 %v4043_v10, %v4042_v44  ;;  %v4045_v57 = vpop.f32.mrb[222].mxu1 }
 0x412   :  { %v4046_v25 = vpop.f32.mrb[223].mxu1 }
 0x413   :  { %v6101_v46 = vadd.f32 %v4044_v33, %v5959_v56  ;;  %v4047_v38 = vadd.f32 %v4046_v25, %v4045_v57 }
 0x415   :  { %v6104_v16 = vadd.f32 %v4047_v38, %v5964_v49 }
 0x417   :  { %v4048_v30 = vpop.f32.mrb[224].mxu1 }
 0x418   :  { %v4049_v63 = vpop.f32.mrb[225].mxu1 }
 0x419   :  { %v4050_v11 = vadd.f32 %v4049_v63, %v4048_v30  ;;  %v4051_v28 = vpop.f32.mrb[226].mxu1 }
 0x41a   :  { %v4052_v1 = vpop.f32.mrb[227].mxu1 }
 0x41b   :  { %v6107_v35 = vadd.f32 %v4050_v11, %v5969_v40  ;;  %v4053_v41 = vadd.f32 %v4052_v1, %v4051_v28 }
 0x41d   :  { %v6110_v23 = vadd.f32 %v4053_v41, %v5974_v26 }
 0x41f   :  { %v4054_v14 = vpop.f32.mrb[228].mxu1 }
 0x420   :  { %v4055_v53 = vpop.f32.mrb[229].mxu1 }
 0x421   :  { %v4056_v56 = vadd.f32 %v4055_v53, %v4054_v14  ;;  %v4057_v51 = vpop.f32.mrb[230].mxu1 }
 0x422   :  { %v4058_v21 = vpop.f32.mrb[231].mxu1 }
 0x423   :  { %v6113_v49 = vadd.f32 %v4056_v56, %v5979_v20  ;;  %v4059_v2 = vadd.f32 %v4058_v21, %v4057_v51 }
 0x425   :  { %v6116_v61 = vadd.f32 %v4059_v2, %v5984_v43 }
 0x427   :  { %v4060_v6 = vpop.f32.mrb[232].mxu1 }
 0x428   :  { %v4061_v15 = vpop.f32.mrb[233].mxu1 }
 0x429   :  { %v4062_v40 = vadd.f32 %v4061_v15, %v4060_v6  ;;  %v4063_v42 = vpop.f32.mrb[234].mxu1 }
 0x42a   :  { %v4064_v58 = vpop.f32.mrb[235].mxu1 }
 0x42b   :  { %v6119_v26 = vadd.f32 %v4062_v40, %v5989_v19  ;;  %v4065_v52 = vadd.f32 %v4064_v58, %v4063_v42 }
 0x42d   :  { %v6122_v48 = vadd.f32 %v4065_v52, %v5994_v8 }
 0x42f   :  { %v4066_v29 = vpop.f32.mrb[236].mxu1 }
 0x430   :  { %v4067_v31 = vpop.f32.mrb[237].mxu1 }
 0x431   :  { %v4068_v20 = vadd.f32 %v4067_v31, %v4066_v29  ;;  %v4069_v22 = vpop.f32.mrb[238].mxu1 }
 0x432   :  { %v4070_v45 = vpop.f32.mrb[239].mxu1 }
 0x433   :  { %v6125_v43 = vadd.f32 %v4068_v20, %v5999_v12  ;;  %v4071_v44 = vadd.f32 %v4070_v45, %v4069_v22 }
 0x435   :  { %v6128_v10 = vadd.f32 %v4071_v44, %v6004_v3 }
 0x437   :  { %v4072_v33 = vpop.f32.mrb[240].mxu1 }
 0x438   :  { %v4073_v57 = vpop.f32.mrb[241].mxu1 }
 0x439   :  { %v4074_v19 = vadd.f32 %v4073_v57, %v4072_v33  ;;  %v4075_v25 = vpop.f32.mrb[242].mxu1 }
 0x43a   :  { %v4076_v38 = vpop.f32.mrb[243].mxu1 }
 0x43b   :  { %v6131_v8 = vadd.f32 %v4074_v19, %v6009_v24  ;;  %v4077_v30 = vadd.f32 %v4076_v38, %v4075_v25 }
 0x43d   :  { %v6134_v63 = vadd.f32 %v4077_v30, %v6014_v62 }
 0x440   :  { %v4078_v11 = vpop.f32.mrb[244].mxu1 }
 0x441   :  { %v4079_v28 = vpop.f32.mrb[245].mxu1 }
 0x442   :  { %v4080_v12 = vadd.f32 %v4079_v28, %v4078_v11  ;;  %v4081_v1 = vpop.f32.mrb[246].mxu1 }
 0x443   :  { %v4082_v41 = vpop.f32.mrb[247].mxu1 }
 0x444   :  { %v6137_v3 = vadd.f32 %v4080_v12, %v6019_v60  ;;  %v4083_v14 = vadd.f32 %v4082_v41, %v4081_v1 }
 0x446   :  { %v6140_v53 = vadd.f32 %v4083_v14, %v6024_v34 }
 0x448   :  { %v4084_v56 = vpop.f32.mrb[248].mxu1 }
 0x449   :  { %v4085_v51 = vpop.f32.mrb[249].mxu1 }
 0x44a   :  { %v4086_v24 = vadd.f32 %v4085_v51, %v4084_v56  ;;  %v4087_v21 = vpop.f32.mrb[250].mxu1 }
 0x44b   :  { %v4088_v2 = vpop.f32.mrb[251].mxu1 }
 0x44c   :  { %v6143_v62 = vadd.f32 %v4086_v24, %v6029_v47  ;;  %v4089_v6 = vadd.f32 %v4088_v2, %v4087_v21 }
 0x44e   :  { %v6146_v15 = vadd.f32 %v4089_v6, %v6034_v59  ;;  %v6157_v59 = vld [vmem:[%s6323_s4] ss:$0 sm:$0xff] }
 0x450   :  { %v4090_v40 = vpop.f32.mrb[252].mxu1 }
 0x451   :  { %v4091_v42 = vpop.f32.mrb[253].mxu1 }
 0x452   :  { %v4092_v60 = vadd.f32 %v4091_v42, %v4090_v40  ;;  %v4093_v58 = vpop.f32.mrb[254].mxu1 }
 0x453   :  { %v4094_v52 = vpop.f32.mrb[255].mxu1 }
 0x454   :  { %v6149_v34 = vadd.f32 %v4092_v60, %v6039_v37  ;;  %v4095_v29 = vadd.f32 %v4094_v52, %v4093_v58 }
 0x456   :  { %v6152_v31 = vadd.f32 %v4095_v29, %v6044_v36 }
 0x458   :  { %v4112_v20 = vpop.f32.mrb[0].mxu1 }
 0x459   :  { %v4113_v22 = vpop.f32.mrb[1].mxu1 }
 0x45a   :  { %v4114_v47 = vadd.f32 %v4113_v22, %v4112_v20  ;;  %v4115_v45 = vpop.f32.mrb[2].mxu1 }
 0x45b   :  { %v4116_v44 = vpop.f32.mrb[3].mxu1 }
 0x45c   :  { %v3342_v33 = vadd.f32 %v4114_v47, %v6049_v5  ;;  %v4117_v57 = vadd.f32 %v4116_v44, %v4115_v45 }
 0x45e   :  { %v3381_v37 = vadd.f32 %v6157_v59, %v3342_v33  ;;  %v3343_v19 = vadd.f32 %v4117_v57, %v6054_v7 }
 0x460   :  { %3413 = vst [vmem:[%s6324_s5] sm:$0xff] %v3381_v37  ;;  %v3382_v36 = vadd.f32 %v6157_v59, %v3343_v19  ;;  %v4118_v25 = vpop.f32.mrb[4].mxu1 }
 0x461   :  { %v4119_v38 = vpop.f32.mrb[5].mxu1 }
 0x462   :  { %3414 = vst [vmem:[%s6324_s5 + $0x8] sm:$0xff] %v3382_v36  ;;  %v4120_v30 = vadd.f32 %v4119_v38, %v4118_v25  ;;  %v4121_v11 = vpop.f32.mrb[6].mxu1 }
 0x463   :  { %v4122_v5 = vpop.f32.mrb[7].mxu1 }
 0x464   :  { %v3344_v28 = vadd.f32 %v4120_v30, %v6059_v39  ;;  %v4123_v12 = vadd.f32 %v4122_v5, %v4121_v11 }
 0x466   :  { %v3383_v7 = vadd.f32 %v6157_v59, %v3344_v28  ;;  %v3345_v1 = vadd.f32 %v4123_v12, %v6064_v4 }
 0x468   :  { %3415 = vst [vmem:[%s6324_s5 + $0x10] sm:$0xff] %v3383_v7  ;;  %v3384_v41 = vadd.f32 %v6157_v59, %v3345_v1  ;;  %v4124_v14 = vpop.f32.mrb[8].mxu1 }
 0x469   :  { %v4125_v56 = vpop.f32.mrb[9].mxu1 }
 0x46a   :  { %3416 = vst [vmem:[%s6324_s5 + $0x18] sm:$0xff] %v3384_v41  ;;  %v4126_v51 = vadd.f32 %v4125_v56, %v4124_v14  ;;  %v4127_v24 = vpop.f32.mrb[10].mxu1 }
 0x46b   :  { %v4128_v39 = vpop.f32.mrb[11].mxu1 }
 0x46c   :  { %v3346_v21 = vadd.f32 %v4126_v51, %v6069_v55  ;;  %v4129_v2 = vadd.f32 %v4128_v39, %v4127_v24 }
 0x46e   :  { %v3385_v4 = vadd.f32 %v6157_v59, %v3346_v21  ;;  %v3347_v6 = vadd.f32 %v4129_v2, %v6074_v27 }
 0x470   :  { %3417 = vst [vmem:[%s6324_s5 + $0x20] sm:$0xff] %v3385_v4  ;;  %v3386_v40 = vadd.f32 %v6157_v59, %v3347_v6  ;;  %v4130_v42 = vpop.f32.mrb[12].mxu1 }
 0x471   :  { %v4131_v60 = vpop.f32.mrb[13].mxu1 }
 0x472   :  { %3418 = vst [vmem:[%s6324_s5 + $0x28] sm:$0xff] %v3386_v40  ;;  %v4132_v58 = vadd.f32 %v4131_v60, %v4130_v42  ;;  %v4133_v52 = vpop.f32.mrb[14].mxu1 }
 0x473   :  { %v4134_v55 = vpop.f32.mrb[15].mxu1 }
 0x474   :  { %v3348_v29 = vadd.f32 %v4132_v58, %v6077_v17  ;;  %v4135_v20 = vadd.f32 %v4134_v55, %v4133_v52 }
 0x476   :  { %v3387_v27 = vadd.f32 %v6157_v59, %v3348_v29  ;;  %v3349_v22 = vadd.f32 %v4135_v20, %v6080_v9 }
 0x478   :  { %3419 = vst [vmem:[%s6324_s5 + $0x30] sm:$0xff] %v3387_v27  ;;  %v3388_v47 = vadd.f32 %v6157_v59, %v3349_v22  ;;  %v4136_v45 = vpop.f32.mrb[16].mxu1 }
 0x479   :  { %v4137_v44 = vpop.f32.mrb[17].mxu1 }
 0x47a   :  { %3420 = vst [vmem:[%s6324_s5 + $0x38] sm:$0xff] %v3388_v47  ;;  %v4138_v33 = vadd.f32 %v4137_v44, %v4136_v45  ;;  %v4139_v57 = vpop.f32.mrb[18].mxu1 }
 0x47b   :  { %v4140_v17 = vpop.f32.mrb[19].mxu1 }
 0x47c   :  { %v3350_v37 = vadd.f32 %v4138_v33, %v6083_v54  ;;  %v4141_v19 = vadd.f32 %v4140_v17, %v4139_v57 }
 0x47e   :  { %v3389_v9 = vadd.f32 %v6157_v59, %v3350_v37  ;;  %v3351_v36 = vadd.f32 %v4141_v19, %v6086_v32 }
 0x480   :  { %3421 = vst [vmem:[%s6324_s5 + $0x40] sm:$0xff] %v3389_v9  ;;  %v3390_v25 = vadd.f32 %v6157_v59, %v3351_v36  ;;  %v4142_v38 = vpop.f32.mrb[20].mxu1 }
 0x481   :  { %v4143_v30 = vpop.f32.mrb[21].mxu1 }
 0x482   :  { %3422 = vst [vmem:[%s6324_s5 + $0x48] sm:$0xff] %v3390_v25  ;;  %v4144_v11 = vadd.f32 %v4143_v30, %v4142_v38  ;;  %v4145_v5 = vpop.f32.mrb[22].mxu1 }
 0x483   :  { %v4146_v54 = vpop.f32.mrb[23].mxu1 }
 0x484   :  { %v3352_v28 = vadd.f32 %v4144_v11, %v6089_v13  ;;  %v4147_v12 = vadd.f32 %v4146_v54, %v4145_v5 }
 0x486   :  { %v3391_v32 = vadd.f32 %v6157_v59, %v3352_v28  ;;  %v3353_v7 = vadd.f32 %v4147_v12, %v6092_v18 }
 0x488   :  { %3423 = vst [vmem:[%s6324_s5 + $0x50] sm:$0xff] %v3391_v32  ;;  %v3392_v1 = vadd.f32 %v6157_v59, %v3353_v7  ;;  %v4148_v41 = vpop.f32.mrb[24].mxu1 }
 0x489   :  { %v4149_v14 = vpop.f32.mrb[25].mxu1 }
 0x48a   :  { %3424 = vst [vmem:[%s6324_s5 + $0x58] sm:$0xff] %v3392_v1  ;;  %v4150_v56 = vadd.f32 %v4149_v14, %v4148_v41  ;;  %v4151_v51 = vpop.f32.mrb[26].mxu1 }
 0x48b   :  { %v4152_v13 = vpop.f32.mrb[27].mxu1 }
 0x48c   :  { %v3354_v24 = vadd.f32 %v4150_v56, %v6095_v0  ;;  %v4153_v39 = vadd.f32 %v4152_v13, %v4151_v51 }
 0x48e   :  { %v3393_v18 = vadd.f32 %v6157_v59, %v3354_v24  ;;  %v3355_v21 = vadd.f32 %v4153_v39, %v6098_v50 }
 0x490   :  { %3425 = vst [vmem:[%s6324_s5 + $0x60] sm:$0xff] %v3393_v18  ;;  %v3394_v2 = vadd.f32 %v6157_v59, %v3355_v21  ;;  %v4154_v4 = vpop.f32.mrb[28].mxu1 }
 0x491   :  { %v4155_v6 = vpop.f32.mrb[29].mxu1 }
 0x492   :  { %3426 = vst [vmem:[%s6324_s5 + $0x68] sm:$0xff] %v3394_v2  ;;  %v4156_v40 = vadd.f32 %v4155_v6, %v4154_v4  ;;  %v4157_v42 = vpop.f32.mrb[30].mxu1 }
 0x493   :  { %v4158_v0 = vpop.f32.mrb[31].mxu1 }
 0x494   :  { %v3356_v60 = vadd.f32 %v4156_v40, %v6101_v46  ;;  %v4159_v58 = vadd.f32 %v4158_v0, %v4157_v42 }
 0x496   :  { %v3395_v50 = vadd.f32 %v6157_v59, %v3356_v60  ;;  %v3357_v52 = vadd.f32 %v4159_v58, %v6104_v16 }
 0x498   :  { %3427 = vst [vmem:[%s6324_s5 + $0x70] sm:$0xff] %v3395_v50  ;;  %v3396_v55 = vadd.f32 %v6157_v59, %v3357_v52  ;;  %v4160_v29 = vpop.f32.mrb[32].mxu1 }
 0x499   :  { %v4161_v20 = vpop.f32.mrb[33].mxu1 }
 0x49a   :  { %3428 = vst [vmem:[%s6324_s5 + $0x78] sm:$0xff] %v3396_v55  ;;  %v4162_v27 = vadd.f32 %v4161_v20, %v4160_v29  ;;  %v4163_v22 = vpop.f32.mrb[34].mxu1 }
 0x49b   :  { %v4164_v46 = vpop.f32.mrb[35].mxu1 }
 0x49c   :  { %v3358_v47 = vadd.f32 %v4162_v27, %v6107_v35  ;;  %v4165_v45 = vadd.f32 %v4164_v46, %v4163_v22 }
 0x49e   :  { %v3397_v16 = vadd.f32 %v6157_v59, %v3358_v47  ;;  %v3359_v44 = vadd.f32 %v4165_v45, %v6110_v23 }
 0x4a0   :  { %3429 = vst [vmem:[%s6324_s5 + $0x80] sm:$0xff] %v3397_v16  ;;  %v3398_v33 = vadd.f32 %v6157_v59, %v3359_v44  ;;  %v4166_v57 = vpop.f32.mrb[36].mxu1 }
 0x4a1   :  { %v4167_v17 = vpop.f32.mrb[37].mxu1 }
 0x4a2   :  { %3430 = vst [vmem:[%s6324_s5 + $0x88] sm:$0xff] %v3398_v33  ;;  %v4168_v37 = vadd.f32 %v4167_v17, %v4166_v57  ;;  %v4169_v19 = vpop.f32.mrb[38].mxu1 }
 0x4a3   :  { %v4170_v35 = vpop.f32.mrb[39].mxu1 }
 0x4a4   :  { %v3360_v9 = vadd.f32 %v4168_v37, %v6113_v49  ;;  %v4171_v36 = vadd.f32 %v4170_v35, %v4169_v19 }
 0x4a6   :  { %v3399_v23 = vadd.f32 %v6157_v59, %v3360_v9  ;;  %v3361_v25 = vadd.f32 %v4171_v36, %v6116_v61 }
 0x4a8   :  { %3431 = vst [vmem:[%s6324_s5 + $0x90] sm:$0xff] %v3399_v23  ;;  %v3400_v38 = vadd.f32 %v6157_v59, %v3361_v25  ;;  %v4172_v30 = vpop.f32.mrb[40].mxu1 }
 0x4a9   :  { %v4173_v11 = vpop.f32.mrb[41].mxu1 }
 0x4aa   :  { %3432 = vst [vmem:[%s6324_s5 + $0x98] sm:$0xff] %v3400_v38  ;;  %v4174_v5 = vadd.f32 %v4173_v11, %v4172_v30  ;;  %v4175_v54 = vpop.f32.mrb[42].mxu1 }
 0x4ab   :  { %v4176_v49 = vpop.f32.mrb[43].mxu1 }
 0x4ac   :  { %v3362_v28 = vadd.f32 %v4174_v5, %v6119_v26  ;;  %v4177_v12 = vadd.f32 %v4176_v49, %v4175_v54 }
 0x4ae   :  { %v3401_v61 = vadd.f32 %v6157_v59, %v3362_v28  ;;  %v3363_v32 = vadd.f32 %v4177_v12, %v6122_v48 }
 0x4b0   :  { %3433 = vst [vmem:[%s6324_s5 + $0xa0] sm:$0xff] %v3401_v61  ;;  %v3402_v7 = vadd.f32 %v6157_v59, %v3363_v32  ;;  %v4178_v1 = vpop.f32.mrb[44].mxu1 }
 0x4b1   :  { %v4179_v41 = vpop.f32.mrb[45].mxu1 }
 0x4b2   :  { %3434 = vst [vmem:[%s6324_s5 + $0xa8] sm:$0xff] %v3402_v7  ;;  %v4180_v14 = vadd.f32 %v4179_v41, %v4178_v1  ;;  %v4181_v56 = vpop.f32.mrb[46].mxu1 }
 0x4b3   :  { %v4182_v26 = vpop.f32.mrb[47].mxu1 }
 0x4b4   :  { %v3364_v51 = vadd.f32 %v4180_v14, %v6125_v43  ;;  %v4183_v13 = vadd.f32 %v4182_v26, %v4181_v56 }
 0x4b6   :  { %v3403_v48 = vadd.f32 %v6157_v59, %v3364_v51  ;;  %v3365_v24 = vadd.f32 %v4183_v13, %v6128_v10 }
 0x4b8   :  { %3435 = vst [vmem:[%s6324_s5 + $0xb0] sm:$0xff] %v3403_v48  ;;  %v3404_v39 = vadd.f32 %v6157_v59, %v3365_v24  ;;  %v4184_v18 = vpop.f32.mrb[48].mxu1 }
 0x4b9   :  { %v4185_v21 = vpop.f32.mrb[49].mxu1 }
 0x4ba   :  { %3436 = vst [vmem:[%s6324_s5 + $0xb8] sm:$0xff] %v3404_v39  ;;  %v4186_v2 = vadd.f32 %v4185_v21, %v4184_v18  ;;  %v4187_v4 = vpop.f32.mrb[50].mxu1 }
 0x4bb   :  { %v4188_v43 = vpop.f32.mrb[51].mxu1 }
 0x4bc   :  { %v3366_v6 = vadd.f32 %v4186_v2, %v6131_v8  ;;  %v4189_v40 = vadd.f32 %v4188_v43, %v4187_v4 }
 0x4be   :  { %v3405_v10 = vadd.f32 %v6157_v59, %v3366_v6  ;;  %v3367_v42 = vadd.f32 %v4189_v40, %v6134_v63 }
 0x4c0   :  { %3437 = vst [vmem:[%s6324_s5 + $0xc0] sm:$0xff] %v3405_v10  ;;  %v3406_v0 = vadd.f32 %v6157_v59, %v3367_v42  ;;  %v4190_v60 = vpop.f32.mrb[52].mxu1 }
 0x4c1   :  { %v4191_v58 = vpop.f32.mrb[53].mxu1 }
 0x4c2   :  { %3438 = vst [vmem:[%s6324_s5 + $0xc8] sm:$0xff] %v3406_v0  ;;  %v4192_v50 = vadd.f32 %v4191_v58, %v4190_v60  ;;  %v4193_v52 = vpop.f32.mrb[54].mxu1 }
 0x4c3   :  { %v4194_v8 = vpop.f32.mrb[55].mxu1 }
 0x4c4   :  { %v3368_v55 = vadd.f32 %v4192_v50, %v6137_v3  ;;  %v4195_v29 = vadd.f32 %v4194_v8, %v4193_v52 }
 0x4c6   :  { %v3407_v63 = vadd.f32 %v6157_v59, %v3368_v55  ;;  %v3369_v20 = vadd.f32 %v4195_v29, %v6140_v53 }
 0x4c8   :  { %3439 = vst [vmem:[%s6324_s5 + $0xd0] sm:$0xff] %v3407_v63  ;;  %v3408_v27 = vadd.f32 %v6157_v59, %v3369_v20  ;;  %v4196_v22 = vpop.f32.mrb[56].mxu1 }
 0x4c9   :  { %v4197_v46 = vpop.f32.mrb[57].mxu1 }
 0x4ca   :  { %3440 = vst [vmem:[%s6324_s5 + $0xd8] sm:$0xff] %v3408_v27  ;;  %v4198_v47 = vadd.f32 %v4197_v46, %v4196_v22  ;;  %v4199_v45 = vpop.f32.mrb[58].mxu1 }
 0x4cb   :  { %v4200_v3 = vpop.f32.mrb[59].mxu1 }
 0x4cc   :  { %v3370_v16 = vadd.f32 %v4198_v47, %v6143_v62  ;;  %v4201_v44 = vadd.f32 %v4200_v3, %v4199_v45 }
 0x4ce   :  { %v3409_v53 = vadd.f32 %v6157_v59, %v3370_v16  ;;  %v3371_v33 = vadd.f32 %v4201_v44, %v6146_v15 }
 0x4d0   :  { %3441 = vst [vmem:[%s6324_s5 + $0xe0] sm:$0xff] %v3409_v53  ;;  %v3410_v57 = vadd.f32 %v6157_v59, %v3371_v33  ;;  %v4202_v17 = vpop.f32.mrb[60].mxu1 }
 0x4d1   :  { %v4203_v37 = vpop.f32.mrb[61].mxu1 }
 0x4d2   :  { %3442 = vst [vmem:[%s6324_s5 + $0xe8] sm:$0xff] %v3410_v57  ;;  %v4204_v19 = vadd.f32 %v4203_v37, %v4202_v17  ;;  %v4205_v35 = vpop.f32.mrb[62].mxu1 }
 0x4d3   :  { %v4206_v62 = vpop.f32.mrb[63].mxu1 }
 0x4d4   :  { %v3372_v9 = vadd.f32 %v4204_v19, %v6149_v34  ;;  %v4207_v36 = vadd.f32 %v4206_v62, %v4205_v35 }
 0x4d6   :  { %v3411_v15 = vadd.f32 %v6157_v59, %v3372_v9  ;;  %v3373_v23 = vadd.f32 %v4207_v36, %v6152_v31 }
 0x4d8   :  { %3443 = vst [vmem:[%s6324_s5 + $0xf0] sm:$0xff] %v3411_v15  ;;  %v3412_v25 = vadd.f32 %v6157_v59, %v3373_v23 }
 0x4da   :  { %3444 = vst [vmem:[%s6324_s5 + $0xf8] sm:$0xff] %v3412_v25 }
 0x4db   :  { %3449 = vsyncpa [#allocation3], 1 }
 0x4dc   :  { %3450 = vsyncpa [#allocation5], 1 }

</bundles_post_ra>
